<compile_context>
chip_gen: v7x
topology: tpu7x:2x2x1
jax: 0.10.0
libtpu: 0.0.40
codegen_flags: <defaults>
</compile_context>

<pallas_src>
import functools

import jax
import jax.numpy as jnp
import numpy as np
from jax.experimental import pallas as pl
from jax.experimental.pallas import tpu as pltpu

_EPS = 1e-5


def _round_up(x, m):
    return (x + m - 1) // m * m


def _conv_stats_kernel(*refs, H, W, Wp, Cx, Cp, apply_bn):
    """3x3 'same' conv over one (H, W) tile + per-tile BN statistics.

    apply_bn=False: refs = (x, w, acc_out, mean_out, m2_out, pad_scratch); x is (H, W, Cx) bf16.
    apply_bn=True : refs = (acc_in, mean, scale, beta, w, acc_out, mean_out, m2_out, pad_scratch);
                    BN + ReLU is applied to the previous f32 conv accumulator before this conv.
    """
    if apply_bn:
        x_ref, mean_ref, scale_ref, beta_ref, w_ref, acc_ref, mu_ref, m2_ref, pad_ref = refs
        x = (x_ref[...] - mean_ref[...]) * scale_ref[...] + beta_ref[...]   # (H*W, Cp) f32
        xb = jnp.maximum(x, 0.0).astype(jnp.bfloat16).reshape(H, W, Cp)
    else:
        x_ref, w_ref, acc_ref, mu_ref, m2_ref, pad_ref = refs
        xb = x_ref[...].astype(jnp.bfloat16)                                # (H, W, Cx)
        if Cx < Cp:
            # Lane-pad the (narrow) input channels; padded lanes are exactly 0.
            xb = jnp.concatenate(
                [xb, jnp.zeros((H, W, Cp - Cx), jnp.bfloat16)], axis=-1)

    # ---- stage into the halo-padded scratch; zero side columns folded into the one store ----
    zc = jnp.zeros((H, 1, Cp), jnp.bfloat16)
    pad_ref[1:H + 1, 0:W + 2, :] = jnp.concatenate([zc, xb, zc], axis=1)
    zr = jnp.zeros((1, Wp, Cp), jnp.bfloat16)
    pad_ref[0:1, :, :] = zr
    pad_ref[H + 1:H + 2, :, :] = zr
    # Columns >= W+2 of the scratch are never read by any tap, so they need no zeroing.

    # ---- conv: 9 accumulated per-tap MXU matmuls (no materialized im2col buffer) ----
    acc = jnp.zeros((H * W, Cp), jnp.float32)
    for kh in range(3):
        for kw in range(3):
            slab = pad_ref[kh:kh + H, kw:kw + W, :].reshape(H * W, Cp)      # bf16
            acc = acc + jnp.dot(slab, w_ref[kh * 3 + kw],
                                preferred_element_type=jnp.float32)
    acc_ref[...] = acc

    # ---- per-tile BN statistics (two-pass within the tile -> numerically stable) ----
    inv_m = 1.0 / (H * W)
    mean_t = jnp.sum(acc, axis=0, keepdims=True) * inv_m                    # (1, Cp)
    d = acc - mean_t
    mu_ref[...] = mean_t
    m2_ref[...] = jnp.sum(d * d, axis=0, keepdims=True)                     # (1, Cp)


def _finalize_kernel(acc_ref, mean_ref, scale_ref, beta_ref, x_out_ref, p_out_ref,
                     *, H, W, Cout, Cp):
    """BN2 + ReLU, lane-dense conv-output store, MaxPool2d(2, 2)."""
    y = (acc_ref[...] - mean_ref[...]) * scale_ref[...] + beta_ref[...]     # (H*W, Cp) f32
    y = jnp.maximum(y, 0.0)
    H2, W2 = H // 2, W // 2

    # MaxPool2d(2, 2): channels stay on the lane dim; H-pairs are a cheap leading-dim regroup,
    # W-pairs reduce the size-2 axis (validated lowering).
    hp = jnp.max(y.reshape(H2, 2, W, Cp), axis=1)                           # (H2, W, Cp)
    pooled = jnp.max(hp.reshape(H2 * W2, 2, Cp), axis=1)                    # (H2*W2, Cp)

    if Cout == Cp:
        # Already lane-dense: plain unmasked stores; wrapper reshape is free.
        x_out_ref[...] = y.astype(x_out_ref.dtype)
        p_out_ref[...] = pooled.astype(p_out_ref.dtype)
    else:
        # Single lane compaction for narrow Cout (< 128): store (H, W*Cout) / (H2, W2*Cout).
        x_out_ref[...] = (y.reshape(H, W, Cp)[:, :, :Cout]
                          .reshape(H, W * Cout).astype(x_out_ref.dtype))
        p_out_ref[...] = (pooled.reshape(H2, W2, Cp)[:, :, :Cout]
                          .reshape(H2, W2 * Cout).astype(p_out_ref.dtype))


def _combine_stats(mu_t, m2_t, m_tile, m_total):
    """Exact cross-tile mean/variance combination (Chan et al.); equal per-tile counts."""
    mean = jnp.sum(mu_t, axis=0) * (m_tile / m_total)                       # (1, Cp)
    m2 = jnp.sum(m2_t, axis=0) + m_tile * jnp.sum((mu_t - mean) ** 2, axis=0)
    var = m2 / m_total                                                      # biased, as in PyTorch
    return mean, var


def encoder_block(x_nchw, w1, g1, b1, w2, g2, b2):
    """x_nchw: (N, Cin, H, W); conv weights in HWIO (3,3,in,out). Returns (x, p) in NCHW, f32."""
    N, Cin, H, W = x_nchw.shape
    Cout = w1.shape[-1]
    if H % 2 or W % 2:
        raise ValueError("MaxPool2d(kernel_size=2, stride=2) requires even H and W")

    Cp = max(128, _round_up(Cout, 128))           # lane-padded channel width
    Wp = _round_up(W + 2, 8)                      # sublane-aligned scratch width
    H2, W2 = H // 2, W // 2
    m_tile, m_total = H * W, N * H * W

    # Input: NCHW -> NHWC bf16 (channel padding happens inside the kernel, not in HBM).
    x_nhwc = jnp.transpose(x_nchw, (0, 2, 3, 1)).astype(jnp.bfloat16)

    def pack_w(w, cin):
        wp = jnp.zeros((9, Cp, Cp), jnp.float32)
        wp = wp.at[:, :cin, :Cout].set(w.astype(jnp.float32).reshape(9, cin, Cout))
        return wp.astype(jnp.bfloat16)

    def pad_vec(v):  # zero-padded gamma/beta keep padded lanes exactly 0 through both convs
        return jnp.zeros((1, Cp), jnp.float32).at[0, :Cout].set(v.astype(jnp.float32))

    w1_p, w2_p = pack_w(w1, Cin), pack_w(w2, Cout)
    g1_p, b1_p, g2_p, b2_p = pad_vec(g1), pad_vec(b1), pad_vec(g2), pad_vec(b2)

    # Per-grid-step VMEM budget: halo scratch + f32 acc + weights + in/out tiles, x4 for
    # double-buffering and compiler temps, clamped under v7x's 64 MiB physical VMEM.
    tile_bytes = ((H + 2) * Wp * Cp * 2          # bf16 halo scratch
                  + H * W * Cp * 4               # f32 conv accumulator
                  + 9 * Cp * Cp * 2              # bf16 packed weights
                  + 2 * H * W * Cp * 4)          # activation tiles in/out
    vmem_limit = int(min(max(4 * tile_bytes, 32 * 2 ** 20), 48 * 2 ** 20))
    cparams = pltpu.CompilerParams(dimension_semantics=("parallel",),
                                   vmem_limit_bytes=vmem_limit)

    acc_spec = pl.BlockSpec((None, H * W, Cp), lambda n: (n, 0, 0))
    stats_spec = pl.BlockSpec((None, 1, Cp), lambda n: (n, 0, 0))
    w_spec = pl.BlockSpec((9, Cp, Cp), lambda n: (0, 0, 0))
    bn_spec = pl.BlockSpec((1, Cp), lambda n: (0, 0))
    scratch = [pltpu.VMEM((H + 2, Wp, Cp), jnp.bfloat16)]
    acc_shape = jax.ShapeDtypeStruct((N, H * W, Cp), jnp.float32)
    stats_shape = jax.ShapeDtypeStruct((N, 1, Cp), jnp.float32)

    # ---- phase A: conv1 + per-tile statistics ----
    conv1 = functools.partial(_conv_stats_kernel, H=H, W=W, Wp=Wp, Cx=Cin, Cp=Cp,
                              apply_bn=False)
    acc1, mu1_t, m2_1_t = pl.pallas_call(
        conv1,
        grid=(N,),
        in_specs=[pl.BlockSpec((None, H, W, Cin), lambda n: (n, 0, 0, 0)), w_spec],
        out_specs=(acc_spec, stats_spec, stats_spec),
        out_shape=(acc_shape, stats_shape, stats_shape),
        scratch_shapes=scratch,
        compiler_params=cparams,
    )(x_nhwc, w1_p)
    mean1, var1 = _combine_stats(mu1_t, m2_1_t, m_tile, m_total)
    scale1 = g1_p * jax.lax.rsqrt(var1 + _EPS)

    # ---- phase B: BN1 + ReLU + conv2 + per-tile statistics ----
    conv2 = functools.partial(_conv_stats_kernel, H=H, W=W, Wp=Wp, Cx=Cp, Cp=Cp,
                              apply_bn=True)
    acc2, mu2_t, m2_2_t = pl.pallas_call(
        conv2,
        grid=(N,),
        in_specs=[acc_spec, bn_spec, bn_spec, bn_spec, w_spec],
        out_specs=(acc_spec, stats_spec, stats_spec),
        out_shape=(acc_shape, stats_shape, stats_shape),
        scratch_shapes=scratch,
        compiler_params=cparams,
    )(acc1, mean1, scale1, b1_p, w2_p)
    mean2, var2 = _combine_stats(mu2_t, m2_2_t, m_tile, m_total)
    scale2 = g2_p * jax.lax.rsqrt(var2 + _EPS)

    # ---- phase C: BN2 + ReLU + lane-dense store + MaxPool2d(2, 2) ----
    dense = (Cout == Cp)
    x_shape = (N, H * W, Cp) if dense else (N, H, W * Cout)
    p_shape = (N, H2 * W2, Cp) if dense else (N, H2, W2 * Cout)
    fin = functools.partial(_finalize_kernel, H=H, W=W, Cout=Cout, Cp=Cp)
    x_out, p_out = pl.pallas_call(
        fin,
        grid=(N,),
        in_specs=[acc_spec, bn_spec, bn_spec, bn_spec],
        out_specs=(pl.BlockSpec((None,) + x_shape[1:], lambda n: (n, 0, 0)),
                   pl.BlockSpec((None,) + p_shape[1:], lambda n: (n, 0, 0))),
        out_shape=(jax.ShapeDtypeStruct(x_shape, jnp.float32),
                   jax.ShapeDtypeStruct(p_shape, jnp.float32)),
        compiler_params=cparams,
    )(acc2, mean2, scale2, b2_p)

    # Lane-dense kernel outputs are contiguous NHWC: reshape is free, then transpose to NCHW.
    if dense:
        x_nhwc_out = x_out.reshape(N, H, W, Cout)
        p_nhwc_out = p_out.reshape(N, H2, W2, Cout)
    else:
        x_nhwc_out = x_out.reshape(N, H, W, Cout)
        p_nhwc_out = p_out.reshape(N, H2, W2, Cout)
    return (jnp.transpose(x_nhwc_out, (0, 3, 1, 2)),
            jnp.transpose(p_nhwc_out, (0, 3, 1, 2)))


def _reference(x_nchw, w1, g1, b1, w2, g2, b2):
    """Pure-JAX f32 reference (PyTorch training-mode semantics) for validation."""
    def conv(x, w):
        return jax.lax.conv_general_dilated(
            x, w, window_strides=(1, 1), padding="SAME",
            dimension_numbers=("NCHW", "HWIO", "NCHW"))

    def bn_relu(x, g, b):
        mean = jnp.mean(x, axis=(0, 2, 3), keepdims=True)
        var = jnp.mean((x - mean) ** 2, axis=(0, 2, 3), keepdims=True)
        y = (x - mean) / jnp.sqrt(var + _EPS) * g.reshape(1, -1, 1, 1) + b.reshape(1, -1, 1, 1)
        return jnp.maximum(y, 0.0)

    h = bn_relu(conv(x_nchw, w1), g1, b1)
    y = bn_relu(conv(h, w2), g2, b2)
    p = jax.lax.reduce_window(y, -jnp.inf, jax.lax.max,
                              (1, 1, 2, 2), (1, 1, 2, 2), "VALID")
    return y, p


if __name__ == "__main__":
    N, Cin, Cout, H, W = 2, 4, 8, 16, 16

    key = jax.random.PRNGKey(0)
    kx, kw1, kw2, kg1, kb1, kg2, kb2 = jax.random.split(key, 7)

    x = jax.random.normal(kx, (N, Cin, H, W), jnp.float32)
    # Conv weights in HWIO layout: (3, 3, in_c, out_c), no bias (as in the module).
    w1 = jax.random.normal(kw1, (3, 3, Cin, Cout), jnp.float32) * (1.0 / (3 * 3 * Cin) ** 0.5)
    w2 = jax.random.normal(kw2, (3, 3, Cout, Cout), jnp.float32) * (1.0 / (3 * 3 * Cout) ** 0.5)
    g1 = 1.0 + 0.1 * jax.random.normal(kg1, (Cout,), jnp.float32)
    b1 = 0.1 * jax.random.normal(kb1, (Cout,), jnp.float32)
    g2 = 1.0 + 0.1 * jax.random.normal(kg2, (Cout,), jnp.float32)
    b2 = 0.1 * jax.random.normal(kb2, (Cout,), jnp.float32)

    x_out, p_out = encoder_block(x, w1, g1, b1, w2, g2, b2)
    jax.block_until_ready((x_out, p_out))

    x_ref, p_ref = _reference(x, w1, g1, b1, w2, g2, b2)
    # Tolerance accounts for bf16 MXU inputs (f32 accumulation) vs. the f32 reference.
    np.testing.assert_allclose(np.asarray(x_out), np.asarray(x_ref), atol=5e-2, rtol=5e-2)
    np.testing.assert_allclose(np.asarray(p_out), np.asarray(p_ref), atol=5e-2, rtol=5e-2)

    assert x_out.shape == (N, Cout, H, W)
    assert p_out.shape == (N, Cout, H // 2, W // 2)
    print("KERNEL_OK")
</pallas_src>

<mosaic_0001>
module attributes {stable_mosaic.version = 11 : i64} {
  func.func @_conv_stats_kernel(%arg0: i32, %arg1: memref<1x16x16x4xbf16, #tpu.memory_space<vmem>>, %arg2: memref<9x128x128xbf16, #tpu.memory_space<vmem>>, %arg3: memref<1x256x128xf32, #tpu.memory_space<vmem>>, %arg4: memref<1x1x128xf32, #tpu.memory_space<vmem>>, %arg5: memref<1x1x128xf32, #tpu.memory_space<vmem>>, %arg6: memref<18x24x128xbf16, #tpu.memory_space<vmem>>) attributes {dimension_semantics = [#tpu.dimension_semantics<parallel>], iteration_bounds = array<i64: 2>, scalar_prefetch = 0 : i64, scratch_operands = 1 : i64, tpu.core_type = #tpu.core_type<tc>, window_params = [{transform_indices = @transform_0, window_bounds = array<i64: 1, 16, 16, 4>}, {pipeline_mode = #tpu.pipeline_mode<synchronous>, transform_indices = @transform_1, window_bounds = array<i64: 9, 128, 128>}, {transform_indices = @transform_2, window_bounds = array<i64: 1, 256, 128>}, {transform_indices = @transform_3, window_bounds = array<i64: 1, 1, 128>}, {transform_indices = @transform_4, window_bounds = array<i64: 1, 1, 128>}]} {
    %c0 = arith.constant 0 : index
    %c0_0 = arith.constant 0 : index
    %c0_1 = arith.constant 0 : index
    %c0_2 = arith.constant 0 : index
    %0 = vector.load %arg1[%c0, %c0_0, %c0_1, %c0_2] : memref<1x16x16x4xbf16, #tpu.memory_space<vmem>>, vector<1x16x16x4xbf16>
    %1 = vector.shape_cast %0 : vector<1x16x16x4xbf16> to vector<16x16x4xbf16>
    %cst = arith.constant 0.000000e+00 : bf16
    %2 = vector.broadcast %cst : bf16 to vector<16x16x124xbf16>
    %3 = tpu.concatenate %1, %2 in 2 : vector<16x16x4xbf16>, vector<16x16x124xbf16> -> vector<16x16x128xbf16>
    %cst_3 = arith.constant 0.000000e+00 : bf16
    %4 = vector.broadcast %cst_3 : bf16 to vector<16x1x128xbf16>
    %5 = tpu.concatenate %4, %3, %4 in 1 : vector<16x1x128xbf16>, vector<16x16x128xbf16>, vector<16x1x128xbf16> -> vector<16x18x128xbf16>
    %c1 = arith.constant 1 : index
    %c0_4 = arith.constant 0 : index
    %c0_5 = arith.constant 0 : index
    %6 = vector.load %arg6[%c1, %c0_4, %c0_5] : memref<18x24x128xbf16, #tpu.memory_space<vmem>>, vector<16x18x128xbf16>
    tpu.vector_store %arg6[%c1, %c0_4, %c0_5], %5 {strides = array<i32>} : memref<18x24x128xbf16, #tpu.memory_space<vmem>>, vector<16x18x128xbf16>,
    %cst_6 = arith.constant 0.000000e+00 : bf16
    %7 = vector.broadcast %cst_6 : bf16 to vector<1x24x128xbf16>
    %c0_7 = arith.constant 0 : index
    %c0_8 = arith.constant 0 : index
    %c0_9 = arith.constant 0 : index
    %8 = vector.load %arg6[%c0_7, %c0_8, %c0_9] : memref<18x24x128xbf16, #tpu.memory_space<vmem>>, vector<1x24x128xbf16>
    tpu.vector_store %arg6[%c0_7, %c0_8, %c0_9], %7 {strides = array<i32>} : memref<18x24x128xbf16, #tpu.memory_space<vmem>>, vector<1x24x128xbf16>,
    %c17 = arith.constant 17 : index
    %c0_10 = arith.constant 0 : index
    %c0_11 = arith.constant 0 : index
    %9 = vector.load %arg6[%c17, %c0_10, %c0_11] : memref<18x24x128xbf16, #tpu.memory_space<vmem>>, vector<1x24x128xbf16>
    tpu.vector_store %arg6[%c17, %c0_10, %c0_11], %7 {strides = array<i32>} : memref<18x24x128xbf16, #tpu.memory_space<vmem>>, vector<1x24x128xbf16>,
    %cst_12 = arith.constant 0.000000e+00 : f32
    %10 = vector.broadcast %cst_12 : f32 to vector<256x128xf32>
    %c0_13 = arith.constant 0 : index
    %c0_14 = arith.constant 0 : index
    %c0_15 = arith.constant 0 : index
    %11 = vector.load %arg6[%c0_13, %c0_14, %c0_15] : memref<18x24x128xbf16, #tpu.memory_space<vmem>>, vector<16x16x128xbf16>
    %12 = vector.shape_cast %11 : vector<16x16x128xbf16> to vector<256x128xbf16>
    %c0_16 = arith.constant 0 : index
    %c0_17 = arith.constant 0 : index
    %c0_18 = arith.constant 0 : index
    %13 = vector.load %arg2[%c0_16, %c0_17, %c0_18] : memref<9x128x128xbf16, #tpu.memory_space<vmem>>, vector<1x128x128xbf16>
    %14 = vector.shape_cast %13 : vector<1x128x128xbf16> to vector<128x128xbf16>
    %cst_19 = arith.constant dense<0.000000e+00> : vector<256x128xf32>
    %15 = tpu.matmul %12, %14, %cst_19 {dimension_numbers = #tpu.dot_dimension_numbers<[1], [0], [0], [1], [0, 0, 1, 1], [], []>} : vector<256x128xbf16>, vector<128x128xbf16>, vector<256x128xf32> -> vector<256x128xf32>
    %16 = arith.addf %10, %15 : vector<256x128xf32>
    %c0_20 = arith.constant 0 : index
    %c1_21 = arith.constant 1 : index
    %c0_22 = arith.constant 0 : index
    %17 = vector.load %arg6[%c0_20, %c1_21, %c0_22] : memref<18x24x128xbf16, #tpu.memory_space<vmem>>, vector<16x16x128xbf16>
    %18 = vector.shape_cast %17 : vector<16x16x128xbf16> to vector<256x128xbf16>
    %c1_23 = arith.constant 1 : index
    %c0_24 = arith.constant 0 : index
    %c0_25 = arith.constant 0 : index
    %19 = vector.load %arg2[%c1_23, %c0_24, %c0_25] : memref<9x128x128xbf16, #tpu.memory_space<vmem>>, vector<1x128x128xbf16>
    %20 = vector.shape_cast %19 : vector<1x128x128xbf16> to vector<128x128xbf16>
    %cst_26 = arith.constant dense<0.000000e+00> : vector<256x128xf32>
    %21 = tpu.matmul %18, %20, %cst_26 {dimension_numbers = #tpu.dot_dimension_numbers<[1], [0], [0], [1], [0, 0, 1, 1], [], []>} : vector<256x128xbf16>, vector<128x128xbf16>, vector<256x128xf32> -> vector<256x128xf32>
    %22 = arith.addf %16, %21 : vector<256x128xf32>
    %c0_27 = arith.constant 0 : index
    %c2 = arith.constant 2 : index
    %c0_28 = arith.constant 0 : index
    %23 = vector.load %arg6[%c0_27, %c2, %c0_28] : memref<18x24x128xbf16, #tpu.memory_space<vmem>>, vector<16x16x128xbf16>
    %24 = vector.shape_cast %23 : vector<16x16x128xbf16> to vector<256x128xbf16>
    %c2_29 = arith.constant 2 : index
    %c0_30 = arith.constant 0 : index
    %c0_31 = arith.constant 0 : index
    %25 = vector.load %arg2[%c2_29, %c0_30, %c0_31] : memref<9x128x128xbf16, #tpu.memory_space<vmem>>, vector<1x128x128xbf16>
    %26 = vector.shape_cast %25 : vector<1x128x128xbf16> to vector<128x128xbf16>
    %cst_32 = arith.constant dense<0.000000e+00> : vector<256x128xf32>
    %27 = tpu.matmul %24, %26, %cst_32 {dimension_numbers = #tpu.dot_dimension_numbers<[1], [0], [0], [1], [0, 0, 1, 1], [], []>} : vector<256x128xbf16>, vector<128x128xbf16>, vector<256x128xf32> -> vector<256x128xf32>
    %28 = arith.addf %22, %27 : vector<256x128xf32>
    %c1_33 = arith.constant 1 : index
    %c0_34 = arith.constant 0 : index
    %c0_35 = arith.constant 0 : index
    %29 = vector.load %arg6[%c1_33, %c0_34, %c0_35] : memref<18x24x128xbf16, #tpu.memory_space<vmem>>, vector<16x16x128xbf16>
    %30 = vector.shape_cast %29 : vector<16x16x128xbf16> to vector<256x128xbf16>
    %c3 = arith.constant 3 : index
    %c0_36 = arith.constant 0 : index
    %c0_37 = arith.constant 0 : index
    %31 = vector.load %arg2[%c3, %c0_36, %c0_37] : memref<9x128x128xbf16, #tpu.memory_space<vmem>>, vector<1x128x128xbf16>
    %32 = vector.shape_cast %31 : vector<1x128x128xbf16> to vector<128x128xbf16>
    %cst_38 = arith.constant dense<0.000000e+00> : vector<256x128xf32>
    %33 = tpu.matmul %30, %32, %cst_38 {dimension_numbers = #tpu.dot_dimension_numbers<[1], [0], [0], [1], [0, 0, 1, 1], [], []>} : vector<256x128xbf16>, vector<128x128xbf16>, vector<256x128xf32> -> vector<256x128xf32>
    %34 = arith.addf %28, %33 : vector<256x128xf32>
    %c1_39 = arith.constant 1 : index
    %c1_40 = arith.constant 1 : index
    %c0_41 = arith.constant 0 : index
    %35 = vector.load %arg6[%c1_39, %c1_40, %c0_41] : memref<18x24x128xbf16, #tpu.memory_space<vmem>>, vector<16x16x128xbf16>
    %36 = vector.shape_cast %35 : vector<16x16x128xbf16> to vector<256x128xbf16>
    %c4 = arith.constant 4 : index
    %c0_42 = arith.constant 0 : index
    %c0_43 = arith.constant 0 : index
    %37 = vector.load %arg2[%c4, %c0_42, %c0_43] : memref<9x128x128xbf16, #tpu.memory_space<vmem>>, vector<1x128x128xbf16>
    %38 = vector.shape_cast %37 : vector<1x128x128xbf16> to vector<128x128xbf16>
    %cst_44 = arith.constant dense<0.000000e+00> : vector<256x128xf32>
    %39 = tpu.matmul %36, %38, %cst_44 {dimension_numbers = #tpu.dot_dimension_numbers<[1], [0], [0], [1], [0, 0, 1, 1], [], []>} : vector<256x128xbf16>, vector<128x128xbf16>, vector<256x128xf32> -> vector<256x128xf32>
    %40 = arith.addf %34, %39 : vector<256x128xf32>
    %c1_45 = arith.constant 1 : index
    %c2_46 = arith.constant 2 : index
    %c0_47 = arith.constant 0 : index
    %41 = vector.load %arg6[%c1_45, %c2_46, %c0_47] : memref<18x24x128xbf16, #tpu.memory_space<vmem>>, vector<16x16x128xbf16>
    %42 = vector.shape_cast %41 : vector<16x16x128xbf16> to vector<256x128xbf16>
    %c5 = arith.constant 5 : index
    %c0_48 = arith.constant 0 : index
    %c0_49 = arith.constant 0 : index
    %43 = vector.load %arg2[%c5, %c0_48, %c0_49] : memref<9x128x128xbf16, #tpu.memory_space<vmem>>, vector<1x128x128xbf16>
    %44 = vector.shape_cast %43 : vector<1x128x128xbf16> to vector<128x128xbf16>
    %cst_50 = arith.constant dense<0.000000e+00> : vector<256x128xf32>
    %45 = tpu.matmul %42, %44, %cst_50 {dimension_numbers = #tpu.dot_dimension_numbers<[1], [0], [0], [1], [0, 0, 1, 1], [], []>} : vector<256x128xbf16>, vector<128x128xbf16>, vector<256x128xf32> -> vector<256x128xf32>
    %46 = arith.addf %40, %45 : vector<256x128xf32>
    %c2_51 = arith.constant 2 : index
    %c0_52 = arith.constant 0 : index
    %c0_53 = arith.constant 0 : index
    %47 = vector.load %arg6[%c2_51, %c0_52, %c0_53] : memref<18x24x128xbf16, #tpu.memory_space<vmem>>, vector<16x16x128xbf16>
    %48 = vector.shape_cast %47 : vector<16x16x128xbf16> to vector<256x128xbf16>
    %c6 = arith.constant 6 : index
    %c0_54 = arith.constant 0 : index
    %c0_55 = arith.constant 0 : index
    %49 = vector.load %arg2[%c6, %c0_54, %c0_55] : memref<9x128x128xbf16, #tpu.memory_space<vmem>>, vector<1x128x128xbf16>
    %50 = vector.shape_cast %49 : vector<1x128x128xbf16> to vector<128x128xbf16>
    %cst_56 = arith.constant dense<0.000000e+00> : vector<256x128xf32>
    %51 = tpu.matmul %48, %50, %cst_56 {dimension_numbers = #tpu.dot_dimension_numbers<[1], [0], [0], [1], [0, 0, 1, 1], [], []>} : vector<256x128xbf16>, vector<128x128xbf16>, vector<256x128xf32> -> vector<256x128xf32>
    %52 = arith.addf %46, %51 : vector<256x128xf32>
    %c2_57 = arith.constant 2 : index
    %c1_58 = arith.constant 1 : index
    %c0_59 = arith.constant 0 : index
    %53 = vector.load %arg6[%c2_57, %c1_58, %c0_59] : memref<18x24x128xbf16, #tpu.memory_space<vmem>>, vector<16x16x128xbf16>
    %54 = vector.shape_cast %53 : vector<16x16x128xbf16> to vector<256x128xbf16>
    %c7 = arith.constant 7 : index
    %c0_60 = arith.constant 0 : index
    %c0_61 = arith.constant 0 : index
    %55 = vector.load %arg2[%c7, %c0_60, %c0_61] : memref<9x128x128xbf16, #tpu.memory_space<vmem>>, vector<1x128x128xbf16>
    %56 = vector.shape_cast %55 : vector<1x128x128xbf16> to vector<128x128xbf16>
    %cst_62 = arith.constant dense<0.000000e+00> : vector<256x128xf32>
    %57 = tpu.matmul %54, %56, %cst_62 {dimension_numbers = #tpu.dot_dimension_numbers<[1], [0], [0], [1], [0, 0, 1, 1], [], []>} : vector<256x128xbf16>, vector<128x128xbf16>, vector<256x128xf32> -> vector<256x128xf32>
    %58 = arith.addf %52, %57 : vector<256x128xf32>
    %c2_63 = arith.constant 2 : index
    %c2_64 = arith.constant 2 : index
    %c0_65 = arith.constant 0 : index
    %59 = vector.load %arg6[%c2_63, %c2_64, %c0_65] : memref<18x24x128xbf16, #tpu.memory_space<vmem>>, vector<16x16x128xbf16>
    %60 = vector.shape_cast %59 : vector<16x16x128xbf16> to vector<256x128xbf16>
    %c8 = arith.constant 8 : index
    %c0_66 = arith.constant 0 : index
    %c0_67 = arith.constant 0 : index
    %61 = vector.load %arg2[%c8, %c0_66, %c0_67] : memref<9x128x128xbf16, #tpu.memory_space<vmem>>, vector<1x128x128xbf16>
    %62 = vector.shape_cast %61 : vector<1x128x128xbf16> to vector<128x128xbf16>
    %cst_68 = arith.constant dense<0.000000e+00> : vector<256x128xf32>
    %63 = tpu.matmul %60, %62, %cst_68 {dimension_numbers = #tpu.dot_dimension_numbers<[1], [0], [0], [1], [0, 0, 1, 1], [], []>} : vector<256x128xbf16>, vector<128x128xbf16>, vector<256x128xf32> -> vector<256x128xf32>
    %64 = arith.addf %58, %63 : vector<256x128xf32>
    %c0_69 = arith.constant 0 : index
    %c0_70 = arith.constant 0 : index
    %c0_71 = arith.constant 0 : index
    %65 = vector.load %arg3[%c0_69, %c0_70, %c0_71] : memref<1x256x128xf32, #tpu.memory_space<vmem>>, vector<1x256x128xf32>
    %66 = vector.shape_cast %65 : vector<1x256x128xf32> to vector<256x128xf32>
    %67 = vector.shape_cast %64 : vector<256x128xf32> to vector<1x256x128xf32>
    tpu.vector_store %arg3[%c0_69, %c0_70, %c0_71], %67 {strides = array<i32>} : memref<1x256x128xf32, #tpu.memory_space<vmem>>, vector<1x256x128xf32>,
    %cst_72 = arith.constant dense<0.000000e+00> : vector<128xf32>
    %68 = vector.multi_reduction <add>, %64, %cst_72 [0] : vector<256x128xf32> to vector<128xf32>
    %69 = vector.shape_cast %68 : vector<128xf32> to vector<1x128xf32>
    %cst_73 = arith.constant 3.906250e-03 : f32
    %70 = vector.broadcast %cst_73 : f32 to vector<1x128xf32>
    %71 = arith.mulf %69, %70 : vector<1x128xf32>
    %72 = vector.broadcast %71 : vector<1x128xf32> to vector<256x128xf32>
    %73 = arith.subf %64, %72 : vector<256x128xf32>
    %c0_74 = arith.constant 0 : index
    %c0_75 = arith.constant 0 : index
    %c0_76 = arith.constant 0 : index
    %74 = vector.load %arg4[%c0_74, %c0_75, %c0_76] : memref<1x1x128xf32, #tpu.memory_space<vmem>>, vector<1x1x128xf32>
    %75 = vector.shape_cast %74 : vector<1x1x128xf32> to vector<1x128xf32>
    %76 = vector.shape_cast %71 : vector<1x128xf32> to vector<1x1x128xf32>
    tpu.vector_store %arg4[%c0_74, %c0_75, %c0_76], %76 {strides = array<i32>} : memref<1x1x128xf32, #tpu.memory_space<vmem>>, vector<1x1x128xf32>,
    %77 = arith.mulf %73, %73 : vector<256x128xf32>
    %cst_77 = arith.constant dense<0.000000e+00> : vector<128xf32>
    %78 = vector.multi_reduction <add>, %77, %cst_77 [0] : vector<256x128xf32> to vector<128xf32>
    %79 = vector.shape_cast %78 : vector<128xf32> to vector<1x128xf32>
    %c0_78 = arith.constant 0 : index
    %c0_79 = arith.constant 0 : index
    %c0_80 = arith.constant 0 : index
    %80 = vector.load %arg5[%c0_78, %c0_79, %c0_80] : memref<1x1x128xf32, #tpu.memory_space<vmem>>, vector<1x1x128xf32>
    %81 = vector.shape_cast %80 : vector<1x1x128xf32> to vector<1x128xf32>
    %82 = vector.shape_cast %79 : vector<1x128xf32> to vector<1x1x128xf32>
    tpu.vector_store %arg5[%c0_78, %c0_79, %c0_80], %82 {strides = array<i32>} : memref<1x1x128xf32, #tpu.memory_space<vmem>>, vector<1x1x128xf32>,
    return
  }
  func.func @transform_0(%arg0: i32) -> (i32, i32, i32, i32) {
    %c0_i32 = arith.constant 0 : i32
    %c0_i32_0 = arith.constant 0 : i32
    %c0_i32_1 = arith.constant 0 : i32
    %c0_i32_2 = arith.constant 0 : i32
    return %arg0, %c0_i32, %c0_i32_0, %c0_i32_1 : i32, i32, i32, i32
  }
  func.func @transform_1(%arg0: i32) -> (i32, i32, i32) {
    %c0_i32 = arith.constant 0 : i32
    %c0_i32_0 = arith.constant 0 : i32
    %c0_i32_1 = arith.constant 0 : i32
    %c0_i32_2 = arith.constant 0 : i32
    return %c0_i32, %c0_i32_0, %c0_i32_1 : i32, i32, i32
  }
  func.func @transform_2(%arg0: i32) -> (i32, i32, i32) {
    %c0_i32 = arith.constant 0 : i32
    %c0_i32_0 = arith.constant 0 : i32
    %c0_i32_1 = arith.constant 0 : i32
    return %arg0, %c0_i32, %c0_i32_0 : i32, i32, i32
  }
  func.func @transform_3(%arg0: i32) -> (i32, i32, i32) {
    %c0_i32 = arith.constant 0 : i32
    %c0_i32_0 = arith.constant 0 : i32
    %c0_i32_1 = arith.constant 0 : i32
    return %arg0, %c0_i32, %c0_i32_0 : i32, i32, i32
  }
  func.func @transform_4(%arg0: i32) -> (i32, i32, i32) {
    %c0_i32 = arith.constant 0 : i32
    %c0_i32_0 = arith.constant 0 : i32
    %c0_i32_1 = arith.constant 0 : i32
    return %arg0, %c0_i32, %c0_i32_0 : i32, i32, i32
  }
}

</mosaic_0001>

<bundles_post_ra>
// kernel: tpu_custom_call.1
= control target key start
LH: loop header
LB: loop body
LE: loop exit
PB: predicated region body
PF: predicated region fallthrough
CT: control target
= control target key end

     0   :  { %10 = vsyncpa [#allocation4], 0  ;;  %s9567_s0 = inlined_call_operand.vmem [shape: bf16[2,16,16,4], index: 0, kind: input, shape index: {}]   ;;  %s9568_s1 = inlined_call_operand.hbm [shape: bf16[9,128,128], index: 1, kind: input, shape index: {}]   ;;  %s9569_s2 = inlined_call_operand.hbm [shape: f32[2,256,128], index: 2, kind: output, shape index: {0}]   ;;  %s9570_s3 = inlined_call_operand.hbm [shape: f32[2,1,128], index: 3, kind: output, shape index: {1}]   ;;  %s9571_s4 = inlined_call_operand.hbm [shape: f32[2,1,128], index: 4, kind: output, shape index: {2}]  }
   0x1   :  { %11 = vsyncpa [#allocation5], 0 }
   0x2   :  { %13 = vsyncpa [#allocation5 + $0x1], 0 }
   0x3   :  { %14 = vsyncpa [#allocation8], 0 }
   0x4   :  { %16 = vsyncpa [#allocation8 + $0x1], 0  ;;  %s7654_s15 = smov 0   ;;  %s7656_s16 = smov 0  }
   0x5   :  { %s7658_s17 = smov 0   ;;  %s7660_s18 = smov 0  }
   0x6 LB: > { %s7675_s19 = sadd.s32 4294967295, %s7618_s18   ;;  %s5925_s20 = sadd.s32 4294967294, %s7618_s18   ;;  %s7618_s18 = sphi %s7660_s18, %s9677_s18   ;;  %s7614_s17 = sphi %s7658_s17, %s9676_s17   ;;  %s7610_s16 = sphi %s7656_s16, %s9675_s16   ;;  %s7606_s15 = sphi %s7654_s15, %s9674_s15  }
   0x7   : > { %s7679_s21 = sadd.s32 1, %s7618_s18   ;;  %s76_s22 = sadd.s32 1, %s7614_s17 }
   0x8   : > { %s73_s23 = ssub.s32 %s7618_s18, %s7679_s21  ;;  %p86_p0 = scmp.ne.s32.totalorder %s7614_s17, %s7610_s16 }
   0x9   : > { %p74_p1 = scmp.eq.s32.totalorder %s73_s23, 0  ;;  %p87_p2 = scmp.eq.s32.totalorder %s7675_s19, 1 }
   0xa   : > { %p92_p3 = scmp.ne.s32.totalorder %s7610_s16, %s7606_s15  ;;  %p93_p4 = scmp.eq.s32.totalorder %s5925_s20, 1 }
   0xb   : > { %s7692_s24 = scalar_select %p74_p1, %s7614_s17, %s76_s22  }
   0xc   : > { %p7694_p5 = por %p87_p2, %p86_p0  ;;  %p7698_p6 = por %p93_p4, %p92_p3 }
   0xd   : > { %p5926_p7 = scmp.ge.s32.totalorder %s7618_s18, 1  ;;  %p152_p8 = scmp.lt.s32.totalorder %s7618_s18, 3 }
   0xe   : > { %s9594_s25 = scalar_select %p7694_p5, 1, 0 }
   0xf   : > { %s9595_s26 = scalar_select %p7698_p6, 1, 0 }
  0x10   : > { %p9572_p9 = scmp.eq.s32.totalorder %s7675_s19, 0  ;;  %p7705_p10 = pnand %p5926_p7, %p152_p8 }
  0x11   : > { %s7620_s28 = smov [#allocation3]   ;;  %s7464_s7 = scalar_lea.hbm %s9568_s1, 9216 }
  0x12   : > { %s9596_s27 = scalar_select %p7705_p10, 1, 0 }
  0x13   : > { %s164_s29 = sshll.u32 %s7620_s28, 4  ;;  %p7201_p11 = pneg %p7705_p10  ;;  %s165_s29 = int_to_ptr.vmem [resolvable:$true] %s164_s29 }
  0x14   : > { %p7465_p13 = scmp.ne.s32.totalorder %s9568_s1, %s7464_s7  ;;  %p7471_p3 = scmp.lt.u32.totalorder %s7464_s7, %s9568_s1 }
  0x15   : > { %p7713_p12 = pnand %p9572_p9, %p7201_p11 }
  0x17   : > { %p7466_p0 = pneg %p7713_p12 }
  0x19   : > { %p7467_p1 = pnand %p7466_p0, %p7465_p13 }
  0x1b   : > { %p7468_p2 = pneg %p7467_p1 }
  0x1d   : > { %p7473_p4 = pnand %p7471_p3, %p7468_p2 }
  0x1f   : > { %7476 = shalt.err (!%p7473_p4)
}
  0x20   : > { %s7477_s12 = scalar_lea.vmem %s165_s29, 9216  ;;  %p7485_p9 = scmp.lt.s32.totalorder %s165_s29, %s165_s29 }
  0x21   : > { %p7478_p7 = scmp.ne.s32.totalorder %s165_s29, %s7477_s12  ;;  %p7486_p6 = scmp.lt.s32.totalorder %s7477_s12, %s7477_s12 }
  0x23   : > { %p7480_p8 = pnand %p7478_p7, %p7466_p0  ;;  %p7487_p5 = por %p7486_p6, %p7485_p9 }
  0x25   : > { %p7481_p11 = pneg %p7480_p8 }
  0x27   : > { %p7488_p10 = pnand %p7487_p5, %p7481_p11 }
  0x29   : > { %7491 = shalt.err (!%p7488_p10)
}
  0x2a   : > { %s7621_s13 = smov 64   ;;  %s7622_s14 = smov 4  }
  0x2b   : > { %7204 = dma.hbm_to_vmem [thread:$0]  (!%p7713_p12), %s9568_s1, 9216, %s165_s29, [#allocation4], %s7621_s13, %s7621_s13, %s7622_s14  }
  0x2c   : > { %p9598_p13 = scmp.ne.s32.totalorder %s9596_s27, 0 }
  0x2e   : > { %188 = sbr.rel (%p9598_p13) target bundleno = 820 (0x334), region = 28 }
  0x35   : > { %p9599_p1 = scmp.eq.s32.totalorder %s7675_s19, 0 }
  0x37   : > { %7593 = dma.done.wait (%p9599_p1), [#allocation4], 9216   ;;  %p9600_p0 = pmov %p9599_p1 }
  0x38   : > { %v7623_v0 = vmov 0   ;;  %v7256_v1 = vld [vmem:[#allocation3 + $0x40] sm:$0xff]   ;;  %v7258_v3 = vld [vmem:[#allocation3 + $0x48] sm:$0xff]   ;;  %v7260_v5 = vld [vmem:[#allocation3 + $0x50] sm:$0xff]   ;;  %p222_p5 = scmp.lt.s32.totalorder %s7675_s19, 1  ;;  %vm340_vm3 = vcmask 31744  }
  0x39   : > { %7595 = vsyncadd (%p9600_p0), [#allocation4], 4294958080  ;;  %762 = vst [vmem:[#allocation2] sm:$0xf] %v7623_v0  ;;  %v7257_v2 = vld [vmem:[#allocation3 + $0x100] sm:$0xff]   ;;  %6487 = vmatprep.subr.bf16.mxu1 %v7256_v1  ;;  %v7259_v4 = vld [vmem:[#allocation3 + $0x108] sm:$0xff]  }
  0x3a   : > { %763 = vst [vmem:[#allocation2 + $0x4] sm:$0xf] %v7623_v0  ;;  %764 = vst [vmem:[#allocation2 + $0x8] sm:$0xf] %v7623_v0  ;;  %6679 = vmatprep.subr.bf16.mxu0 %v7257_v2  ;;  %6488 = vmatpush3.bf16.msra.mxu1 %v7256_v1  ;;  %v7261_v6 = vld [vmem:[#allocation3 + $0x110] sm:$0xff]   ;;  %v7262_v7 = vld [vmem:[#allocation3 + $0x58] sm:$0xff]  }
  0x3b   : > { %766 = vst [vmem:[#allocation2 + $0xcc] sm:$0xf] %v7623_v0  ;;  %767 = vst [vmem:[#allocation2 + $0xd0] sm:$0xf] %v7623_v0  ;;  %6680 = vmatpush3.bf16.msra.mxu0 %v7257_v2  ;;  %6489 = vmatprep.subr.bf16.mxu1 %v7258_v3  ;;  %s223_s27 = scalar_select %p222_p5, %s7675_s19, 1  ;;  %v7263_v8 = vld [vmem:[#allocation3 + $0x118] sm:$0xff]  }
  0x3c   : > { %768 = vst [vmem:[#allocation2 + $0xd4] sm:$0xf] %v7623_v0  ;;  %6681 = vmatprep.subr.bf16.mxu0 %v7259_v4  ;;  %vm833_vm0 = vsmask.f32 3328  ;;  %vm834_vm1 = vsmask.f32 7440 }
  0x3d   : > { %v7264_v9 = vld [vmem:[#allocation3 + $0x60] sm:$0xff]   ;;  %s6269_s28 = sshll.u32 %s223_s27, 7  ;;  %vm503_vm2 = vsmask.f32 256  ;;  %v7266_v11 = vld [vmem:[#allocation3 + $0x68] sm:$0xff]   ;;  %v7268_v20 = vld [vmem:[#allocation3 + $0x70] sm:$0xff]  }
  0x3e   : > { %6490 = vmatpush3.bf16.msra.mxu1 %v7258_v3  ;;  %v7265_v10 = vld [vmem:[#allocation3 + $0x120] sm:$0xff]   ;;  %v7267_v12 = vld [vmem:[#allocation3 + $0x128] sm:$0xff]   ;;  %s7744_s5 = scalar_lea.vmem %s9567_s0, %s6269_s28  ;;  %vm502_vm4 = vcmask 1040384   ;;  %vm7749_vm5 = vmor %vm833_vm0, %vm834_vm1  ;;  %vm1863_vm7 = vcmask 1042432   ;;  %vm1864_vm8 = vcmask 1046532   ;;  %s9169_s6 = sand.u32 1, %s7610_s16  }
  0x3f   : > { %6682 = vmatpush3.bf16.msra.mxu0 %v7259_v4  ;;  %6491 = vmatprep.subr.bf16.mxu1 %v7260_v5  ;;  %v7272_v22 = vld [vmem:[%s7744_s5] sm:$0xff]   ;;  %v7269_v30 = vld [vmem:[#allocation3 + $0x130] sm:$0xff]   ;;  %vm7757_vm6 = vmand %vm502_vm4, %vm503_vm2  ;;  %s5931_s7 = sshll.u32 %s9169_s6, 8  ;;  %s6270_s9 = sshll.u32 %s7675_s19, 12 }
  0x40   : > { %6683 = vmatprep.subr.bf16.mxu0 %v7261_v6  ;;  %v769_v13 = vld [vmem:[#allocation2] sm:$0xf]  ;;  %v343_v29 = vsel %vm340_vm3, %v7272_v22, 0  ;;  %v7274_v35 = vld [vmem:[%s7744_s5 + $0x8] sm:$0xff]   ;;  %v7270_v41 = vld [vmem:[#allocation3 + $0x78] sm:$0xff]   ;;  %s9176_s8 = scalar_lea.vmem [#allocation6], %s5931_s7  ;;  %s9327_s13 = scalar_lea.hbm %s9569_s2, %s6270_s9 }
  0x41   : > { %v770_v14 = vld [vmem:[#allocation2 + $0x4] sm:$0xf]  ;;  %v817_v15 = vld [vmem:[#allocation2 + $0x8] sm:$0x1]  ;;  %v837_v16 = vshrl.u32 %v769_v13, 16  ;;  %v840_v17 = vshll.u32 %v769_v13, 16  ;;  %vm7888_vm9 = vmor %vm1863_vm7, %vm1864_vm8 }
  0x42   : > { %6492 = vmatpush3.bf16.msra.mxu1 %v7260_v5  ;;  %v846_v18 = vshll.u32 %v770_v14, 16  ;;  %v850_v19 = vshrl.u32 %v770_v14, 16  ;;  %v856_v21 = vshll.u32 %v817_v15, 16  ;;  %v374_v33 = vshrl.u32 %v343_v29, 16  ;;  %v7277_v44 = vld [vmem:[%s7744_s5 + $0x10] sm:$0xff]   ;;  %v7769_v52 = vld [vmem:[#allocation3] sm:$0xff]  }
  0x43   : > { %6684 = vmatpush3.bf16.msra.mxu0 %v7261_v6  ;;  %6493 = vmatprep.subr.bf16.mxu1 %v7262_v7  ;;  %v839_v23 = vrot.slane %v837_v16, 4  ;;  %v842_v24 = vrot.slane %v840_v17, 5  ;;  %v377_v34 = vshll.u32 %v343_v29, 16  ;;  %v345_v40 = vsel %vm340_vm3, %v7274_v35, 0  ;;  %v7271_v45 = vld [vmem:[#allocation3 + $0x138] sm:$0xff]   ;;  %v7279_v58 = vld [vmem:[%s7744_s5 + $0x18] sm:$0xff]  }
  0x44   : > { %6685 = vmatprep.subr.bf16.mxu0 %v7263_v8  ;;  %v848_v25 = vrot.slane %v846_v18, 5  ;;  %v852_v26 = vrot.slane %v850_v19, 4  ;;  %v858_v28 = vrot.slane %v856_v21, 5  ;;  %v376_v38 = vrot.slane %v374_v33, 7  ;;  %v7777_v63 = vld [vmem:[#allocation3 + $0x140] sm:$0xff]   ;;  %s5772_s10 = sshll.u32 %s9176_s8, 4  ;;  %s9329_s10 = int_to_ptr.vmem [resolvable:$true] %s5772_s10 }
  0x45   : > { %v843_v31 = vor.u32 %v842_v24, %v839_v23  ;;  %v380_v42 = vshrl.u32 %v345_v40, 16  ;;  %v383_v43 = vshll.u32 %v345_v40, 16  ;;  %v347_v54 = vsel %vm340_vm3, %v7277_v44, 0  ;;  %s5751_s14 = scalar_lea.sflag [#allocation5], %s9169_s6  ;;  %s7492_s22 = scalar_lea.vmem %s9329_s10, 4096 }
  0x46   : > { %6494 = vmatpush3.bf16.msra.mxu1 %v7262_v7  ;;  %v853_v32 = vor.u32 %v852_v26, %v848_v25  ;;  %v379_v48 = vor.u32 %v377_v34, %v376_v38  ;;  %v521_v49 = vsel %vm7757_vm6, %v376_v38, 0  ;;  %v386_v56 = vshrl.u32 %v347_v54, 16  ;;  %p7493_p6 = scmp.ne.s32.totalorder %s9329_s10, %s7492_s22  ;;  %p9672_p9 = scmp.ne.s32.totalorder %s9594_s25, 0 }
  0x47   : > { %6686 = vmatpush3.bf16.msra.mxu0 %v7263_v8  ;;  %6495 = vmatprep.subr.bf16.mxu1 %v7264_v9  ;;  %v844_v36 = vrot.slane %v843_v31, 4  ;;  %v5952_v51 = vcombine.low %v521_v49, %v521_v49  ;;  %v382_v53 = vrot.slane %v380_v42, 7  ;;  %v389_v57 = vshll.u32 %v347_v54, 16  ;;  %s7624_s23 = smov [#allocation6]  }
  0x48   : > { %6687 = vmatprep.subr.bf16.mxu0 %v7265_v10  ;;  %v854_v37 = vrot.slane %v853_v32, 4  ;;  %v505_v55 = vsel %vm7757_vm6, 0, %v379_v48  ;;  %v388_v1 = vrot.slane %v386_v56, 7  ;;  %v7780_v2 = vsel %vm340_vm3, %v7279_v58, 0  ;;  %p7494_p10 = pnand %p7493_p6, %p9672_p9  ;;  %s7496_s27 = sshll.u32 %s7624_s23, 4  ;;  %s7497_s27 = int_to_ptr.vmem [resolvable:$false] %s7496_s27 }
  0x49   : > { %v849_v46 = vsel %vm7749_vm5, %v844_v36, %v848_v25  ;;  %v5950_v59 = vcombine.low %v505_v55, %v505_v55  ;;  %v5951_v60 = vcombine.high %v505_v55, %v505_v55  ;;  %716 = vst [vmem:[#allocation2 + $0x14] sm:$0x1] %v5952_v51  ;;  %v385_v61 = vor.u32 %v383_v43, %v382_v53  ;;  %s7498_s28 = scalar_lea.vmem %s7497_s27, 8192  ;;  %p7499_p2 = scmp.lt.s32.totalorder %s9329_s10, %s7497_s27 }
  0x4a   : > { %6496 = vmatpush3.bf16.msra.mxu1 %v7264_v9  ;;  %v859_v47 = vsel %vm7749_vm5, %v854_v37, %v858_v28  ;;  %v522_v62 = vsel %vm7757_vm6, %v382_v53, 0  ;;  %v392_v4 = vshrl.u32 %v7780_v2, 16  ;;  %v391_v7 = vor.u32 %v389_v57, %v388_v1  ;;  %v7282_v9 = vld [vmem:[%s7744_s5 + $0x20] sm:$0xff]   ;;  %p7495_p12 = pneg %p7494_p10  ;;  %p7500_p3 = scmp.lt.s32.totalorder %s7498_s28, %s7492_s22 }
  0x4b   : > { %6688 = vmatpush3.bf16.msra.mxu0 %v7265_v10  ;;  %6497 = vmatprep.subr.bf16.mxu1 %v7266_v11  ;;  %v5998_v50 = vcombine.low %v849_v46, %v859_v47  ;;  %v5955_v0 = vcombine.low %v522_v62, %v522_v62  ;;  %714 = vst [vmem:[#allocation2 + $0xc] sm:$0xf] %v5950_v59  ;;  %715 = vst [vmem:[#allocation2 + $0x10] sm:$0xf] %v5951_v60  ;;  %v506_v3 = vsel %vm7757_vm6, 0, %v385_v61 }
  0x4c   : > { %6689 = vmatprep.subr.bf16.mxu0 %v7267_v12  ;;  %v5953_v5 = vcombine.low %v506_v3, %v506_v3  ;;  %v5954_v6 = vcombine.high %v506_v3, %v506_v3  ;;  %v523_v8 = vsel %vm7757_vm6, %v388_v1, 0  ;;  %v7795_v13 = vsel %vm340_vm3, %v7282_v9, 0  ;;  %p7501_p4 = por %p7500_p3, %p7499_p2 }
  0x4d   : > { %6503 = vmatprep.mubr.bf16.mxu1 %v5998_v50  ;;  %719 = vst [vmem:[#allocation2 + $0x20] sm:$0x1] %v5955_v0  ;;  %v5958_v10 = vcombine.low %v523_v8, %v523_v8  ;;  %v395_v19 = vshll.u32 %v7780_v2, 16  ;;  %v398_v21 = vshrl.u32 %v7795_v13, 16  ;;  %v401_v25 = vshll.u32 %v7795_v13, 16 }
  0x4e   : > { %6498 = vmatpush3.bf16.msra.mxu1 %v7266_v11  ;;  %v7789_v11 = vrot.slane %v392_v4, 7  ;;  %717 = vst [vmem:[#allocation2 + $0x18] sm:$0xf] %v5953_v5  ;;  %718 = vst [vmem:[#allocation2 + $0x1c] sm:$0xf] %v5954_v6  ;;  %p7502_p7 = pnand %p7501_p4, %p7495_p12 }
  0x4f   : > { %6690 = vmatpush3.bf16.msra.mxu0 %v7267_v12  ;;  %6499 = vmatprep.subr.bf16.mxu1 %v7268_v20  ;;  %v507_v12 = vsel %vm7757_vm6, 0, %v391_v7  ;;  %722 = vst [vmem:[#allocation2 + $0x2c] sm:$0x1] %v5958_v10 }
  0x50   : > { %6691 = vmatprep.subr.bf16.mxu0 %v7269_v30  ;;  %v5956_v14 = vcombine.low %v507_v12, %v507_v12  ;;  %v5957_v15 = vcombine.high %v507_v12, %v507_v12  ;;  %v524_v16 = vsel %vm7757_vm6, %v7789_v11, 0  ;;  %v7800_v17 = vld [vmem:[#allocation2 + $0x14] sm:$0x1] }
  0x51   : > { %v818_v18 = vld [vmem:[#allocation2 + $0x14] sm:$0x1]  ;;  %v2754_v22 = vshll.u32 %v7800_v17, 16  ;;  %v3509_v23 = vrot.slane %v7800_v17, 5 }
  0x52   : > { %6500 = vmatpush3.bf16.msra.mxu1 %v7268_v20  ;;  %v5961_v20 = vcombine.low %v524_v16, %v524_v16  ;;  %v880_v24 = vshll.u32 %v818_v18, 16  ;;  %720 = vst [vmem:[#allocation2 + $0x24] sm:$0xf] %v5956_v14  ;;  %721 = vst [vmem:[#allocation2 + $0x28] sm:$0xf] %v5957_v15 }
  0x53   : > { %6692 = vmatpush3.bf16.msra.mxu0 %v7269_v30  ;;  %6501 = vmatprep.subr.bf16.mxu1 %v7270_v41  ;;  %v2686_v26 = vld [vmem:[#allocation2 + $0xc] sm:$0xf]  ;;  %v7807_v28 = vld [vmem:[#allocation2 + $0x10] sm:$0xf]  ;;  %v2756_v35 = vrot.slane %v2754_v22, 5 }
  0x54   : > { %6693 = vmatprep.subr.bf16.mxu0 %v7271_v45  ;;  %v771_v29 = vld [vmem:[#allocation2 + $0xc] sm:$0xf]  ;;  %725 = vst [vmem:[#allocation2 + $0x38] sm:$0x1] %v5961_v20  ;;  %v2735_v30 = vshrl.u32 %v2686_v26, 16  ;;  %v2738_v31 = vshll.u32 %v2686_v26, 16 }
  0x55   : > { %v2744_v32 = vshll.u32 %v7807_v28, 16  ;;  %v2748_v33 = vshrl.u32 %v7807_v28, 16  ;;  %v772_v34 = vld [vmem:[#allocation2 + $0x10] sm:$0xf]  ;;  %v861_v36 = vshrl.u32 %v771_v29, 16  ;;  %v864_v37 = vshll.u32 %v771_v29, 16 }
  0x56   : > { %6502 = vmatpush3.bf16.msra.mxu1 %v7270_v41  ;;  %v870_v38 = vshll.u32 %v772_v34, 16  ;;  %v2737_v40 = vrot.slane %v2735_v30, 4  ;;  %v2740_v41 = vrot.slane %v2738_v31, 5  ;;  %v2689_v44 = vld [vmem:[#allocation2 + $0x18] sm:$0xf]  ;;  %v874_v48 = vshrl.u32 %v772_v34, 16 }
  0x57   : > { %6694 = vmatpush3.bf16.msra.mxu0 %v7271_v45  ;;  %6535 = vmatprep.subr.bf16.mxu1 %v7769_v52  ;;  %v2746_v42 = vrot.slane %v2744_v32, 5  ;;  %v2750_v43 = vrot.slane %v2748_v33, 4  ;;  %v863_v45 = vrot.slane %v861_v36, 4  ;;  %v866_v46 = vrot.slane %v864_v37, 5  ;;  %v7811_v49 = vld [vmem:[#allocation2 + $0x1c] sm:$0xf] }
  0x58   : > { %6727 = vmatprep.subr.bf16.mxu0 %v7777_v63  ;;  %v872_v47 = vrot.slane %v870_v38, 5  ;;  %v2741_v50 = vor.u32 %v2740_v41, %v2737_v40  ;;  %v882_v53 = vrot.slane %v880_v24, 5  ;;  %v2759_v54 = vshrl.u32 %v2689_v44, 16  ;;  %v7813_v57 = vld [vmem:[#allocation2 + $0x20] sm:$0x1] }
  0x59   : > { %v2751_v51 = vor.u32 %v2750_v43, %v2746_v42  ;;  %v867_v55 = vor.u32 %v866_v46, %v863_v45  ;;  %v876_v56 = vrot.slane %v874_v48, 4  ;;  %v2762_v58 = vshll.u32 %v2689_v44, 16  ;;  %v773_v10 = vld [vmem:[#allocation2 + $0x18] sm:$0xf]  ;;  %v774_v18 = vld [vmem:[#allocation2 + $0x1c] sm:$0xf] }
  0x5a   : > { %v2768_v59 = vshll.u32 %v7811_v49, 16  ;;  %v2742_v60 = vrot.slane %v2741_v50, 4  ;;  %v2761_v62 = vrot.slane %v2759_v54, 4  ;;  %v2772_v0 = vshrl.u32 %v7811_v49, 16  ;;  %v819_v26 = vld [vmem:[#allocation2 + $0x20] sm:$0x1] }
  0x5b   : > { %v2752_v61 = vrot.slane %v2751_v51, 4  ;;  %v868_v1 = vrot.slane %v867_v55, 4  ;;  %v877_v3 = vor.u32 %v876_v56, %v872_v47  ;;  %v2764_v4 = vrot.slane %v2762_v58, 5  ;;  %v2692_v29 = vld [vmem:[#allocation2 + $0x24] sm:$0xf]  ;;  %v7283_v51 = vld [vmem:[#allocation3 + $0x10] sm:$0xff]  }
  0x5c   : > { %v2770_v5 = vrot.slane %v2768_v59, 5  ;;  %v2747_v6 = vsel %vm7749_vm5, %v2742_v60, %v2746_v42  ;;  %v2774_v8 = vrot.slane %v2772_v0, 4  ;;  %v2778_v9 = vshll.u32 %v7813_v57, 16  ;;  %v7835_v41 = vld [vmem:[#allocation2 + $0x2c] sm:$0x1]  ;;  %v7278_v42 = vld [vmem:[#allocation3 + $0x8] sm:$0xff]  }
  0x5d   : > { %v2757_v7 = vsel %vm7749_vm5, %v2752_v61, %v2756_v35  ;;  %v873_v14 = vsel %vm7749_vm5, %v868_v1, %v872_v47  ;;  %v878_v15 = vrot.slane %v877_v3, 4  ;;  %v2765_v16 = vor.u32 %v2764_v4, %v2761_v62  ;;  %v7832_v35 = vld [vmem:[#allocation2 + $0x28] sm:$0xf]  ;;  %v775_v45 = vld [vmem:[#allocation2 + $0x24] sm:$0xf] }
  0x5e   : > { %v6110_v12 = vcombine.low %v2747_v6, %v2757_v7  ;;  %v2775_v20 = vor.u32 %v2774_v8, %v2770_v5  ;;  %v2780_v22 = vrot.slane %v2778_v9, 5  ;;  %v3513_v24 = vrot.slane %v7811_v49, 5  ;;  %v776_v58 = vld [vmem:[#allocation2 + $0x28] sm:$0xf]  ;;  %v820_v0 = vld [vmem:[#allocation2 + $0x2c] sm:$0x1] }
  0x5f   : > { %v7828_v30 = vor.u32 %v395_v19, %v7789_v11  ;;  %v883_v31 = vsel %vm7749_vm5, %v878_v15, %v882_v53  ;;  %v2766_v32 = vrot.slane %v2765_v16, 4  ;;  %v885_v33 = vshrl.u32 %v773_v10, 16  ;;  %v7276_v11 = vld [vmem:[#allocation3 + $0x148] sm:$0xff]   ;;  %v7280_v6 = vld [vmem:[#allocation3 + $0x150] sm:$0xff]  }
  0x60   : > { %6695 = vmatprep.mubr.bf16.mxu0 %v6110_v12  ;;  %v888_v34 = vshll.u32 %v773_v10, 16  ;;  %v5999_v36 = vcombine.low %v873_v14, %v883_v31  ;;  %v2776_v37 = vrot.slane %v2775_v20, 4  ;;  %v3516_v38 = vrot.slane %v7813_v57, 5 }
  0x61   : > { %v894_v40 = vshll.u32 %v774_v18, 16  ;;  %v2771_v2 = vsel %vm7749_vm5, %v2766_v32, %v2770_v5  ;;  %v887_v19 = vrot.slane %v885_v33, 4  ;;  %v898_v44 = vshrl.u32 %v774_v18, 16 }
  0x62   : > { %v890_v43 = vrot.slane %v888_v34, 5  ;;  %6504 = vmatmul.mubr.bf16.vlgmr.msra.gmra.mrb[0].mxu1 %v5999_v36  ;;  %v2781_v46 = vsel %vm7749_vm5, %v2776_v37, %v2780_v22  ;;  %v904_v48 = vshll.u32 %v819_v26, 16  ;;  %v2783_v50 = vshrl.u32 %v2692_v29, 16  ;;  %v7848_v22 = vld [vmem:[#allocation2 + $0x38] sm:$0x1]  ;;  %v7284_v26 = vld [vmem:[%s7744_s5 + $0x28] sm:$0xff]  }
  0x63   : > { %v896_v47 = vrot.slane %v894_v40, 5  ;;  %v6111_v53 = vcombine.low %v2771_v2, %v2781_v46  ;;  %6536 = vmatpush3.bf16.msra.mxu1 %v7769_v52  ;;  %v900_v55 = vrot.slane %v898_v44, 4  ;;  %v2786_v56 = vshll.u32 %v2692_v29, 16  ;;  %v7288_v29 = vld [vmem:[#allocation3 + $0x18] sm:$0xff]   ;;  %v821_v36 = vld [vmem:[#allocation2 + $0x38] sm:$0x1] }
  0x64   : > { %v891_v54 = vor.u32 %v890_v43, %v887_v19  ;;  %v906_v59 = vrot.slane %v904_v48, 5  ;;  %v2785_v60 = vrot.slane %v2783_v50, 4  ;;  %v2792_v61 = vshll.u32 %v7832_v35, 16  ;;  %6537 = vmatprep.subr.bf16.mxu1 %v7278_v42  ;;  %v7287_v37 = vld [vmem:[%s7744_s5 + $0x30] sm:$0xff]  }
  0x65   : > { %v2796_v62 = vshrl.u32 %v7832_v35, 16  ;;  %6696 = vmatmul.mubr.bf16.vlgmr.msra.gmra.mrb[0].mxu0 %v6111_v53  ;;  %v901_v3 = vor.u32 %v900_v55, %v896_v47  ;;  %v2788_v4 = vrot.slane %v2786_v56, 5  ;;  %v2802_v5 = vshll.u32 %v7835_v41, 16  ;;  %v7293_v55 = vld [vmem:[#allocation3 + $0x20] sm:$0xff]  }
  0x66   : > { %v892_v1 = vrot.slane %v891_v54, 4  ;;  %6728 = vmatpush3.bf16.msra.mxu0 %v7777_v63  ;;  %v2794_v52 = vrot.slane %v2792_v61, 5  ;;  %v909_v8 = vshrl.u32 %v775_v45, 16  ;;  %v912_v9 = vshll.u32 %v775_v45, 16  ;;  %v7289_v54 = vld [vmem:[%s7744_s5 + $0x38] sm:$0xff]  }
  0x67   : > { %v2798_v7 = vrot.slane %v2796_v62, 4  ;;  %6729 = vmatprep.subr.bf16.mxu0 %v7276_v11  ;;  %v902_v12 = vrot.slane %v901_v3, 4  ;;  %v2789_v14 = vor.u32 %v2788_v4, %v2785_v60  ;;  %v2804_v15 = vrot.slane %v2802_v5, 5  ;;  %6538 = vmatpush3.bf16.msra.mxu1 %v7278_v42  ;;  %v7285_v5 = vld [vmem:[#allocation3 + $0x160] sm:$0xff]  }
  0x68   : > { %v897_v10 = vsel %vm7749_vm5, %v892_v1, %v896_v47  ;;  %v911_v18 = vrot.slane %v909_v8, 4  ;;  %v914_v20 = vrot.slane %v912_v9, 5  ;;  %v918_v63 = vshll.u32 %v776_v58, 16  ;;  %6539 = vmatprep.subr.bf16.mxu1 %v7283_v51  ;;  %v7281_v47 = vld [vmem:[#allocation3 + $0x158] sm:$0xff]  }
  0x69   : > { %v2799_v16 = vor.u32 %v2798_v7, %v2794_v52  ;;  %v907_v31 = vsel %vm7749_vm5, %v902_v12, %v906_v59  ;;  %v2790_v32 = vrot.slane %v2789_v14, 4  ;;  %v922_v33 = vshrl.u32 %v776_v58, 16  ;;  %v7286_v12 = vld [vmem:[#allocation3 + $0x168] sm:$0xff]  }
  0x6a   : > { %v928_v34 = vshll.u32 %v820_v0, 16  ;;  %6730 = vmatpush3.bf16.msra.mxu0 %v7276_v11  ;;  %v6000_v40 = vcombine.low %v897_v10, %v907_v31  ;;  %v915_v2 = vor.u32 %v914_v20, %v911_v18  ;;  %v920_v19 = vrot.slane %v918_v63, 5  ;;  %v7297_v20 = vld [vmem:[#allocation3 + $0x28] sm:$0xff]  }
  0x6b   : > { %v2800_v42 = vrot.slane %v2799_v16, 4  ;;  %v7856_v43 = vrot.slane %v3513_v24, 4  ;;  %v2795_v44 = vsel %vm7749_vm5, %v2790_v32, %v2794_v52  ;;  %v924_v45 = vrot.slane %v922_v33, 4  ;;  %6731 = vmatprep.subr.bf16.mxu0 %v7280_v6  ;;  %6540 = vmatpush3.bf16.msra.mxu1 %v7283_v51 }
  0x6c   : > { %v508_v46 = vsel %vm7757_vm6, 0, %v7828_v30  ;;  %6507 = vmatprep.mubr.bf16.mxu1 %v6000_v40  ;;  %v916_v48 = vrot.slane %v915_v2, 4  ;;  %6541 = vmatprep.subr.bf16.mxu1 %v7288_v29  ;;  %v930_v59 = vrot.slane %v928_v34, 5  ;;  %v2826_v60 = vshll.u32 %v7848_v22, 16 }
  0x6d   : > { %v2805_v11 = vsel %vm7749_vm5, %v2800_v42, %v2804_v15  ;;  %v5959_v50 = vcombine.low %v508_v46, %v508_v46  ;;  %v5960_v53 = vcombine.high %v508_v46, %v508_v46  ;;  %v925_v58 = vor.u32 %v924_v45, %v920_v19 }
  0x6e   : > { %v6112_v56 = vcombine.low %v2795_v44, %v2805_v11  ;;  %6732 = vmatpush3.bf16.msra.mxu0 %v7280_v6  ;;  %v952_v30 = vshll.u32 %v821_v36, 16  ;;  %v400_v51 = vrot.slane %v398_v21, 7  ;;  %v353_v61 = vsel %vm340_vm3, %v7284_v26, 0  ;;  %v7301_v36 = vld [vmem:[#allocation3 + $0x30] sm:$0xff]  }
  0x6f   : > { %723 = vst [vmem:[#allocation2 + $0x30] sm:$0xf] %v5959_v50  ;;  %724 = vst [vmem:[#allocation2 + $0x34] sm:$0xf] %v5960_v53  ;;  %v355_v62 = vsel %vm340_vm3, %v7287_v37, 0  ;;  %v921_v0 = vsel %vm7749_vm5, %v916_v48, %v920_v19  ;;  %v926_v1 = vrot.slane %v925_v58, 4  ;;  %6733 = vmatprep.subr.bf16.mxu0 %v7281_v47  ;;  %6542 = vmatpush3.bf16.msra.mxu1 %v7288_v29 }
  0x70   : > { %6699 = vmatprep.mubr.bf16.mxu0 %v6112_v56  ;;  %v7873_v3 = vrot.slane %v2826_v60, 5  ;;  %v404_v4 = vshrl.u32 %v353_v61, 16  ;;  %v403_v6 = vor.u32 %v401_v25, %v400_v51  ;;  %v525_v21 = vsel %vm7757_vm6, %v400_v51, 0  ;;  %6543 = vmatprep.subr.bf16.mxu1 %v7293_v55  ;;  %v7290_v58 = vld [vmem:[#allocation3 + $0x170] sm:$0xff]  }
  0x71   : > { %v407_v52 = vshll.u32 %v353_v61, 16  ;;  %v410_v7 = vshrl.u32 %v355_v62, 16  ;;  %v931_v8 = vsel %vm7749_vm5, %v926_v1, %v930_v59  ;;  %v5964_v9 = vcombine.low %v525_v21, %v525_v21 }
  0x72   : > { %v406_v10 = vrot.slane %v404_v4, 7  ;;  %v413_v14 = vshll.u32 %v355_v62, 16  ;;  %v6001_v15 = vcombine.low %v921_v0, %v931_v8  ;;  %6734 = vmatpush3.bf16.msra.mxu0 %v7281_v47  ;;  %v509_v13 = vsel %vm7757_vm6, 0, %v403_v6  ;;  %v7291_v62 = vld [vmem:[#allocation3 + $0x178] sm:$0xff]  }
  0x73   : > { %v412_v25 = vrot.slane %v410_v7, 7  ;;  %v7884_v16 = vsel %vm340_vm3, %v7289_v54, 0  ;;  %v7892_v63 = vrot.slane %v952_v30, 5  ;;  %v5962_v26 = vcombine.low %v509_v13, %v509_v13  ;;  %728 = vst [vmem:[#allocation2 + $0x44] sm:$0x1] %v5964_v9  ;;  %6735 = vmatprep.subr.bf16.mxu0 %v7285_v5  ;;  %6544 = vmatpush3.bf16.msra.mxu1 %v7293_v55 }
  0x74   : > { %v5963_v29 = vcombine.high %v509_v13, %v509_v13  ;;  %v526_v31 = vsel %vm7757_vm6, %v406_v10, 0  ;;  %6508 = vmatmul.mubr.bf16.gmra.mrb[4].mxu1 %v6001_v15  ;;  %v416_v34 = vshrl.u32 %v7884_v16, 16  ;;  %v409_v2 = vor.u32 %v407_v52, %v406_v10  ;;  %6545 = vmatprep.subr.bf16.mxu1 %v7297_v20 }
  0x75   : > { %v5967_v32 = vcombine.low %v526_v31, %v526_v31  ;;  %v527_v33 = vsel %vm7757_vm6, %v412_v25, 0  ;;  %726 = vst [vmem:[#allocation2 + $0x3c] sm:$0xf] %v5962_v26  ;;  %v415_v19 = vor.u32 %v413_v14, %v412_v25  ;;  %v7906_v45 = vsel %vm7888_vm9, %v7856_v43, %v3516_v38 }
  0x76   : > { %v2695_v37 = vld [vmem:[#allocation2 + $0x30] sm:$0xf]  ;;  %v7899_v40 = vld [vmem:[#allocation2 + $0x34] sm:$0xf]  ;;  %727 = vst [vmem:[#allocation2 + $0x40] sm:$0xf] %v5963_v29  ;;  %v5970_v44 = vcombine.low %v527_v33, %v527_v33  ;;  %6736 = vmatpush3.bf16.msra.mxu0 %v7285_v5 }
  0x77   : > { %v777_v42 = vld [vmem:[#allocation2 + $0x30] sm:$0xf]  ;;  %v2807_v46 = vshrl.u32 %v2695_v37, 16  ;;  %v2810_v47 = vshll.u32 %v2695_v37, 16  ;;  %v2816_v11 = vshll.u32 %v7899_v40, 16  ;;  %v2820_v48 = vshrl.u32 %v7899_v40, 16  ;;  %6737 = vmatprep.subr.bf16.mxu0 %v7286_v12  ;;  %6546 = vmatpush3.bf16.msra.mxu1 %v7297_v20 }
  0x78   : > { %v778_v50 = vld [vmem:[#allocation2 + $0x34] sm:$0xf]  ;;  %731 = vst [vmem:[#allocation2 + $0x50] sm:$0x1] %v5967_v32  ;;  %v933_v53 = vshrl.u32 %v777_v42, 16  ;;  %v936_v54 = vshll.u32 %v777_v42, 16  ;;  %6547 = vmatprep.subr.bf16.mxu1 %v7301_v36 }
  0x79   : > { %v942_v56 = vshll.u32 %v778_v50, 16  ;;  %v946_v57 = vshrl.u32 %v778_v50, 16  ;;  %734 = vst [vmem:[#allocation2 + $0x5c] sm:$0x1] %v5970_v44  ;;  %v2809_v38 = vrot.slane %v2807_v46, 4  ;;  %v2812_v43 = vrot.slane %v2810_v47, 5 }
  0x7a   : > { %v2818_v55 = vrot.slane %v2816_v11, 5  ;;  %v2822_v59 = vrot.slane %v2820_v48, 4  ;;  %v935_v60 = vrot.slane %v933_v53, 4  ;;  %v938_v30 = vrot.slane %v936_v54, 5  ;;  %v7910_v4 = vld [vmem:[#allocation2 + $0x44] sm:$0x1]  ;;  %6738 = vmatpush3.bf16.msra.mxu0 %v7286_v12 }
  0x7b   : > { %v944_v51 = vrot.slane %v942_v56, 5  ;;  %v948_v61 = vrot.slane %v946_v57, 4  ;;  %v2813_v0 = vor.u32 %v2812_v43, %v2809_v38  ;;  %v822_v5 = vld [vmem:[#allocation2 + $0x44] sm:$0x1]  ;;  %v510_v6 = vsel %vm7757_vm6, 0, %v409_v2  ;;  %6739 = vmatprep.subr.bf16.mxu0 %v7290_v58  ;;  %6548 = vmatpush3.bf16.msra.mxu1 %v7301_v36  ;;  %v7305_v56 = vld [vmem:[#allocation3 + $0x38] sm:$0xff]  }
  0x7c   : > { %v2823_v1 = vor.u32 %v2822_v59, %v2818_v55  ;;  %v7916_v21 = vsel %vm7757_vm6, 0, %v415_v19  ;;  %v939_v52 = vor.u32 %v938_v30, %v935_v60  ;;  %v2850_v8 = vshll.u32 %v7910_v4, 16  ;;  %v2698_v15 = vld [vmem:[#allocation2 + $0x3c] sm:$0xf]  ;;  %6549 = vmatprep.subr.bf16.mxu1 %v7305_v56 }
  0x7d   : > { %v949_v7 = vor.u32 %v948_v61, %v944_v51  ;;  %v976_v9 = vshll.u32 %v822_v5, 16  ;;  %v2814_v10 = vrot.slane %v2813_v0, 4  ;;  %v7919_v13 = vld [vmem:[#allocation2 + $0x40] sm:$0xf]  ;;  %v5965_v25 = vcombine.low %v510_v6, %v510_v6  ;;  %v779_v2 = vld [vmem:[#allocation2 + $0x3c] sm:$0xf] }
  0x7e   : > { %v2824_v14 = vrot.slane %v2823_v1, 4  ;;  %v5966_v20 = vcombine.high %v510_v6, %v510_v6  ;;  %v940_v26 = vrot.slane %v939_v52, 4  ;;  %v2831_v29 = vshrl.u32 %v2698_v15, 16  ;;  %v780_v19 = vld [vmem:[#allocation2 + $0x40] sm:$0xf]  ;;  %6740 = vmatpush3.bf16.msra.mxu0 %v7290_v58 }
  0x7f   : > { %v950_v12 = vrot.slane %v949_v7, 4  ;;  %v2834_v31 = vshll.u32 %v2698_v15, 16  ;;  %v2819_v32 = vsel %vm7749_vm5, %v2814_v10, %v2818_v55  ;;  %v2840_v37 = vshll.u32 %v7919_v13, 16  ;;  %729 = vst [vmem:[#allocation2 + $0x48] sm:$0xf] %v5965_v25  ;;  %6741 = vmatprep.subr.bf16.mxu0 %v7291_v62  ;;  %6550 = vmatpush3.bf16.msra.mxu1 %v7305_v56 }
  0x80   : > { %v2829_v33 = vsel %vm7749_vm5, %v2824_v14, %v7873_v3  ;;  %v2844_v42 = vshrl.u32 %v7919_v13, 16  ;;  %730 = vst [vmem:[#allocation2 + $0x4c] sm:$0xf] %v5966_v20  ;;  %v945_v36 = vsel %vm7749_vm5, %v940_v26, %v944_v51  ;;  %v2833_v47 = vrot.slane %v2831_v29, 4  ;;  %v7933_v3 = vld [vmem:[#allocation3 + $0x180] sm:$0xff]  }
  0x81   : > { %v6113_v44 = vcombine.low %v2819_v32, %v2829_v33  ;;  %v955_v46 = vsel %vm7749_vm5, %v950_v12, %v7892_v63  ;;  %v2836_v48 = vrot.slane %v2834_v31, 5  ;;  %v2842_v50 = vrot.slane %v2840_v37, 5  ;;  %v7935_v54 = vld [vmem:[#allocation2 + $0x50] sm:$0x1]  ;;  %v7309_v31 = vld [vmem:[#allocation3 + $0x80] sm:$0xff]  }
  0x82   : > { %v6002_v11 = vcombine.low %v945_v36, %v955_v46  ;;  %v2846_v53 = vrot.slane %v2844_v42, 4  ;;  %v2852_v57 = vrot.slane %v2850_v8, 5  ;;  %v957_v58 = vshrl.u32 %v779_v2, 16  ;;  %v823_v55 = vld [vmem:[#allocation2 + $0x50] sm:$0x1]  ;;  %6742 = vmatpush3.bf16.msra.mxu0 %v7291_v62  ;;  %6583 = vmatprep.subr.bf16.mxu1 %v7309_v31 }
  0x83   : > { %6700 = vmatmul.mubr.bf16.gmra.mrb[4].mxu0 %v6113_v44  ;;  %v960_v38 = vshll.u32 %v779_v2, 16  ;;  %v966_v43 = vshll.u32 %v780_v19, 16  ;;  %v2837_v59 = vor.u32 %v2836_v48, %v2833_v47  ;;  %v970_v60 = vshrl.u32 %v780_v19, 16  ;;  %6775 = vmatprep.subr.bf16.mxu0 %v7933_v3  ;;  %v7950_v19 = vld [vmem:[#allocation2 + $0x5c] sm:$0x1] }
  0x84   : > { %6511 = vmatprep.mubr.bf16.mxu1 %v6002_v11  ;;  %v2847_v63 = vor.u32 %v2846_v53, %v2842_v50  ;;  %v978_v30 = vrot.slane %v976_v9, 5  ;;  %v959_v51 = vrot.slane %v957_v58, 4  ;;  %v2874_v1 = vshll.u32 %v7935_v54, 16  ;;  %v7953_v47 = vld [vmem:[#allocation2 + $0x5c] sm:$0x1] }
  0x85   : > { %v962_v61 = vrot.slane %v960_v38, 5  ;;  %v968_v0 = vrot.slane %v966_v43, 5  ;;  %v2838_v5 = vrot.slane %v2837_v59, 4  ;;  %v972_v52 = vrot.slane %v970_v60, 4 }
  0x86   : > { %v2848_v6 = vrot.slane %v2847_v63, 4  ;;  %v1000_v7 = vshll.u32 %v823_v55, 16  ;;  %v2701_v10 = vld [vmem:[#allocation2 + $0x48] sm:$0xf]  ;;  %v2876_v15 = vrot.slane %v2874_v1, 5  ;;  %v5968_v62 = vcombine.low %v7916_v21, %v7916_v21 }
  0x87   : > { %v963_v8 = vor.u32 %v962_v61, %v959_v51  ;;  %v7939_v14 = vld [vmem:[#allocation2 + $0x4c] sm:$0xf]  ;;  %v5969_v9 = vcombine.high %v7916_v21, %v7916_v21  ;;  %v2843_v25 = vsel %vm7749_vm5, %v2838_v5, %v2842_v50  ;;  %v973_v26 = vor.u32 %v972_v52, %v968_v0  ;;  %v781_v29 = vld [vmem:[#allocation2 + $0x48] sm:$0xf] }
  0x88   : > { %v2853_v20 = vsel %vm7749_vm5, %v2848_v6, %v2852_v57  ;;  %v2855_v12 = vshrl.u32 %v2701_v10, 16  ;;  %v2858_v37 = vshll.u32 %v2701_v10, 16  ;;  %v2864_v42 = vshll.u32 %v7939_v14, 16  ;;  %v782_v2 = vld [vmem:[#allocation2 + $0x4c] sm:$0xf] }
  0x89   : > { %v6114_v32 = vcombine.low %v2843_v25, %v2853_v20  ;;  %v964_v33 = vrot.slane %v963_v8, 4  ;;  %732 = vst [vmem:[#allocation2 + $0x54] sm:$0xf] %v5968_v62  ;;  %733 = vst [vmem:[#allocation2 + $0x58] sm:$0xf] %v5969_v9  ;;  %v974_v21 = vrot.slane %v973_v26, 4 }
  0x8a   : > { %v2857_v44 = vrot.slane %v2855_v12, 4  ;;  %v2868_v36 = vshrl.u32 %v7939_v14, 16  ;;  %v981_v46 = vshrl.u32 %v781_v29, 16  ;;  %v2860_v48 = vrot.slane %v2858_v37, 5 }
  0x8b   : > { %6703 = vmatprep.mubr.bf16.mxu0 %v6114_v32  ;;  %v969_v11 = vsel %vm7749_vm5, %v964_v33, %v968_v0  ;;  %v2866_v50 = vrot.slane %v2864_v42, 5  ;;  %v984_v53 = vshll.u32 %v781_v29, 16  ;;  %v979_v56 = vsel %vm7749_vm5, %v974_v21, %v978_v30 }
  0x8c   : > { %v2870_v57 = vrot.slane %v2868_v36, 4  ;;  %v983_v58 = vrot.slane %v981_v46, 4  ;;  %v990_v38 = vshll.u32 %v782_v2, 16  ;;  %v6003_v43 = vcombine.low %v969_v11, %v979_v56 }
  0x8d   : > { %v2861_v55 = vor.u32 %v2860_v48, %v2857_v44  ;;  %v986_v59 = vrot.slane %v984_v53, 5  ;;  %v994_v63 = vshrl.u32 %v782_v2, 16  ;;  %v1002_v61 = vrot.slane %v1000_v7, 5 }
  0x8e   : > { %v2871_v60 = vor.u32 %v2870_v57, %v2866_v50  ;;  %v992_v51 = vrot.slane %v990_v38, 5  ;;  %v2898_v1 = vshll.u32 %v7950_v19, 16  ;;  %6512 = vmatmul.mubr.bf16.gmra.mrb[8].mxu1 %v6003_v43  ;;  %v1024_v52 = vshll.u32 %v7953_v47, 16 }
  0x8f   : > { %v2862_v0 = vrot.slane %v2861_v55, 4  ;;  %v987_v5 = vor.u32 %v986_v59, %v983_v58  ;;  %v996_v6 = vrot.slane %v994_v63, 4  ;;  %v3440_v59 = vld [vmem:[#allocation2 + $0xc] sm:$0xe]  ;;  %v7292_v63 = vld [vmem:[%s7744_s5 + $0x40] sm:$0xff]  }
  0x90   : > { %v2872_v8 = vrot.slane %v2871_v60, 4  ;;  %v2704_v30 = vld [vmem:[#allocation2 + $0x54] sm:$0xf]  ;;  %v7961_v10 = vld [vmem:[#allocation2 + $0x58] sm:$0xf]  ;;  %v2900_v62 = vrot.slane %v2898_v1, 5 }
  0x91   : > { %v2867_v9 = vsel %vm7749_vm5, %v2862_v0, %v2866_v50  ;;  %v988_v25 = vrot.slane %v987_v5, 4  ;;  %v997_v20 = vor.u32 %v996_v6, %v992_v51  ;;  %v2879_v26 = vshrl.u32 %v2704_v30, 16  ;;  %v783_v7 = vld [vmem:[#allocation2 + $0x54] sm:$0xf]  ;;  %v784_v33 = vld [vmem:[#allocation2 + $0x58] sm:$0xf] }
  0x92   : > { %v2877_v12 = vsel %vm7749_vm5, %v2872_v8, %v2876_v15  ;;  %v2882_v29 = vshll.u32 %v2704_v30, 16  ;;  %v2888_v31 = vshll.u32 %v7961_v10, 16  ;;  %v2892_v32 = vshrl.u32 %v7961_v10, 16 }
  0x93   : > { %v6115_v37 = vcombine.low %v2867_v9, %v2877_v12  ;;  %v993_v42 = vsel %vm7749_vm5, %v988_v25, %v992_v51  ;;  %v998_v2 = vrot.slane %v997_v20, 4  ;;  %v2881_v21 = vrot.slane %v2879_v26, 4  ;;  %v3441_v26 = vld [vmem:[#allocation2 + $0x18] sm:$0xe] }
  0x94   : > { %v2884_v44 = vrot.slane %v2882_v29, 5  ;;  %v2890_v36 = vrot.slane %v2888_v31, 5  ;;  %v2894_v46 = vrot.slane %v2892_v32, 4  ;;  %v1005_v47 = vshrl.u32 %v783_v7, 16 }
  0x95   : > { %6704 = vmatmul.mubr.bf16.gmra.mrb[8].mxu0 %v6115_v37  ;;  %v1003_v15 = vsel %vm7749_vm5, %v998_v2, %v1002_v61  ;;  %v1008_v11 = vshll.u32 %v783_v7, 16  ;;  %v1014_v48 = vshll.u32 %v784_v33, 16  ;;  %v1018_v50 = vshrl.u32 %v784_v33, 16  ;;  %v3442_v7 = vld [vmem:[#allocation2 + $0x24] sm:$0xe]  ;;  %v7296_v33 = vld [vmem:[%s7744_s5 + $0x50] sm:$0xff]  }
  0x96   : > { %v6004_v53 = vcombine.low %v993_v42, %v1003_v15  ;;  %v2885_v56 = vor.u32 %v2884_v44, %v2881_v21  ;;  %v2895_v57 = vor.u32 %v2894_v46, %v2890_v36  ;;  %v1007_v58 = vrot.slane %v1005_v47, 4  ;;  %v7989_v37 = vld [vmem:[#allocation2 + $0x30] sm:$0xe] }
  0x97   : > { %v1010_v38 = vrot.slane %v1008_v11, 5  ;;  %v1016_v43 = vrot.slane %v1014_v48, 5  ;;  %v1020_v55 = vrot.slane %v1018_v50, 4  ;;  %v418_v1 = vrot.slane %v416_v34, 7  ;;  %v7295_v34 = vld [vmem:[%s7744_s5 + $0x48] sm:$0xff]  }
  0x98   : > { %6515 = vmatprep.mubr.bf16.mxu1 %v6004_v53  ;;  %v2886_v60 = vrot.slane %v2885_v56, 4  ;;  %v2896_v51 = vrot.slane %v2895_v57, 4  ;;  %v419_v61 = vshll.u32 %v7884_v16, 16  ;;  %v1026_v6 = vrot.slane %v1024_v52, 5 }
  0x99   : > { %v1011_v0 = vor.u32 %v1010_v38, %v1007_v58  ;;  %v1021_v5 = vor.u32 %v1020_v55, %v1016_v43  ;;  %v3506_v8 = vrot.slane %v7807_v28, 5  ;;  %v528_v20 = vsel %vm7757_vm6, %v418_v1, 0 }
  0x9a   : > { %v2891_v30 = vsel %vm7749_vm5, %v2886_v60, %v2890_v36  ;;  %v2901_v9 = vsel %vm7749_vm5, %v2896_v51, %v2900_v62  ;;  %v421_v25 = vor.u32 %v419_v61, %v418_v1  ;;  %v5973_v52 = vcombine.low %v528_v20, %v528_v20 }
  0x9b   : > { %v6116_v16 = vcombine.low %v2891_v30, %v2901_v9  ;;  %v1012_v12 = vrot.slane %v1011_v0, 4  ;;  %v1022_v29 = vrot.slane %v1021_v5, 4  ;;  %v6134_v31 = vrot.slane %v3440_v59, 9 }
  0x9c   : > { %v512_v28 = vsel %vm7757_vm6, 0, %v421_v25  ;;  %v359_v32 = vsel %vm340_vm3, %v7292_v63, 0  ;;  %737 = vst [vmem:[#allocation2 + $0x68] sm:$0x1] %v5973_v52  ;;  %v3508_v47 = vrot.slane %v3506_v8, 4  ;;  %v6135_v15 = vrot.slane %v3441_v26, 9 }
  0x9d   : > { %6707 = vmatprep.mubr.bf16.mxu0 %v6116_v16  ;;  %v1017_v62 = vsel %vm7749_vm5, %v1012_v12, %v1016_v43  ;;  %v1027_v42 = vsel %vm7749_vm5, %v1022_v29, %v1026_v6  ;;  %v5971_v2 = vcombine.low %v512_v28, %v512_v28  ;;  %v5972_v21 = vcombine.high %v512_v28, %v512_v28 }
  0x9e   : > { %v6005_v44 = vcombine.low %v1017_v62, %v1027_v42  ;;  %v422_v36 = vshrl.u32 %v359_v32, 16  ;;  %v425_v46 = vshll.u32 %v359_v32, 16  ;;  %v361_v11 = vsel %vm340_vm3, %v7295_v34, 0 }
  0x9f   : > { %735 = vst [vmem:[#allocation2 + $0x60] sm:$0xf] %v5971_v2  ;;  %736 = vst [vmem:[#allocation2 + $0x64] sm:$0xf] %v5972_v21  ;;  %v6136_v48 = vrot.slane %v3442_v7, 9  ;;  %v428_v53 = vshrl.u32 %v361_v11, 16  ;;  %v8001_v58 = vsel %vm7888_vm9, %v6135_v15, %v3513_v24  ;;  %v8017_v61 = vsel %vm7888_vm9, %v6134_v31, %v3506_v8 }
  0xa0   : > { %6516 = vmatmul.mubr.bf16.gmra.mrb[12].mxu1 %v6005_v44  ;;  %v424_v50 = vrot.slane %v422_v36, 7  ;;  %v431_v56 = vshll.u32 %v361_v11, 16  ;;  %v3520_v57 = vrot.slane %v7832_v35, 5  ;;  %v3523_v38 = vrot.slane %v7835_v41, 5 }
  0xa1   : > { %v8005_v43 = vsel %vm340_vm3, %v7296_v33, 0  ;;  %v6137_v55 = vrot.slane %v7989_v37, 9  ;;  %v6151_v35 = vcombine.low %v8001_v58, %v7906_v45  ;;  %v430_v60 = vrot.slane %v428_v53, 7 }
  0xa2   : > { %v427_v59 = vor.u32 %v425_v46, %v424_v50  ;;  %v529_v63 = vsel %vm7757_vm6, %v424_v50, 0  ;;  %v3522_v51 = vrot.slane %v3520_v57, 4  ;;  %v434_v24 = vshrl.u32 %v8005_v43, 16 }
  0xa3   : > { %v5976_v49 = vcombine.low %v529_v63, %v529_v63  ;;  %v8013_v1 = vld [vmem:[#allocation2 + $0x68] sm:$0x1]  ;;  %v8023_v0 = vsel %vm7888_vm9, %v3508_v47, %v3509_v23  ;;  %v530_v6 = vsel %vm7757_vm6, %v430_v60, 0  ;;  %v433_v34 = vor.u32 %v431_v56, %v430_v60 }
  0xa4   : > { %v825_v41 = vld [vmem:[#allocation2 + $0x68] sm:$0x1]  ;;  %v513_v5 = vsel %vm7757_vm6, 0, %v427_v59  ;;  %v2922_v30 = vshll.u32 %v8013_v1, 16  ;;  %v5979_v7 = vcombine.low %v530_v6, %v530_v6  ;;  %v8034_v23 = vsel %vm7888_vm9, %v6136_v48, %v3520_v57 }
  0xa5   : > { %v1048_v9 = vshll.u32 %v825_v41, 16  ;;  %v5974_v25 = vcombine.low %v513_v5, %v513_v5  ;;  %v5975_v20 = vcombine.high %v513_v5, %v513_v5  ;;  %740 = vst [vmem:[#allocation2 + $0x74] sm:$0x1] %v5976_v49  ;;  %v8038_v16 = vsel %vm7888_vm9, %v3522_v51, %v3523_v38 }
  0xa6   : > { %v2707_v8 = vld [vmem:[#allocation2 + $0x60] sm:$0xf]  ;;  %v8030_v26 = vld [vmem:[#allocation2 + $0x64] sm:$0xf]  ;;  %v2924_v32 = vrot.slane %v2922_v30, 5  ;;  %v514_v56 = vsel %vm7757_vm6, 0, %v433_v34  ;;  %v6152_v5 = vcombine.low %v8034_v23, %v8038_v16 }
  0xa7   : > { %v785_v17 = vld [vmem:[#allocation2 + $0x60] sm:$0xf]  ;;  %v2903_v12 = vshrl.u32 %v2707_v8, 16  ;;  %v2906_v29 = vshll.u32 %v2707_v8, 16  ;;  %v2912_v52 = vshll.u32 %v8030_v26, 16  ;;  %v2916_v28 = vshrl.u32 %v8030_v26, 16 }
  0xa8   : > { %v786_v31 = vld [vmem:[#allocation2 + $0x64] sm:$0xf]  ;;  %738 = vst [vmem:[#allocation2 + $0x6c] sm:$0xf] %v5974_v25  ;;  %739 = vst [vmem:[#allocation2 + $0x70] sm:$0xf] %v5975_v20  ;;  %v5977_v63 = vcombine.low %v514_v56, %v514_v56  ;;  %v5978_v60 = vcombine.high %v514_v56, %v514_v56  ;;  %v6150_v25 = vcombine.low %v8017_v61, %v8023_v0 }
  0xa9   : > { %v1029_v33 = vshrl.u32 %v785_v17, 16  ;;  %v1032_v62 = vshll.u32 %v785_v17, 16  ;;  %v1038_v42 = vshll.u32 %v786_v31, 16  ;;  %743 = vst [vmem:[#allocation2 + $0x80] sm:$0x1] %v5979_v7  ;;  %v2905_v2 = vrot.slane %v2903_v12, 4 }
  0xaa   : > { %v2908_v21 = vrot.slane %v2906_v29, 5  ;;  %v2914_v44 = vrot.slane %v2912_v52, 5  ;;  %v2918_v36 = vrot.slane %v2916_v28, 4  ;;  %v1042_v11 = vshrl.u32 %v786_v31, 16  ;;  %741 = vst [vmem:[#allocation2 + $0x78] sm:$0xf] %v5977_v63 }
  0xab   : > { %v1031_v46 = vrot.slane %v1029_v33, 4  ;;  %v1034_v47 = vrot.slane %v1032_v62, 5  ;;  %v1040_v15 = vrot.slane %v1038_v42, 5  ;;  %v1050_v53 = vrot.slane %v1048_v9, 5  ;;  %742 = vst [vmem:[#allocation2 + $0x7c] sm:$0xf] %v5978_v60 }
  0xac   : > { %v2909_v48 = vor.u32 %v2908_v21, %v2905_v2  ;;  %v2919_v50 = vor.u32 %v2918_v36, %v2914_v44  ;;  %v1044_v38 = vrot.slane %v1042_v11, 4  ;;  %v826_v59 = vld [vmem:[#allocation2 + $0x74] sm:$0x1]  ;;  %v436_v8 = vrot.slane %v434_v24, 7 }
  0xad   : > { %v1035_v57 = vor.u32 %v1034_v47, %v1031_v46  ;;  %v1072_v41 = vshll.u32 %v826_v59, 16  ;;  %v437_v21 = vshll.u32 %v8005_v43, 16  ;;  %v3530_v43 = vrot.slane %v7848_v22, 5 }
  0xae   : > { %v2910_v49 = vrot.slane %v2909_v48, 4  ;;  %v2920_v51 = vrot.slane %v2919_v50, 4  ;;  %v1045_v30 = vor.u32 %v1044_v38, %v1040_v15  ;;  %v531_v47 = vsel %vm7757_vm6, %v436_v8, 0 }
  0xaf   : > { %v1036_v6 = vrot.slane %v1035_v57, 4  ;;  %v8048_v9 = vld [vmem:[#allocation2 + $0x6c] sm:$0xf]  ;;  %v8050_v20 = vld [vmem:[#allocation2 + $0x70] sm:$0xf]  ;;  %v1074_v62 = vrot.slane %v1072_v41, 5  ;;  %v439_v11 = vor.u32 %v437_v21, %v436_v8  ;;  %v5982_v48 = vcombine.low %v531_v47, %v531_v47 }
  0xb0   : > { %v2915_v17 = vsel %vm7749_vm5, %v2910_v49, %v2914_v44  ;;  %v2925_v34 = vsel %vm7749_vm5, %v2920_v51, %v2924_v32  ;;  %v1053_v7 = vshrl.u32 %v8048_v9, 16  ;;  %v1056_v12 = vshll.u32 %v8048_v9, 16  ;;  %v827_v29 = vld [vmem:[#allocation2 + $0x80] sm:$0x1] }
  0xb1   : > { %v6117_v52 = vcombine.low %v2915_v17, %v2925_v34  ;;  %v1041_v61 = vsel %vm7749_vm5, %v1036_v6, %v1040_v15  ;;  %v1046_v0 = vrot.slane %v1045_v30, 4  ;;  %v1062_v28 = vshll.u32 %v8050_v20, 16  ;;  %v8068_v57 = vld [vmem:[#allocation2 + $0x78] sm:$0xf]  ;;  %746 = vst [vmem:[#allocation2 + $0x8c] sm:$0x1] %v5982_v48 }
  0xb2   : > { %v1055_v31 = vrot.slane %v1053_v7, 4  ;;  %v1058_v24 = vrot.slane %v1056_v12, 5  ;;  %v1066_v33 = vshrl.u32 %v8050_v20, 16  ;;  %v1096_v2 = vshll.u32 %v827_v29, 16  ;;  %v8070_v38 = vld [vmem:[#allocation2 + $0x7c] sm:$0xf] }
  0xb3   : > { %6708 = vmatmul.mubr.bf16.gmra.mrb[12].mxu0 %v6117_v52  ;;  %v1051_v32 = vsel %vm7749_vm5, %v1046_v0, %v1050_v53  ;;  %v1064_v42 = vrot.slane %v1062_v28, 5  ;;  %v3527_v50 = vrot.slane %v7899_v40, 5  ;;  %v1077_v59 = vshrl.u32 %v8068_v57, 16  ;;  %v7298_v51 = vld [vmem:[#allocation3 + $0x188] sm:$0xff]   ;;  %v7299_v40 = vld [vmem:[%s7744_s5 + $0x58] sm:$0xff]  }
  0xb4   : > { %v6006_v44 = vcombine.low %v1041_v61, %v1051_v32  ;;  %6743 = vmatprep.mubr.bf16.mxu0 %v6150_v25  ;;  %v1059_v36 = vor.u32 %v1058_v24, %v1055_v31  ;;  %v1068_v46 = vrot.slane %v1066_v33, 4  ;;  %v1098_v15 = vrot.slane %v1096_v2, 5  ;;  %v3444_v25 = vld [vmem:[#allocation2 + $0x3c] sm:$0xe]  ;;  %v8086_v12 = vld [vmem:[#allocation2 + $0x48] sm:$0xe] }
  0xb5   : > { %v1080_v63 = vshll.u32 %v8068_v57, 16  ;;  %v1086_v60 = vshll.u32 %v8070_v38, 16  ;;  %v1090_v49 = vshrl.u32 %v8070_v38, 16  ;;  %v515_v30 = vsel %vm7757_vm6, 0, %v439_v11  ;;  %v7300_v28 = vld [vmem:[%s7744_s5 + $0x60] sm:$0xff]  }
  0xb6   : > { %6519 = vmatprep.mubr.bf16.mxu1 %v6006_v44  ;;  %v1060_v56 = vrot.slane %v1059_v36, 4  ;;  %v1069_v53 = vor.u32 %v1068_v46, %v1064_v42  ;;  %v3528_v22 = vsel %vm7888_vm9, %v6137_v55, %v3527_v50  ;;  %v1079_v8 = vrot.slane %v1077_v59, 4 }
  0xb7   : > { %v1082_v17 = vrot.slane %v1080_v63, 5  ;;  %v1088_v34 = vrot.slane %v1086_v60, 5  ;;  %v1092_v7 = vrot.slane %v1090_v49, 4  ;;  %v5980_v52 = vcombine.low %v515_v30, %v515_v30  ;;  %v7306_v63 = vld [vmem:[#allocation3 + $0x198] sm:$0xff]  }
  0xb8   : > { %v1065_v41 = vsel %vm7749_vm5, %v1060_v56, %v1064_v42  ;;  %v1070_v6 = vrot.slane %v1069_v53, 4  ;;  %v5981_v61 = vcombine.high %v515_v30, %v515_v30  ;;  %v3529_v0 = vrot.slane %v3527_v50, 4  ;;  %v828_v21 = vld [vmem:[#allocation2 + $0x8c] sm:$0x1] }
  0xb9   : > { %v1083_v37 = vor.u32 %v1082_v17, %v1079_v8  ;;  %v1093_v55 = vor.u32 %v1092_v7, %v1088_v34  ;;  %v365_v24 = vsel %vm340_vm3, %v7299_v40, 0  ;;  %744 = vst [vmem:[#allocation2 + $0x84] sm:$0xf] %v5980_v52  ;;  %v6138_v42 = vrot.slane %v3444_v25, 9  ;;  %v7303_v8 = vld [vmem:[%s7744_s5 + $0x68] sm:$0xff]   ;;  %v7310_v7 = vld [vmem:[#allocation3 + $0x1a0] sm:$0xff]  }
  0xba   : > { %v1075_v29 = vsel %vm7749_vm5, %v1070_v6, %v1074_v62  ;;  %745 = vst [vmem:[#allocation2 + $0x88] sm:$0xf] %v5981_v61  ;;  %v3531_v33 = vsel %vm7888_vm9, %v3529_v0, %v3530_v43  ;;  %v440_v62 = vshrl.u32 %v365_v24, 16  ;;  %v443_v32 = vshll.u32 %v365_v24, 16  ;;  %v3446_v0 = vld [vmem:[#allocation2 + $0x54] sm:$0xe] }
  0xbb   : > { %v6007_v31 = vcombine.low %v1065_v41, %v1075_v29  ;;  %6744 = vmatmul.mubr.bf16.vlgmr.msra.gmra.mrb[0].mxu0 %v6151_v35  ;;  %v1084_v45 = vrot.slane %v1083_v37, 4  ;;  %v1094_v58 = vrot.slane %v1093_v55, 4  ;;  %v6153_v35 = vcombine.low %v3528_v22, %v3531_v33 }
  0xbc   : > { %6776 = vmatpush3.bf16.msra.mxu0 %v7933_v3  ;;  %6747 = vmatprep.mubr.bf16.mxu0 %v6152_v5  ;;  %v3534_v2 = vrot.slane %v7919_v13, 5  ;;  %v7302_v3 = vld [vmem:[#allocation3 + $0x190] sm:$0xff]   ;;  %v442_v44 = vrot.slane %v440_v62, 7  ;;  %v3537_v23 = vrot.slane %v7910_v4, 5  ;;  %v367_v16 = vsel %vm340_vm3, %v7300_v28, 0  ;;  %v7304_v28 = vld [vmem:[%s7744_s5 + $0x70] sm:$0xff]  }
  0xbd   : > { %6520 = vmatmul.mubr.bf16.gmra.mrb[16].mxu1 %v6007_v31  ;;  %6777 = vmatprep.subr.bf16.mxu0 %v7298_v51  ;;  %v6139_v5 = vrot.slane %v8086_v12, 9  ;;  %v1089_v36 = vsel %vm7749_vm5, %v1084_v45, %v1088_v34  ;;  %v1099_v46 = vsel %vm7749_vm5, %v1094_v58, %v1098_v15  ;;  %v1120_v47 = vshll.u32 %v828_v21, 16  ;;  %v8140_v45 = vld [vmem:[#allocation2 + $0x60] sm:$0xe] }
  0xbe   : > { %v3535_v11 = vsel %vm7888_vm9, %v6138_v42, %v3534_v2  ;;  %v6008_v13 = vcombine.low %v1089_v36, %v1099_v46  ;;  %v445_v48 = vor.u32 %v443_v32, %v442_v44  ;;  %v532_v4 = vsel %vm7757_vm6, %v442_v44, 0 }
  0xbf   : > { %v3536_v50 = vrot.slane %v3534_v2, 4  ;;  %v8113_v56 = vrot.slane %v1120_v47, 5  ;;  %v5985_v53 = vcombine.low %v532_v4, %v532_v4  ;;  %v446_v43 = vshrl.u32 %v367_v16, 16 }
  0xc0   : > { %6778 = vmatpush3.bf16.msra.mxu0 %v7298_v51  ;;  %v449_v59 = vshll.u32 %v367_v16, 16  ;;  %6523 = vmatprep.mubr.bf16.mxu1 %v6008_v13  ;;  %v516_v15 = vsel %vm7757_vm6, 0, %v445_v48  ;;  %v3541_v49 = vrot.slane %v7939_v14, 5  ;;  %v3544_v51 = vrot.slane %v7935_v54, 5  ;;  %v8121_v40 = vld [vmem:[#allocation2 + $0x84] sm:$0xf] }
  0xc1   : > { %6779 = vmatprep.subr.bf16.mxu0 %v7302_v3  ;;  %v3538_v60 = vsel %vm7888_vm9, %v3536_v50, %v3537_v23  ;;  %v8123_v41 = vld [vmem:[#allocation2 + $0x88] sm:$0xf]  ;;  %v5983_v6 = vcombine.low %v516_v15, %v516_v15  ;;  %v5984_v30 = vcombine.high %v516_v15, %v516_v15  ;;  %749 = vst [vmem:[#allocation2 + $0x98] sm:$0x1] %v5985_v53  ;;  %v448_v25 = vrot.slane %v446_v43, 7 }
  0xc2   : > { %v6154_v22 = vcombine.low %v3535_v11, %v3538_v60  ;;  %v1101_v17 = vshrl.u32 %v8121_v40, 16  ;;  %v1104_v34 = vshll.u32 %v8121_v40, 16  ;;  %v1110_v14 = vshll.u32 %v8123_v41, 16 }
  0xc3   : > { %6748 = vmatmul.mubr.bf16.gmra.mrb[4].mxu0 %v6153_v35  ;;  %v1114_v54 = vshrl.u32 %v8123_v41, 16  ;;  %747 = vst [vmem:[#allocation2 + $0x90] sm:$0xf] %v5983_v6  ;;  %748 = vst [vmem:[#allocation2 + $0x94] sm:$0xf] %v5984_v30  ;;  %v451_v12 = vor.u32 %v449_v59, %v448_v25  ;;  %v533_v29 = vsel %vm7757_vm6, %v448_v25, 0  ;;  %v3542_v52 = vsel %vm7888_vm9, %v6139_v5, %v3541_v49 }
  0xc4   : > { %6780 = vmatpush3.bf16.msra.mxu0 %v7302_v3  ;;  %6751 = vmatprep.mubr.bf16.mxu0 %v6154_v22  ;;  %v3543_v61 = vrot.slane %v3541_v49, 4  ;;  %v1103_v31 = vrot.slane %v1101_v17, 4  ;;  %v1106_v37 = vrot.slane %v1104_v34, 5  ;;  %v1112_v55 = vrot.slane %v1110_v14, 5  ;;  %v7314_v5 = vld [vmem:[#allocation3 + $0x1a8] sm:$0xff]   ;;  %v7318_v30 = vld [vmem:[#allocation3 + $0x1b0] sm:$0xff]  }
  0xc5   : > { %6781 = vmatprep.subr.bf16.mxu0 %v7306_v63  ;;  %v1116_v24 = vrot.slane %v1114_v54, 4  ;;  %v517_v33 = vsel %vm7757_vm6, 0, %v451_v12  ;;  %v5988_v62 = vcombine.low %v533_v29, %v533_v29  ;;  %v369_v42 = vsel %vm340_vm3, %v7303_v8, 0 }
  0xc6   : > { %v3545_v32 = vsel %vm7888_vm9, %v3543_v61, %v3544_v51  ;;  %v1107_v58 = vor.u32 %v1106_v37, %v1103_v31  ;;  %v5986_v2 = vcombine.low %v517_v33, %v517_v33  ;;  %v5987_v3 = vcombine.high %v517_v33, %v517_v33  ;;  %v7323_v33 = vld [vmem:[#allocation3 + $0x1b8] sm:$0xff]  }
  0xc7   : > { %v1117_v35 = vor.u32 %v1116_v24, %v1112_v55  ;;  %752 = vst [vmem:[#allocation2 + $0xa4] sm:$0x1] %v5988_v62  ;;  %v6155_v21 = vcombine.low %v3542_v52, %v3545_v32  ;;  %v452_v44 = vshrl.u32 %v369_v42, 16  ;;  %v455_v23 = vshll.u32 %v369_v42, 16 }
  0xc8   : > { %6782 = vmatpush3.bf16.msra.mxu0 %v7306_v63  ;;  %v6140_v16 = vrot.slane %v3446_v0, 9  ;;  %v1108_v36 = vrot.slane %v1107_v58, 4  ;;  %v829_v47 = vld [vmem:[#allocation2 + $0x98] sm:$0x1]  ;;  %750 = vst [vmem:[#allocation2 + $0x9c] sm:$0xf] %v5986_v2 }
  0xc9   : > { %6783 = vmatprep.subr.bf16.mxu0 %v7310_v7  ;;  %v1118_v46 = vrot.slane %v1117_v35, 4  ;;  %751 = vst [vmem:[#allocation2 + $0xa0] sm:$0xf] %v5987_v3  ;;  %v3548_v11 = vrot.slane %v7961_v10, 5  ;;  %v3551_v13 = vrot.slane %v7950_v19, 5  ;;  %v1144_v48 = vshll.u32 %v829_v47, 16 }
  0xca   : > { %v454_v4 = vrot.slane %v452_v44, 7  ;;  %v8145_v50 = vsel %vm340_vm3, %v7304_v28, 0  ;;  %v6141_v53 = vrot.slane %v8140_v45, 9  ;;  %v1113_v43 = vsel %vm7749_vm5, %v1108_v36, %v1112_v55  ;;  %v8153_v63 = vld [vmem:[#allocation2 + $0x90] sm:$0xf] }
  0xcb   : > { %6752 = vmatmul.mubr.bf16.gmra.mrb[8].mxu0 %v6155_v21  ;;  %v1123_v59 = vsel %vm7749_vm5, %v1118_v46, %v8113_v56  ;;  %v8155_v10 = vld [vmem:[#allocation2 + $0x94] sm:$0xf]  ;;  %v3549_v19 = vsel %vm7888_vm9, %v6140_v16, %v3548_v11  ;;  %v3550_v15 = vrot.slane %v3548_v11, 4  ;;  %v1125_v49 = vshrl.u32 %v8153_v63, 16 }
  0xcc   : > { %6784 = vmatpush3.bf16.msra.mxu0 %v7310_v7  ;;  %v6009_v60 = vcombine.low %v1113_v43, %v1123_v59  ;;  %v1128_v51 = vshll.u32 %v8153_v63, 16  ;;  %v1134_v6 = vshll.u32 %v8155_v10, 16  ;;  %v1138_v56 = vshrl.u32 %v8155_v10, 16 }
  0xcd   : > { %6785 = vmatprep.subr.bf16.mxu0 %v7314_v5  ;;  %v1146_v22 = vrot.slane %v1144_v48, 5  ;;  %v457_v25 = vor.u32 %v455_v23, %v454_v4  ;;  %v534_v8 = vsel %vm7757_vm6, %v454_v4, 0  ;;  %v1127_v17 = vrot.slane %v1125_v49, 4  ;;  %v8181_v48 = vld [vmem:[#allocation3 + $0x1c0] sm:$0xff]  }
  0xce   : > { %6524 = vmatmul.mubr.bf16.gmra.mrb[20].mxu1 %v6009_v60  ;;  %v1130_v34 = vrot.slane %v1128_v51, 5  ;;  %v1136_v14 = vrot.slane %v1134_v6, 5  ;;  %v5991_v54 = vcombine.low %v534_v8, %v534_v8  ;;  %v1140_v7 = vrot.slane %v1138_v56, 4  ;;  %v830_v12 = vld [vmem:[#allocation2 + $0xa4] sm:$0x1] }
  0xcf   : > { %v518_v29 = vsel %vm7757_vm6, 0, %v457_v25  ;;  %v3552_v52 = vsel %vm7888_vm9, %v3550_v15, %v3551_v13  ;;  %v458_v61 = vshrl.u32 %v8145_v50, 16  ;;  %v8170_v28 = vld [vmem:[#allocation2 + $0x9c] sm:$0xf]  ;;  %v1168_v37 = vshll.u32 %v830_v12, 16 }
  0xd0   : > { %6786 = vmatpush3.bf16.msra.mxu0 %v7314_v5  ;;  %v1131_v0 = vor.u32 %v1130_v34, %v1127_v17  ;;  %v8172_v31 = vld [vmem:[#allocation2 + $0xa0] sm:$0xf]  ;;  %v5989_v55 = vcombine.low %v518_v29, %v518_v29  ;;  %v5990_v24 = vcombine.high %v518_v29, %v518_v29  ;;  %755 = vst [vmem:[#allocation2 + $0xb0] sm:$0x1] %v5991_v54  ;;  %v1149_v32 = vshrl.u32 %v8170_v28, 16 }
  0xd1   : > { %6787 = vmatprep.subr.bf16.mxu0 %v7318_v30  ;;  %v1141_v62 = vor.u32 %v1140_v7, %v1136_v14  ;;  %v1152_v42 = vshll.u32 %v8170_v28, 16  ;;  %v1158_v58 = vshll.u32 %v8172_v31, 16  ;;  %v1162_v2 = vshrl.u32 %v8172_v31, 16  ;;  %v3448_v13 = vld [vmem:[#allocation2 + $0x6c] sm:$0xe] }
  0xd2   : > { %v1132_v35 = vrot.slane %v1131_v0, 4  ;;  %v1170_v3 = vrot.slane %v1168_v37, 5  ;;  %753 = vst [vmem:[#allocation2 + $0xa8] sm:$0xf] %v5989_v55  ;;  %754 = vst [vmem:[#allocation2 + $0xac] sm:$0xf] %v5990_v24  ;;  %v6156_v21 = vcombine.low %v3549_v19, %v3552_v52 }
  0xd3   : > { %v1142_v44 = vrot.slane %v1141_v62, 4  ;;  %v1151_v23 = vrot.slane %v1149_v32, 4  ;;  %v1154_v16 = vrot.slane %v1152_v42, 5  ;;  %v1160_v5 = vrot.slane %v1158_v58, 5  ;;  %v2711_v12 = vld [vmem:[#allocation2 + $0x70] sm:$0xf] }
  0xd4   : > { %6788 = vmatpush3.bf16.msra.mxu0 %v7318_v30  ;;  %v1137_v36 = vsel %vm7749_vm5, %v1132_v35, %v1136_v14  ;;  %v1164_v46 = vrot.slane %v1162_v2, 4  ;;  %6755 = vmatprep.mubr.bf16.mxu0 %v6156_v21  ;;  %v460_v47 = vrot.slane %v458_v61, 7  ;;  %v461_v11 = vshll.u32 %v8145_v50, 16  ;;  %v3449_v0 = vld [vmem:[#allocation2 + $0x78] sm:$0xe] }
  0xd5   : > { %6789 = vmatprep.subr.bf16.mxu0 %v7323_v33  ;;  %v1147_v4 = vsel %vm7749_vm5, %v1142_v44, %v1146_v22  ;;  %v1155_v43 = vor.u32 %v1154_v16, %v1151_v23  ;;  %v3555_v59 = vrot.slane %v8030_v26, 5  ;;  %v3558_v19 = vrot.slane %v8013_v1, 5  ;;  %v2712_v26 = vld [vmem:[#allocation2 + $0x74] sm:$0x1] }
  0xd6   : > { %v6010_v15 = vcombine.low %v1137_v36, %v1147_v4  ;;  %v1165_v60 = vor.u32 %v1164_v46, %v1160_v5  ;;  %v463_v49 = vor.u32 %v461_v11, %v460_v47  ;;  %v535_v51 = vsel %vm7757_vm6, %v460_v47, 0  ;;  %v8214_v36 = vld [vmem:[#allocation2 + $0x80] sm:$0x1] }
  0xd7   : > { %v1156_v6 = vrot.slane %v1155_v43, 4  ;;  %v831_v50 = vld [vmem:[#allocation2 + $0xb0] sm:$0x1]  ;;  %v5994_v30 = vcombine.low %v535_v51, %v535_v51  ;;  %v3557_v56 = vrot.slane %v3555_v59, 4  ;;  %v3556_v1 = vsel %vm7888_vm9, %v6141_v53, %v3555_v59 }
  0xd8   : > { %6790 = vmatpush3.bf16.msra.mxu0 %v7323_v33  ;;  %6527 = vmatprep.mubr.bf16.mxu1 %v6010_v15  ;;  %v1166_v25 = vrot.slane %v1165_v60, 4  ;;  %v519_v22 = vsel %vm7757_vm6, 0, %v463_v49  ;;  %v6142_v8 = vrot.slane %v3448_v13, 9  ;;  %v1192_v24 = vshll.u32 %v831_v50, 16  ;;  %v2717_v15 = vld [vmem:[#allocation2 + $0x88] sm:$0xf] }
  0xd9   : > { %6823 = vmatprep.subr.bf16.mxu0 %v8181_v48  ;;  %v1161_v17 = vsel %vm7749_vm5, %v1156_v6, %v1160_v5  ;;  %v8198_v34 = vld [vmem:[#allocation2 + $0xa8] sm:$0xf]  ;;  %v8200_v14 = vld [vmem:[#allocation2 + $0xac] sm:$0xf]  ;;  %v5992_v54 = vcombine.low %v519_v22, %v519_v22  ;;  %v5993_v7 = vcombine.high %v519_v22, %v519_v22  ;;  %758 = vst [vmem:[#allocation2 + $0xbc] sm:$0x1] %v5994_v30 }
  0xda   : > { %v3559_v45 = vsel %vm7888_vm9, %v3557_v56, %v3558_v19  ;;  %v1171_v53 = vsel %vm7749_vm5, %v1166_v25, %v1170_v3  ;;  %v1173_v29 = vshrl.u32 %v8198_v34, 16  ;;  %v1176_v52 = vshll.u32 %v8198_v34, 16  ;;  %v8210_v3 = vld [vmem:[#allocation2 + $0x7c] sm:$0xf]  ;;  %v3450_v60 = vld [vmem:[#allocation2 + $0x84] sm:$0xe] }
  0xdb   : > { %v1182_v61 = vshll.u32 %v8200_v14, 16  ;;  %v6011_v37 = vcombine.low %v1161_v17, %v1171_v53  ;;  %v1186_v55 = vshrl.u32 %v8200_v14, 16  ;;  %756 = vst [vmem:[#allocation2 + $0xb4] sm:$0xf] %v5992_v54  ;;  %757 = vst [vmem:[#allocation2 + $0xb8] sm:$0xf] %v5993_v7  ;;  %v6157_v33 = vcombine.low %v3556_v1, %v3559_v45 }
  0xdc   : > { %v1175_v62 = vrot.slane %v1173_v29, 4  ;;  %v1178_v32 = vrot.slane %v1176_v52, 5  ;;  %v3562_v58 = vrot.slane %v2711_v12, 5  ;;  %v3565_v2 = vrot.slane %v2712_v26, 5  ;;  %v2718_v25 = vld [vmem:[#allocation2 + $0x8c] sm:$0x1] }
  0xdd   : > { %v1184_v42 = vrot.slane %v1182_v61, 5  ;;  %6528 = vmatmul.mubr.bf16.gmra.mrb[24].mxu1 %v6011_v37  ;;  %v1188_v35 = vrot.slane %v1186_v55, 4  ;;  %6756 = vmatmul.mubr.bf16.gmra.mrb[12].mxu0 %v6157_v33  ;;  %v1194_v5 = vrot.slane %v1192_v24, 5  ;;  %v6143_v46 = vrot.slane %v3449_v0, 9  ;;  %v2720_v17 = vld [vmem:[#allocation2 + $0x94] sm:$0xf] }
  0xde   : > { %v1179_v21 = vor.u32 %v1178_v32, %v1175_v62  ;;  %v3563_v44 = vsel %vm7888_vm9, %v6142_v8, %v3562_v58  ;;  %v3564_v23 = vrot.slane %v3562_v58, 4  ;;  %v3569_v4 = vrot.slane %v8210_v3, 5  ;;  %v2721_v54 = vld [vmem:[#allocation2 + $0x98] sm:$0x1]  ;;  %v3451_v53 = vld [vmem:[#allocation2 + $0x90] sm:$0xe] }
  0xdf   : > { %v1189_v16 = vor.u32 %v1188_v35, %v1184_v42  ;;  %v3572_v56 = vrot.slane %v8214_v36, 5  ;;  %v3452_v29 = vld [vmem:[#allocation2 + $0x9c] sm:$0xe]  ;;  %v2723_v55 = vld [vmem:[#allocation2 + $0xa0] sm:$0xf]  ;;  %v6144_v32 = vrot.slane %v3450_v60, 9 }
  0xe0   : > { %v1180_v47 = vrot.slane %v1179_v21, 4  ;;  %v832_v11 = vld [vmem:[#allocation2 + $0xbc] sm:$0x1]  ;;  %v3566_v13 = vsel %vm7888_vm9, %v3564_v23, %v3565_v2  ;;  %v3570_v50 = vsel %vm7888_vm9, %v6143_v46, %v3569_v4  ;;  %v3571_v30 = vrot.slane %v3569_v4, 4  ;;  %v2724_v24 = vld [vmem:[#allocation2 + $0xa4] sm:$0x1] }
  0xe1   : > { %v1190_v43 = vrot.slane %v1189_v16, 4  ;;  %v1216_v59 = vshll.u32 %v832_v11, 16  ;;  %v6158_v19 = vcombine.low %v3563_v44, %v3566_v13  ;;  %v3579_v35 = vrot.slane %v2718_v25, 5  ;;  %v2726_v46 = vld [vmem:[#allocation2 + $0xac] sm:$0xf] }
  0xe2   : > { %v1185_v49 = vsel %vm7749_vm5, %v1180_v47, %v1184_v42  ;;  %v8221_v51 = vld [vmem:[#allocation2 + $0xb4] sm:$0xf]  ;;  %v8223_v6 = vld [vmem:[#allocation2 + $0xb8] sm:$0xf]  ;;  %v3573_v37 = vsel %vm7888_vm9, %v3571_v30, %v3572_v56  ;;  %v3576_v42 = vrot.slane %v2717_v15, 5  ;;  %v6145_v2 = vrot.slane %v3451_v53, 9 }
  0xe3   : > { %v1195_v22 = vsel %vm7749_vm5, %v1190_v43, %v1194_v5  ;;  %v1197_v1 = vshrl.u32 %v8221_v51, 16  ;;  %v1200_v26 = vshll.u32 %v8221_v51, 16  ;;  %v1206_v8 = vshll.u32 %v8223_v6, 16  ;;  %6759 = vmatprep.mubr.bf16.mxu0 %v6158_v19  ;;  %v2727_v47 = vld [vmem:[#allocation2 + $0xb0] sm:$0x1]  ;;  %v7322_v30 = vld [vmem:[%s7744_s5 + $0x78] sm:$0xff]  }
  0xe4   : > { %v6012_v7 = vcombine.low %v1185_v49, %v1195_v22  ;;  %v1210_v45 = vshrl.u32 %v8223_v6, 16  ;;  %v1218_v12 = vrot.slane %v1216_v59, 5  ;;  %v6159_v62 = vcombine.low %v3570_v50, %v3573_v37  ;;  %v3453_v11 = vld [vmem:[#allocation2 + $0xa8] sm:$0xe]  ;;  %v2730_v50 = vld [vmem:[#allocation2 + $0xbc] sm:$0x1] }
  0xe5   : > { %v1199_v52 = vrot.slane %v1197_v1, 4  ;;  %v1202_v61 = vrot.slane %v1200_v26, 5  ;;  %v1208_v0 = vrot.slane %v1206_v8, 5  ;;  %v3583_v21 = vrot.slane %v2720_v17, 5  ;;  %v7392_v25 = vld [vmem:[#allocation2] sm:$0xf] }
  0xe6   : > { %6531 = vmatprep.mubr.bf16.mxu1 %v6012_v7  ;;  %v1212_v33 = vrot.slane %v1210_v45, 4  ;;  %6760 = vmatmul.mubr.bf16.gmra.mrb[16].mxu0 %v6159_v62  ;;  %v3577_v23 = vsel %vm7888_vm9, %v6144_v32, %v3576_v42  ;;  %v3578_v16 = vrot.slane %v3576_v42, 4  ;;  %v3586_v5 = vrot.slane %v2721_v54, 5  ;;  %v8245_v22 = vld [vmem:[#allocation2 + $0x4] sm:$0xf] }
  0xe7   : > { %v1203_v58 = vor.u32 %v1202_v61, %v1199_v52  ;;  %v3584_v4 = vsel %vm7888_vm9, %v6145_v2, %v3583_v21  ;;  %v3585_v43 = vrot.slane %v3583_v21, 4  ;;  %v6146_v59 = vrot.slane %v3452_v29, 9  ;;  %v2729_v17 = vld [vmem:[#allocation2 + $0xb8] sm:$0xf]  ;;  %v3454_v54 = vld [vmem:[#allocation2 + $0xb4] sm:$0xe] }
  0xe8   : > { %v1213_v44 = vor.u32 %v1212_v33, %v1208_v0  ;;  %v3580_v15 = vsel %vm7888_vm9, %v3578_v16, %v3579_v35  ;;  %v3590_v60 = vrot.slane %v2723_v55, 5  ;;  %v3593_v49 = vrot.slane %v2724_v24, 5 }
  0xe9   : > { %v1204_v13 = vrot.slane %v1203_v58, 4  ;;  %v6022_v1 = vcombine.low %v7392_v25, %v8245_v22  ;;  %v6160_v26 = vcombine.low %v3577_v23, %v3580_v15  ;;  %v3587_v8 = vsel %vm7888_vm9, %v3585_v43, %v3586_v5  ;;  %v8257_v23 = vld [vmem:[#allocation2 + $0x10] sm:$0xf]  ;;  %v7396_v43 = vld [vmem:[#allocation2 + $0x18] sm:$0xf] }
  0xea   : > { %v1214_v19 = vrot.slane %v1213_v44, 4  ;;  %v6161_v45 = vcombine.low %v3584_v4, %v3587_v8  ;;  %v3591_v53 = vsel %vm7888_vm9, %v6146_v59, %v3590_v60  ;;  %v3592_v29 = vrot.slane %v3590_v60, 4  ;;  %v7394_v44 = vld [vmem:[#allocation2 + $0xc] sm:$0xf]  ;;  %v8270_v59 = vld [vmem:[#allocation2 + $0x1c] sm:$0xf] }
  0xeb   : > { %v1209_v56 = vsel %vm7749_vm5, %v1204_v13, %v1208_v0  ;;  %6763 = vmatprep.mubr.bf16.mxu0 %v6160_v26  ;;  %v6147_v61 = vrot.slane %v3453_v11, 9  ;;  %v3597_v0 = vrot.slane %v2726_v46, 5  ;;  %v3600_v37 = vrot.slane %v2727_v47, 5  ;;  %v7313_v60 = vld [vmem:[#allocation3 + $0x88] sm:$0xff]   ;;  %v7317_v26 = vld [vmem:[#allocation3 + $0x90] sm:$0xff]  }
  0xec   : > { %v1219_v7 = vsel %vm7749_vm5, %v1214_v19, %v1218_v12  ;;  %v3594_v55 = vsel %vm7888_vm9, %v3592_v29, %v3593_v49  ;;  %v6148_v24 = vrot.slane %v3454_v54, 9  ;;  %v3604_v33 = vrot.slane %v2729_v17, 5  ;;  %v7399_v8 = vld [vmem:[#allocation2 + $0x24] sm:$0xf]  ;;  %v8275_v17 = vld [vmem:[#allocation2 + $0x28] sm:$0xf] }
  0xed   : > { %v6013_v52 = vcombine.low %v1209_v56, %v1219_v7  ;;  %v373_v62 = vsel %vm340_vm3, %v7322_v30, 0  ;;  %v6162_v32 = vcombine.low %v3591_v53, %v3594_v55  ;;  %v3599_v12 = vrot.slane %v3597_v0, 4  ;;  %v7401_v54 = vld [vmem:[#allocation2 + $0x30] sm:$0xf]  ;;  %v8278_v7 = vld [vmem:[#allocation2 + $0x34] sm:$0xf] }
  0xee   : > { %v3607_v42 = vrot.slane %v2730_v50, 5  ;;  %v464_v58 = vshrl.u32 %v373_v62, 16  ;;  %6764 = vmatmul.mubr.bf16.gmra.mrb[20].mxu0 %v6161_v45  ;;  %v3606_v35 = vrot.slane %v3604_v33, 4  ;;  %v467_v2 = vshll.u32 %v373_v62, 16  ;;  %v7321_v53 = vld [vmem:[#allocation3 + $0x98] sm:$0xff]  }
  0xef   : > { %6532 = vmatmul.mubr.bf16.gmra.mrb[28].mxu1 %v6013_v52  ;;  %6767 = vmatprep.mubr.bf16.mxu0 %v6162_v32  ;;  %v6023_v16 = vcombine.low %v7394_v44, %v8257_v23  ;;  %v3598_v5 = vsel %vm7888_vm9, %v6147_v61, %v3597_v0  ;;  %v3601_v46 = vsel %vm7888_vm9, %v3599_v12, %v3600_v37  ;;  %v2964_v62 = vshrl.u32 %v8210_v3, 16 }
  0xf0   : > { %6551 = vmatprep.mubr.bf16.mxu1 %v6022_v1  ;;  %v466_v21 = vrot.slane %v464_v58, 7  ;;  %v3605_v47 = vsel %vm7888_vm9, %v6148_v24, %v3604_v33  ;;  %v3608_v11 = vsel %vm7888_vm9, %v3606_v35, %v3607_v42  ;;  %v6024_v19 = vcombine.low %v7396_v43, %v8270_v59  ;;  %v7398_v1 = vld [vmem:[#allocation3 + $0x80] sm:$0xff]   ;;  %v8285_v58 = vld [vmem:[#allocation2 + $0x40] sm:$0xf] }
  0xf1   : > { %v6163_v49 = vcombine.low %v3598_v5, %v3601_v46  ;;  %v6164_v30 = vcombine.low %v3605_v47, %v3608_v11  ;;  %v6025_v39 = vcombine.low %v7399_v8, %v8275_v17  ;;  %v6026_v45 = vcombine.low %v7401_v54, %v8278_v7  ;;  %v7327_v24 = vld [vmem:[#allocation3 + $0xa0] sm:$0xff]  }
  0xf2   : > { %v469_v13 = vor.u32 %v467_v2, %v466_v21  ;;  %v536_v4 = vsel %vm7757_vm6, %v466_v21, 0  ;;  %v2960_v33 = vshll.u32 %v8210_v3, 16  ;;  %v7403_v42 = vld [vmem:[#allocation2 + $0x3c] sm:$0xf]  ;;  %v7405_v2 = vld [vmem:[#allocation2 + $0x48] sm:$0xf] }
  0xf3   : > { %v5997_v15 = vcombine.low %v536_v4, %v536_v4  ;;  %v6027_v35 = vcombine.low %v7403_v42, %v8285_v58  ;;  %v8288_v21 = vld [vmem:[#allocation2 + $0x4c] sm:$0xf]  ;;  %v7325_v5 = vld [vmem:[#allocation2 + $0x18] sm:$0xff]   ;;  %v2966_v47 = vrot.slane %v2964_v62, 4  ;;  %v2970_v11 = vshll.u32 %v8214_v36, 16 }
  0xf4   : > { %v520_v50 = vsel %vm7757_vm6, 0, %v469_v13  ;;  %v6028_v44 = vcombine.low %v7405_v2, %v8288_v21  ;;  %v8293_v46 = vrot.slane %v2960_v33, 5  ;;  %v7333_v13 = vld [vmem:[#allocation3 + $0xa8] sm:$0xff]   ;;  %v1868_v43 = vrot.slane %v8245_v22, 5  ;;  %v7339_v36 = vld [vmem:[#allocation3 + $0xb0] sm:$0xff]  }
  0xf5   : > { %v5995_v56 = vcombine.low %v520_v50, %v520_v50  ;;  %v5996_v25 = vcombine.high %v520_v50, %v520_v50  ;;  %761 = vst [vmem:[#allocation2 + $0xc8] sm:$0x1] %v5997_v15  ;;  %v1815_v4 = vld [vmem:[#allocation2] sm:$0xe]  ;;  %v7407_v15 = vld [vmem:[#allocation2 + $0x8] sm:$0x1] }
  0xf6   : > { %6768 = vmatmul.mubr.bf16.gmra.mrb[24].mxu0 %v6163_v49  ;;  %9607 = vst [vmem:[#allocation13_spill] sm:$0xff] %v8293_v46  ;;  %v7408_v49 = vld [vmem:[#allocation2 + $0x14] sm:$0x1]  ;;  %v2967_v8 = vor.u32 %v2966_v47, %v8293_v46  ;;  %v7411_v22 = vld [vmem:[#allocation2 + $0x60] sm:$0xf]  ;;  %v1870_v62 = vrot.slane %v1868_v43, 4 }
  0xf7   : > { %6552 = vmatmul.mubr.bf16.vlgmr.msra.gmra.mrb[0].mxu1 %v6023_v16  ;;  %759 = vst [vmem:[#allocation2 + $0xc0] sm:$0xf] %v5995_v56  ;;  %760 = vst [vmem:[#allocation2 + $0xc4] sm:$0xf] %v5996_v25  ;;  %6771 = vmatprep.mubr.bf16.mxu0 %v6164_v30  ;;  %v1878_v50 = vrot.slane %v7408_v49, 5 }
  0xf8   : > { %6584 = vmatpush3.bf16.msra.mxu1 %v7398_v1  ;;  %6555 = vmatprep.mubr.bf16.mxu1 %v6024_v19  ;;  %v1875_v19 = vrot.slane %v8257_v23, 5  ;;  %v7409_v30 = vld [vmem:[#allocation2 + $0x54] sm:$0xf]  ;;  %v8298_v56 = vld [vmem:[#allocation2 + $0x58] sm:$0xf] }
  0xf9   : > { %6585 = vmatprep.subr.bf16.mxu1 %v7313_v60  ;;  %v6029_v25 = vcombine.low %v7409_v30, %v8298_v56  ;;  %v1816_v1 = vld [vmem:[#allocation2 + $0xc] sm:$0xe]  ;;  %v8305_v23 = vld [vmem:[#allocation2 + $0x64] sm:$0xf]  ;;  %v7413_v2 = vld [vmem:[#allocation2 + $0x20] sm:$0x1] }
  0xfa   : > { %v6030_v54 = vcombine.low %v7411_v22, %v8305_v23  ;;  %v7345_v30 = vld [vmem:[#allocation3 + $0xb8] sm:$0xff]   ;;  %v1903_v22 = vrot.slane %v8285_v58, 5  ;;  %v7341_v58 = vld [vmem:[#allocation3 + $0x1d0] sm:$0xff]  }
  0xfc   : > { %6586 = vmatpush3.bf16.msra.mxu1 %v7313_v60  ;;  %v2733_v29 = vld [vmem:[#allocation2 + $0xc8] sm:$0x1]  ;;  %v1871_v60 = vrot.slane %v7407_v15, 5  ;;  %v1896_v15 = vrot.slane %v8278_v7, 5 }
  0xfd   : > { %6587 = vmatprep.subr.bf16.mxu1 %v7317_v26  ;;  %v3614_v0 = vrot.slane %v2733_v29, 5  ;;  %v1889_v29 = vrot.slane %v8275_v17, 5  ;;  %v8317_v17 = vld [vmem:[#allocation2 + $0x30] sm:$0xe] }
  0xfe   : > { %v2732_v52 = vld [vmem:[#allocation2 + $0xc4] sm:$0xf]  ;;  %v3455_v61 = vld [vmem:[#allocation2 + $0xc0] sm:$0xe]  ;;  %v8338_v7 = vsel %vm7888_vm9, %v1870_v62, %v1871_v60  ;;  %v6050_v60 = vrot.slane %v8317_v17, 9  ;;  %v7337_v17 = vld [vmem:[#allocation2 + $0x48] sm:$0xff]  }
  0xff   : > { %6556 = vmatmul.mubr.bf16.gmra.mrb[4].mxu1 %v6025_v39  ;;  %v6149_v37 = vrot.slane %v3455_v61, 9  ;;  %v3611_v55 = vrot.slane %v2732_v52, 5  ;;  %v8303_v39 = vrot.slane %v2970_v11, 5  ;;  %v6031_v52 = vcombine.low %v8048_v9, %v8050_v20  ;;  %v7328_v61 = vld [vmem:[#allocation2 + $0x24] sm:$0xff]   ;;  %v7414_v11 = vld [vmem:[#allocation2 + $0x2c] sm:$0x1] }
 0x100   : > { %6559 = vmatprep.mubr.bf16.mxu1 %v6026_v45  ;;  %6588 = vmatpush3.bf16.msra.mxu1 %v7317_v26  ;;  %v1882_v26 = vrot.slane %v8270_v59, 5  ;;  %v1817_v45 = vld [vmem:[#allocation2 + $0x18] sm:$0xe]  ;;  %v6032_v59 = vcombine.low %v8068_v57, %v8070_v38  ;;  %v1891_v47 = vrot.slane %v1889_v29, 4 }
 0x101   : > { %6589 = vmatprep.subr.bf16.mxu1 %v7321_v53  ;;  %v3612_v32 = vsel %vm7888_vm9, %v6149_v37, %v3611_v55  ;;  %v3613_v12 = vrot.slane %v3611_v55, 4  ;;  %9608 = vst [vmem:[#allocation14_spill] sm:$0xff] %v8303_v39  ;;  %v6033_v37 = vcombine.low %v8121_v40, %v8123_v41  ;;  %v6046_v55 = vrot.slane %v1815_v4, 9  ;;  %v7351_v57 = vld [vmem:[#allocation3 + $0x1e0] sm:$0xff]   ;;  %v7359_v40 = vld [vmem:[#allocation3 + $0x1f0] sm:$0xff]  }
 0x102   : > { %v6048_v42 = vrot.slane %v1817_v45, 9  ;;  %v1892_v4 = vrot.slane %v7414_v11, 5  ;;  %v8333_v45 = vrot.slane %v2967_v8, 4 }
 0x103   : > { %v3615_v16 = vsel %vm7888_vm9, %v3613_v12, %v3614_v0  ;;  %v7331_v0 = vld [vmem:[#allocation2 + $0x30] sm:$0xff]   ;;  %v1877_v12 = vrot.slane %v1875_v19, 4 }
 0x104   : > { %6590 = vmatpush3.bf16.msra.mxu1 %v7321_v53  ;;  %v6165_v3 = vcombine.low %v3612_v32, %v3615_v16  ;;  %v1818_v53 = vld [vmem:[#allocation2 + $0x24] sm:$0xe]  ;;  %v6047_v32 = vrot.slane %v1816_v1, 9  ;;  %v8330_v1 = vsel %vm7888_vm9, %v6046_v55, %v1868_v43  ;;  %9609 = vst [vmem:[#allocation15_spill] sm:$0xff] %v8333_v45  ;;  %v4325_v43 = vld [vmem:[#allocation2 + $0x18] sm:$0xf]  ;;  %v8350_v8 = vsel %vm7888_vm9, %v6048_v42, %v1882_v26 }
 0x105   : > { %6591 = vmatprep.subr.bf16.mxu1 %v7327_v24  ;;  %v6049_v16 = vrot.slane %v1818_v53, 9  ;;  %v8346_v53 = vsel %vm7888_vm9, %v1877_v12, %v1878_v50  ;;  %v4326_v50 = vld [vmem:[#allocation2 + $0x1c] sm:$0xf]  ;;  %v1905_v12 = vrot.slane %v1903_v22, 4  ;;  %v7416_v42 = vld [vmem:[#allocation2 + $0x44] sm:$0x1] }
 0x106   : > { %6772 = vmatmul.mubr.bf16.gmra.mrb[28].mxu0 %v6165_v3  ;;  %v4387_v11 = vshrl.u32 %v4326_v50, 16  ;;  %v4329_v3 = vld [vmem:[#allocation2 + $0x28] sm:$0xf] }
 0x107   : > { %6560 = vmatmul.mubr.bf16.gmra.mrb[8].mxu1 %v6027_v35  ;;  %6791 = vmatprep.mubr.bf16.mxu0 %v7325_v5  ;;  %v1884_v35 = vrot.slane %v1882_v26, 4  ;;  %v8319_v5 = vld [vmem:[#allocation2 + $0x3c] sm:$0xe]  ;;  %v7415_v26 = vld [vmem:[#allocation2 + $0x38] sm:$0x1] }
 0x108   : > { %6563 = vmatprep.mubr.bf16.mxu1 %v6028_v44  ;;  %6592 = vmatpush3.bf16.msra.mxu1 %v7327_v24  ;;  %v7335_v24 = vld [vmem:[#allocation3 + $0x1c8] sm:$0xff]   ;;  %v1885_v44 = vrot.slane %v7413_v2, 5  ;;  %v1899_v55 = vrot.slane %v7415_v26, 5  ;;  %v6051_v62 = vrot.slane %v8319_v5, 9  ;;  %v4377_v2 = vshll.u32 %v4325_v43, 16  ;;  %v8370_v5 = vld [vmem:[#allocation3 + $0xc0] sm:$0xff]  }
 0x109   : > { %6593 = vmatprep.subr.bf16.mxu1 %v7333_v13  ;;  %v1910_v26 = vrot.slane %v8288_v21, 5  ;;  %v4389_v9 = vrot.slane %v4387_v11, 4 }
 0x10c   : > { %6594 = vmatpush3.bf16.msra.mxu1 %v7333_v13 }
 0x10d   : > { %6595 = vmatprep.subr.bf16.mxu1 %v7339_v36 }
 0x10e   : > { %6792 = vmatmul.mubr.bf16.vlgmr.msra.gmra.mrb[0].mxu0 %v7328_v61  ;;  %v8363_v61 = vsel %vm7888_vm9, %v1891_v47, %v1892_v4  ;;  %v4383_v47 = vshll.u32 %v4326_v50, 16  ;;  %v8387_v4 = vsel %vm7888_vm9, %v6051_v62, %v1903_v22  ;;  %v8400_v22 = vld [vmem:[#allocation2 + $0x60] sm:$0xe]  ;;  %v4407_v62 = vshll.u32 %v4329_v3, 16 }
 0x10f   : > { %6564 = vmatmul.mubr.bf16.gmra.mrb[12].mxu1 %v6029_v25  ;;  %6824 = vmatpush3.bf16.msra.mxu0 %v8181_v48  ;;  %v8342_v25 = vsel %vm7888_vm9, %v6047_v32, %v1875_v19  ;;  %v8354_v48 = vsel %vm7888_vm9, %v1884_v35, %v1885_v44  ;;  %v8358_v19 = vsel %vm7888_vm9, %v6049_v16, %v1889_v29  ;;  %v1821_v32 = vld [vmem:[#allocation2 + $0x48] sm:$0xe]  ;;  %v1906_v29 = vrot.slane %v7416_v42, 5  ;;  %v7347_v44 = vld [vmem:[#allocation3 + $0x1d8] sm:$0xff]   ;;  %v4328_v16 = vld [vmem:[#allocation2 + $0x24] sm:$0xf] }
 0x110   : > { %6567 = vmatprep.mubr.bf16.mxu1 %v6030_v54  ;;  %6795 = vmatprep.mubr.bf16.mxu0 %v7331_v0  ;;  %v7334_v54 = vld [vmem:[#allocation2 + $0x3c] sm:$0xff]   ;;  %v1898_v0 = vrot.slane %v1896_v15, 4  ;;  %v4374_v35 = vshrl.u32 %v4325_v43, 16  ;;  %v1822_v42 = vld [vmem:[#allocation2 + $0x54] sm:$0xe]  ;;  %v6052_v49 = vrot.slane %v1821_v32, 9 }
 0x111   : > { %6825 = vmatprep.subr.bf16.mxu0 %v7335_v24  ;;  %6596 = vmatpush3.bf16.msra.mxu1 %v7339_v36  ;;  %v4327_v36 = vld [vmem:[#allocation2 + $0x20] sm:$0x1]  ;;  %v7417_v43 = vld [vmem:[#allocation2 + $0x50] sm:$0x1]  ;;  %v8394_v21 = vsel %vm7888_vm9, %v1905_v12, %v1906_v29  ;;  %v4398_v20 = vshrl.u32 %v4328_v16, 16  ;;  %v4411_v32 = vshrl.u32 %v4329_v3, 16 }
 0x112   : > { %6597 = vmatprep.subr.bf16.mxu1 %v7345_v30  ;;  %v8383_v50 = vsel %vm7888_vm9, %v1898_v0, %v1899_v55  ;;  %v1913_v13 = vrot.slane %v7417_v43, 5  ;;  %v8402_v0 = vrot.slane %v4383_v47, 5  ;;  %v1912_v55 = vrot.slane %v1910_v26, 4  ;;  %v7419_v47 = vld [vmem:[#allocation2 + $0x70] sm:$0xf]  ;;  %v7343_v43 = vld [vmem:[#allocation2 + $0x60] sm:$0xff]  }
 0x113   : > { %6826 = vmatpush3.bf16.msra.mxu0 %v7335_v24  ;;  %v8378_v24 = vsel %vm7888_vm9, %v6050_v60, %v1896_v15  ;;  %v1917_v15 = vrot.slane %v8298_v56, 5  ;;  %v4379_v60 = vrot.slane %v4377_v2, 5  ;;  %v1924_v12 = vrot.slane %v8305_v23, 5  ;;  %v7418_v2 = vld [vmem:[#allocation2 + $0x5c] sm:$0x1] }
 0x114   : > { %6827 = vmatprep.subr.bf16.mxu0 %v7341_v58  ;;  %v4393_v29 = vshll.u32 %v4327_v36, 16  ;;  %v1931_v11 = vrot.slane %v7419_v47, 5  ;;  %v4330_v3 = vld [vmem:[#allocation2 + $0x2c] sm:$0x1]  ;;  %v4390_v33 = vor.u32 %v4389_v9, %v8402_v0  ;;  %v4400_v38 = vrot.slane %v4398_v20, 4 }
 0x115   : > { %6598 = vmatpush3.bf16.msra.mxu1 %v7345_v30  ;;  %v4376_v30 = vrot.slane %v4374_v35, 4  ;;  %v1824_v35 = vld [vmem:[#allocation2 + $0x6c] sm:$0xe]  ;;  %v1919_v56 = vrot.slane %v1917_v15, 4  ;;  %v8417_v23 = vsel %vm7888_vm9, %v1912_v55, %v1913_v13  ;;  %v8420_v36 = vrot.slane %v4407_v62, 5 }
 0x116   : > { %6796 = vmatmul.mubr.bf16.gmra.mrb[4].mxu0 %v7334_v54  ;;  %v7340_v54 = vld [vmem:[#allocation2 + $0x54] sm:$0xff]   ;;  %6631 = vmatprep.subr.bf16.mxu1 %v8370_v5  ;;  %v1926_v9 = vrot.slane %v1924_v12, 4  ;;  %v7420_v20 = vld [vmem:[#allocation2 + $0x68] sm:$0x1]  ;;  %v1933_v55 = vrot.slane %v1931_v11, 4  ;;  %v4417_v46 = vshll.u32 %v4330_v3, 16 }
 0x117   : > { %6568 = vmatmul.mubr.bf16.gmra.mrb[16].mxu1 %v6031_v52  ;;  %6799 = vmatprep.mubr.bf16.mxu0 %v7337_v17  ;;  %v4401_v52 = vshll.u32 %v4328_v16, 16  ;;  %v1920_v17 = vrot.slane %v7418_v2, 5  ;;  %v4380_v16 = vor.u32 %v4379_v60, %v4376_v30  ;;  %v4331_v30 = vld [vmem:[#allocation2 + $0x30] sm:$0xf]  ;;  %v7355_v60 = vld [vmem:[#allocation3 + $0x1e8] sm:$0xff]  }
 0x118   : > { %6571 = vmatprep.mubr.bf16.mxu1 %v6032_v59  ;;  %6828 = vmatpush3.bf16.msra.mxu0 %v7341_v58  ;;  %v6053_v59 = vrot.slane %v1822_v42, 9  ;;  %v8412_v58 = vsel %vm7888_vm9, %v6052_v49, %v1910_v26  ;;  %v6054_v49 = vrot.slane %v8400_v22, 9  ;;  %v4413_v26 = vrot.slane %v4411_v32, 4  ;;  %v4332_v47 = vld [vmem:[#allocation2 + $0x34] sm:$0xf] }
 0x119   : > { %6829 = vmatprep.subr.bf16.mxu0 %v7347_v44  ;;  %v4403_v42 = vrot.slane %v4401_v52, 5  ;;  %v1927_v52 = vrot.slane %v7420_v20, 5  ;;  %v4381_v13 = vrot.slane %v4380_v16, 4  ;;  %v6055_v22 = vrot.slane %v1824_v35, 9  ;;  %v7421_v62 = vld [vmem:[#allocation2 + $0x74] sm:$0x1] }
 0x11a   : > { %v8424_v2 = vsel %vm7888_vm9, %v6053_v59, %v1917_v15  ;;  %v1934_v32 = vrot.slane %v7421_v62, 5  ;;  %v9610_v15 = vcombine.low %v8153_v63, %v8155_v10  ;;  %v8436_v59 = vsel %vm7888_vm9, %v1919_v56, %v1920_v17  ;;  %v7422_v10 = vld [vmem:[#allocation2 + $0x7c] sm:$0xf]  ;;  %v1825_v35 = vld [vmem:[#allocation2 + $0x78] sm:$0xe]  ;;  %v7346_v16 = vld [vmem:[#allocation2 + $0x6c] sm:$0xff]  }
 0x11b   : > { %v4404_v20 = vor.u32 %v4403_v42, %v4400_v38  ;;  %v4414_v63 = vor.u32 %v4413_v26, %v8420_v36  ;;  %v4422_v56 = vshrl.u32 %v4331_v30, 16  ;;  %v4425_v17 = vshll.u32 %v4331_v30, 16  ;;  %v7363_v26 = vld [vmem:[#allocation3 + $0x1f8] sm:$0xff]   ;;  %v4335_v62 = vld [vmem:[#allocation2 + $0x40] sm:$0xf] }
 0x11c   : > { %6830 = vmatpush3.bf16.msra.mxu0 %v7347_v44  ;;  %v8426_v44 = vrot.slane %v4393_v29, 5  ;;  %v4391_v29 = vrot.slane %v4390_v33, 4  ;;  %v4431_v33 = vshll.u32 %v4332_v47, 16  ;;  %v4435_v38 = vshrl.u32 %v4332_v47, 16 }
 0x11d   : > { %6831 = vmatprep.subr.bf16.mxu0 %v7351_v57  ;;  %v8457_v42 = vsel %vm7888_vm9, %v1933_v55, %v1934_v32  ;;  %v4386_v30 = vsel %vm7749_vm5, %v4381_v13, %v8402_v0  ;;  %v4333_v32 = vld [vmem:[#allocation2 + $0x38] sm:$0x1]  ;;  %v4424_v3 = vrot.slane %v4422_v56, 4  ;;  %v4427_v41 = vrot.slane %v4425_v17, 5  ;;  %v4337_v17 = vld [vmem:[#allocation2 + $0x48] sm:$0xf] }
 0x11e   : > { %6800 = vmatmul.mubr.bf16.gmra.mrb[8].mxu0 %v7340_v54  ;;  %v1938_v54 = vrot.slane %v7422_v10, 5  ;;  %9611 = vst [vmem:[#allocation16_spill] sm:$0xff] %v8457_v42  ;;  %v4396_v47 = vsel %vm7749_vm5, %v4391_v29, %v8426_v44  ;;  %v7423_v10 = vld [vmem:[#allocation2 + $0x80] sm:$0x1]  ;;  %v8465_v45 = vrot.slane %v4431_v33, 5  ;;  %v4437_v0 = vrot.slane %v4435_v38, 4 }
 0x11f   : > { %6572 = vmatmul.mubr.bf16.gmra.mrb[20].mxu1 %v6033_v37  ;;  %6803 = vmatprep.mubr.bf16.mxu0 %v7343_v43  ;;  %v8442_v37 = vsel %vm7888_vm9, %v6054_v49, %v1924_v12  ;;  %v8449_v43 = vsel %vm7888_vm9, %v1926_v9, %v1927_v52  ;;  %v8453_v12 = vsel %vm7888_vm9, %v6055_v22, %v1931_v11  ;;  %v4334_v49 = vld [vmem:[#allocation2 + $0x3c] sm:$0xf]  ;;  %v4405_v9 = vrot.slane %v4404_v20, 4  ;;  %v1826_v44 = vld [vmem:[#allocation2 + $0x84] sm:$0xe] }
 0x120   : > { %6575 = vmatprep.mubr.bf16.mxu1 %v9610_v15  ;;  %6832 = vmatpush3.bf16.msra.mxu0 %v7351_v57  ;;  %v7348_v57 = vld [vmem:[#allocation2 + $0x78] sm:$0xff]   ;;  %v4419_v52 = vrot.slane %v4417_v46, 5  ;;  %v4415_v11 = vrot.slane %v4414_v63, 4  ;;  %v6056_v22 = vrot.slane %v1825_v35, 9  ;;  %v1940_v15 = vrot.slane %v1938_v54, 4  ;;  %v7350_v33 = vld [vmem:[#allocation2 + $0x84] sm:$0xff]  }
 0x121   : > { %6833 = vmatprep.subr.bf16.mxu0 %v7355_v60  ;;  %v1941_v55 = vrot.slane %v7423_v10, 5  ;;  %v9612_v13 = vcombine.low %v8170_v28, %v8172_v31  ;;  %v4446_v29 = vshrl.u32 %v4334_v49, 16  ;;  %v4449_v20 = vshll.u32 %v4334_v49, 16  ;;  %v8497_v10 = vld [vmem:[#allocation2 + $0x90] sm:$0xe] }
 0x122   : > { %v9613_v63 = vcombine.low %v8198_v34, %v8200_v14  ;;  %v8477_v35 = vcombine.low %v4386_v30, %v4396_v47  ;;  %v4410_v28 = vsel %vm7749_vm5, %v4405_v9, %v8420_v36  ;;  %v4455_v31 = vshll.u32 %v4335_v62, 16  ;;  %v4336_v36 = vld [vmem:[#allocation2 + $0x44] sm:$0x1]  ;;  %v7424_v47 = vld [vmem:[#allocation2 + $0x88] sm:$0xf] }
 0x123   : > { %v4459_v56 = vshrl.u32 %v4335_v62, 16  ;;  %v4420_v38 = vsel %vm7749_vm5, %v4415_v11, %v4419_v52  ;;  %v8488_v34 = vsel %vm7888_vm9, %v6056_v22, %v1938_v54  ;;  %v8492_v14 = vsel %vm7888_vm9, %v1940_v15, %v1941_v55  ;;  %v8495_v52 = vld [vmem:[#allocation2 + $0x4c] sm:$0xf]  ;;  %v8539_v46 = vld [vmem:[#allocation2 + $0x64] sm:$0xf] }
 0x124   : > { %6834 = vmatpush3.bf16.msra.mxu0 %v7355_v60  ;;  %9614 = vst [vmem:[#allocation17_spill] sm:$0xff] %v8488_v34  ;;  %9615 = vst [vmem:[#allocation18_spill] sm:$0xff] %v8492_v14  ;;  %v4428_v49 = vor.u32 %v4427_v41, %v4424_v3  ;;  %v4438_v30 = vor.u32 %v4437_v0, %v8465_v45  ;;  %v1945_v9 = vrot.slane %v7424_v47, 5  ;;  %v4448_v62 = vrot.slane %v4446_v29, 4  ;;  %v8515_v3 = vld [vmem:[#allocation2 + $0x58] sm:$0xf] }
 0x125   : > { %6835 = vmatprep.subr.bf16.mxu0 %v7359_v40  ;;  %9616 = vst [vmem:[#allocation19_spill] sm:$0xff] %v8495_v52  ;;  %v4451_v11 = vrot.slane %v4449_v20, 5  ;;  %v4470_v54 = vshrl.u32 %v4337_v17, 16  ;;  %v4473_v22 = vshll.u32 %v4337_v17, 16  ;;  %v8499_v15 = vcombine.low %v4410_v28, %v4420_v38  ;;  %v4340_v17 = vld [vmem:[#allocation2 + $0x54] sm:$0xf] }
 0x126   : > { %6804 = vmatmul.mubr.bf16.gmra.mrb[12].mxu0 %v7346_v16  ;;  %v8484_v16 = vld [vmem:[#allocation3 + $0x200] sm:$0xff]   ;;  %v8501_v55 = vrot.slane %v4455_v31, 5  ;;  %v4465_v41 = vshll.u32 %v4336_v36, 16  ;;  %v4483_v29 = vshrl.u32 %v8495_v52, 16  ;;  %v4429_v20 = vrot.slane %v4428_v49, 4  ;;  %9618 = vst [vmem:[#allocation20_spill] sm:$0xff] %v8515_v3 }
 0x127   : > { %6576 = vmatmul.mubr.bf16.gmra.mrb[24].mxu1 %v9612_v13  ;;  %6807 = vmatprep.mubr.bf16.mxu0 %v7348_v57  ;;  %v4441_v57 = vshll.u32 %v4333_v32, 16  ;;  %v7352_v13 = vld [vmem:[#allocation2 + $0x90] sm:$0xff]   ;;  %v4461_v32 = vrot.slane %v4459_v56, 4  ;;  %v7425_v31 = vld [vmem:[#allocation2 + $0x8c] sm:$0x1]  ;;  %v1947_v38 = vrot.slane %v1945_v9, 4  ;;  %v9619_v49 = vcombine.low %v8330_v1, %v8338_v7 }
 0x128   : > { %6579 = vmatprep.mubr.bf16.mxu1 %v9613_v63  ;;  %6836 = vmatpush3.bf16.msra.mxu0 %v7359_v40  ;;  %v6057_v40 = vrot.slane %v1826_v44, 9  ;;  %v4479_v44 = vshll.u32 %v8495_v52, 16  ;;  %v4439_v63 = vrot.slane %v4438_v30, 4  ;;  %v1948_v56 = vrot.slane %v7425_v31, 5  ;;  %v7428_v60 = vld [vmem:[#allocation2 + $0xa0] sm:$0xf] }
 0x129   : > { %6837 = vmatprep.subr.bf16.mxu0 %v7363_v26  ;;  %v4443_v0 = vrot.slane %v4441_v57, 5  ;;  %v4452_v57 = vor.u32 %v4451_v11, %v4448_v62  ;;  %v4472_v36 = vrot.slane %v4470_v54, 4  ;;  %v4475_v47 = vrot.slane %v4473_v22, 5  ;;  %v8528_v54 = vld [vmem:[#allocation2 + $0x9c] sm:$0xe]  ;;  %9620 = vst [vmem:[#allocation21_spill] sm:$0xff] %v8539_v46 }
 0x12a   : > { %v8510_v28 = vsel %vm7888_vm9, %v6057_v40, %v1945_v9  ;;  %v4462_v30 = vor.u32 %v4461_v32, %v8501_v55  ;;  %v8521_v40 = vrot.slane %v4465_v41, 5  ;;  %v6058_v31 = vrot.slane %v8497_v10, 9  ;;  %v4343_v9 = vld [vmem:[#allocation2 + $0x60] sm:$0xf] }
 0x12b   : > { %v8526_v62 = vrot.slane %v4479_v44, 5  ;;  %v4485_v11 = vrot.slane %v4483_v29, 4  ;;  %v4494_v22 = vshrl.u32 %v4340_v17, 16  ;;  %v4497_v1 = vshll.u32 %v4340_v17, 16  ;;  %v7353_v41 = vld [vmem:[#allocation3 + $0xc8] sm:$0xff]  }
 0x12c   : > { %6838 = vmatpush3.bf16.msra.mxu0 %v7363_v26  ;;  %v9617_v26 = vcombine.low %v8221_v51, %v8223_v6  ;;  %v7426_v51 = vld [vmem:[#allocation2 + $0x94] sm:$0xf]  ;;  %v4434_v7 = vsel %vm7749_vm5, %v4429_v20, %v8465_v45  ;;  %v4503_v10 = vshll.u32 %v8515_v3, 16  ;;  %v4507_v32 = vshrl.u32 %v8515_v3, 16  ;;  %v7427_v29 = vld [vmem:[#allocation2 + $0x98] sm:$0x1] }
 0x12d   : > { %6871 = vmatprep.subr.bf16.mxu0 %v8484_v16  ;;  %v1952_v6 = vrot.slane %v7426_v51, 5  ;;  %v8537_v44 = vrot.slane %v4452_v57, 4  ;;  %v4476_v51 = vor.u32 %v4475_v47, %v4472_v36  ;;  %v1959_v17 = vrot.slane %v7428_v60, 5  ;;  %v8546_v47 = vld [vmem:[#allocation2 + $0x5c] sm:$0x1] }
 0x12e   : > { %6808 = vmatmul.mubr.bf16.gmra.mrb[16].mxu0 %v7350_v33  ;;  %v8524_v33 = vld [vmem:[#allocation2 + $0x50] sm:$0x1]  ;;  %v8541_v39 = vrot.slane %v4462_v30, 4  ;;  %v4518_v20 = vshrl.u32 %v4343_v9, 16  ;;  %v4486_v52 = vor.u32 %v4485_v11, %v8526_v62  ;;  %v4496_v14 = vrot.slane %v4494_v22, 4  ;;  %9621 = vst [vmem:[#allocation22_spill] sm:$0xff] %v8546_v47 }
 0x12f   : > { %6580 = vmatmul.mubr.bf16.gmra.mrb[28].mxu1 %v9617_v26  ;;  %6811 = vmatprep.mubr.bf16.mxu0 %v7352_v13  ;;  %v4444_v13 = vsel %vm7749_vm5, %v4439_v63, %v4443_v0  ;;  %v7354_v26 = vld [vmem:[#allocation2 + $0x9c] sm:$0xff]   ;;  %v1954_v45 = vrot.slane %v1952_v6, 4  ;;  %v4521_v0 = vshll.u32 %v4343_v9, 16  ;;  %v7356_v63 = vld [vmem:[#allocation2 + $0xa8] sm:$0xff]   ;;  %v4489_v3 = vshll.u32 %v8524_v33, 16 }
 0x130   : > { %6599 = vmatprep.mubr.bf16.mxu1 %v9619_v49  ;;  %v1955_v49 = vrot.slane %v7427_v29, 5  ;;  %v4499_v57 = vrot.slane %v4497_v1, 5  ;;  %v6059_v34 = vrot.slane %v8528_v54, 9  ;;  %v7429_v29 = vld [vmem:[#allocation2 + $0xa4] sm:$0x1]  ;;  %v8548_v60 = vrot.slane %v4503_v10, 5 }
 0x131   : > { %v1962_v36 = vrot.slane %v7429_v29, 5  ;;  %v4509_v30 = vrot.slane %v4507_v32, 4  ;;  %v9622_v42 = vcombine.low %v8342_v25, %v8346_v53  ;;  %v8553_v9 = vcombine.low %v4434_v7, %v4444_v13 }
 0x132   : > { %v8557_v11 = vsel %vm7888_vm9, %v1947_v38, %v1948_v56  ;;  %v8559_v22 = vrot.slane %v4476_v51, 4  ;;  %v1961_v54 = vrot.slane %v1959_v17, 4  ;;  %v9623_v1 = vcombine.low %v8350_v8, %v8354_v48  ;;  %v7430_v51 = vld [vmem:[#allocation2 + $0xac] sm:$0xf] }
 0x133   : > { %v4520_v10 = vrot.slane %v4518_v20, 4  ;;  %v4523_v32 = vrot.slane %v4521_v0, 5  ;;  %v4527_v25 = vshll.u32 %v8539_v46, 16  ;;  %v4531_v53 = vshrl.u32 %v8539_v46, 16  ;;  %v7358_v0 = vld [vmem:[#allocation2 + $0xb4] sm:$0xff]  }
 0x134   : > { %v4487_v56 = vrot.slane %v4486_v52, 4  ;;  %v4491_v38 = vrot.slane %v4489_v3, 5  ;;  %v4500_v7 = vor.u32 %v4499_v57, %v4496_v14  ;;  %v4513_v13 = vshll.u32 %v8546_v47, 16  ;;  %v7361_v52 = vld [vmem:[#allocation3 + $0xd8] sm:$0xff]  }
 0x135   : > { %v4458_v8 = vsel %vm7749_vm5, %v8537_v44, %v8501_v55  ;;  %v8574_v48 = vsel %vm7888_vm9, %v6058_v31, %v1952_v6  ;;  %v1966_v20 = vrot.slane %v7430_v51, 5  ;;  %v4468_v14 = vsel %vm7749_vm5, %v8541_v39, %v8521_v40  ;;  %v8593_v6 = vld [vmem:[#allocation2 + $0x68] sm:$0x1]  ;;  %v4349_v51 = vld [vmem:[#allocation2 + $0x78] sm:$0xf] }
 0x136   : > { %6812 = vmatmul.mubr.bf16.gmra.mrb[20].mxu0 %v7354_v26  ;;  %9624 = vst [vmem:[#allocation23_spill] sm:$0xff] %v8574_v48  ;;  %v1829_v26 = vld [vmem:[#allocation2 + $0xa8] sm:$0xe]  ;;  %v8583_v3 = vsel %vm7888_vm9, %v1954_v45, %v1955_v49  ;;  %v4482_v55 = vsel %vm7749_vm5, %v8559_v22, %v8526_v62  ;;  %v8591_v31 = vsel %vm7888_vm9, %v6059_v34, %v1959_v17  ;;  %9627 = vst [vmem:[#allocation26_spill] sm:$0xff] %v8593_v6  ;;  %v1830_v45 = vld [vmem:[#allocation2 + $0xb4] sm:$0xe] }
 0x137   : > { %6600 = vmatmul.mubr.bf16.vlgmr.msra.gmra.mrb[0].mxu1 %v9622_v42  ;;  %6815 = vmatprep.mubr.bf16.mxu0 %v7356_v63  ;;  %v7357_v42 = vld [vmem:[#allocation3 + $0xd0] sm:$0xff]   ;;  %9625 = vst [vmem:[#allocation24_spill] sm:$0xff] %v8583_v3  ;;  %9626 = vst [vmem:[#allocation25_spill] sm:$0xff] %v8591_v31  ;;  %v8597_v44 = vsel %vm7888_vm9, %v1961_v54, %v1962_v36  ;;  %v4524_v39 = vor.u32 %v4523_v32, %v4520_v10  ;;  %v8599_v40 = vrot.slane %v4527_v25, 5  ;;  %v7360_v63 = vld [vmem:[#allocation2 + $0xc0] sm:$0xff]  }
 0x138   : > { %6632 = vmatpush3.bf16.msra.mxu1 %v8370_v5  ;;  %6603 = vmatprep.mubr.bf16.mxu1 %v9623_v1  ;;  %v4510_v5 = vor.u32 %v4509_v30, %v8548_v60  ;;  %9628 = vst [vmem:[#allocation27_spill] sm:$0xff] %v8597_v44  ;;  %v4533_v49 = vrot.slane %v4531_v53, 4  ;;  %v4492_v62 = vsel %vm7749_vm5, %v4487_v56, %v4491_v38  ;;  %v8603_v57 = vrot.slane %v4500_v7, 4  ;;  %v7431_v36 = vld [vmem:[#allocation2 + $0xb0] sm:$0x1] }
 0x139   : > { %6633 = vmatprep.subr.bf16.mxu1 %v7353_v41  ;;  %v8605_v34 = vrot.slane %v4513_v13, 5  ;;  %v6060_v17 = vrot.slane %v1829_v26, 9  ;;  %v1968_v29 = vrot.slane %v1966_v20, 4  ;;  %v1969_v30 = vrot.slane %v7431_v36, 5  ;;  %v7432_v25 = vld [vmem:[#allocation2 + $0xb8] sm:$0xf] }
 0x13a   : > { %v4537_v22 = vshll.u32 %v8593_v6, 16  ;;  %v9629_v54 = vcombine.low %v8358_v19, %v8363_v61  ;;  %v6061_v32 = vrot.slane %v1830_v45, 9  ;;  %v1973_v53 = vrot.slane %v7432_v25, 5  ;;  %v4346_v56 = vld [vmem:[#allocation2 + $0x6c] sm:$0xf]  ;;  %v7364_v19 = vld [vmem:[#allocation3 + $0xe0] sm:$0xff]  }
 0x13b   : > { %v8617_v38 = vld [vmem:[#allocation2 + $0x70] sm:$0xf]  ;;  %v9631_v7 = vcombine.low %v8378_v24, %v8383_v50  ;;  %v8622_v61 = vcombine.low %v4458_v8, %v4468_v14  ;;  %v4534_v26 = vor.u32 %v4533_v49, %v8599_v40  ;;  %v8631_v45 = vcombine.low %v4482_v55, %v4492_v62  ;;  %v8641_v8 = vld [vmem:[#allocation2 + $0x88] sm:$0xf]  ;;  %v8653_v49 = vld [vmem:[#allocation2 + $0xbc] sm:$0x1] }
 0x13c   : > { %6634 = vmatpush3.bf16.msra.mxu1 %v7353_v41  ;;  %v8607_v41 = vrot.slane %v4510_v5, 4  ;;  %9630 = vst [vmem:[#allocation28_spill] sm:$0xff] %v8617_v38  ;;  %v8626_v5 = vrot.slane %v4524_v39, 4  ;;  %v8639_v50 = vsel %vm7888_vm9, %v6060_v17, %v1966_v20  ;;  %9633 = vst [vmem:[#allocation30_spill] sm:$0xff] %v8641_v8  ;;  %v8649_v55 = vsel %vm7888_vm9, %v1968_v29, %v1969_v30  ;;  %v4355_v20 = vld [vmem:[#allocation2 + $0x90] sm:$0xf] }
 0x13d   : > { %6635 = vmatprep.subr.bf16.mxu1 %v7357_v42  ;;  %v8651_v39 = vrot.slane %v4537_v22, 5  ;;  %v7362_v62 = vld [vmem:[#allocation2 + $0xcc] sm:$0xff]   ;;  %v8658_v17 = vsel %vm7888_vm9, %v6061_v32, %v1973_v53  ;;  %v8660_v36 = vrot.slane %v1973_v53, 4  ;;  %v4545_v25 = vshll.u32 %v4346_v56, 16  ;;  %v8670_v13 = vld [vmem:[#allocation2 + $0x94] sm:$0xf] }
 0x13e   : > { %6816 = vmatmul.mubr.bf16.gmra.mrb[24].mxu0 %v7358_v0  ;;  %v8629_v0 = vld [vmem:[#allocation2 + $0x7c] sm:$0xf]  ;;  %v8666_v30 = vrot.slane %v4534_v26, 4  ;;  %v4551_v22 = vshll.u32 %v8617_v38, 16  ;;  %9634 = vst [vmem:[#allocation31_spill] sm:$0xff] %v8670_v13  ;;  %v4566_v32 = vshrl.u32 %v4349_v51, 16  ;;  %v9635_v14 = vcombine.low %v8387_v4, %v8394_v21 }
 0x13f   : > { %6604 = vmatmul.mubr.bf16.gmra.mrb[4].mxu1 %v9629_v54  ;;  %9632 = vst [vmem:[#allocation29_spill] sm:$0xff] %v8629_v0  ;;  %6819 = vmatprep.mubr.bf16.mxu0 %v7360_v63  ;;  %v4542_v54 = vshrl.u32 %v4346_v56, 16  ;;  %v4569_v53 = vshll.u32 %v4349_v51, 16  ;;  %v4575_v10 = vshll.u32 %v8629_v0, 16  ;;  %v7366_v56 = vld [vmem:[#allocation3 + $0xe8] sm:$0xff]   ;;  %v4599_v29 = vshll.u32 %v8641_v8, 16 }
 0x140   : > { %6607 = vmatprep.mubr.bf16.mxu1 %v9631_v7  ;;  %6636 = vmatpush3.bf16.msra.mxu1 %v7357_v42  ;;  %v4352_v42 = vld [vmem:[#allocation2 + $0x84] sm:$0xf]  ;;  %v4555_v7 = vshrl.u32 %v8617_v38, 16  ;;  %v4603_v26 = vshrl.u32 %v8641_v8, 16  ;;  %v4614_v44 = vshrl.u32 %v4355_v20, 16  ;;  %v4617_v51 = vshll.u32 %v4355_v20, 16 }
 0x141   : > { %6637 = vmatprep.subr.bf16.mxu1 %v7361_v52  ;;  %v4590_v1 = vshrl.u32 %v4352_v42, 16  ;;  %v4593_v24 = vshll.u32 %v4352_v42, 16  ;;  %v8679_v63 = vrot.slane %v4542_v54, 4  ;;  %v4623_v31 = vshll.u32 %v8670_v13, 16  ;;  %v7368_v42 = vld [vmem:[#allocation3 + $0xf0] sm:$0xff]  }
 0x142   : > { %v8686_v38 = vld [vmem:[#allocation2 + $0x74] sm:$0x1]  ;;  %v4547_v8 = vrot.slane %v4545_v25, 5  ;;  %v8688_v6 = vrot.slane %v4551_v22, 5  ;;  %v4557_v4 = vrot.slane %v4555_v7, 4  ;;  %v4627_v21 = vshrl.u32 %v8670_v13, 16 }
 0x143   : > { %v4568_v20 = vrot.slane %v4566_v32, 4  ;;  %v8691_v54 = vrot.slane %v4575_v10, 5  ;;  %v8697_v25 = vrot.slane %v4599_v29, 5  ;;  %v4605_v22 = vrot.slane %v4603_v26, 4  ;;  %v8699_v7 = vld [vmem:[#allocation2 + $0x8c] sm:$0x1] }
 0x144   : > { %6638 = vmatpush3.bf16.msra.mxu1 %v7361_v52  ;;  %v4579_v52 = vshrl.u32 %v8629_v0, 16  ;;  %v9636_v0 = vcombine.low %v8412_v58, %v8417_v23  ;;  %v8693_v58 = vld [vmem:[#allocation2 + $0xa0] sm:$0xf]  ;;  %v4616_v13 = vrot.slane %v4614_v44, 4  ;;  %v4619_v3 = vrot.slane %v4617_v51, 5 }
 0x145   : > { %6639 = vmatprep.subr.bf16.mxu1 %v7364_v19  ;;  %9637 = vst [vmem:[#allocation32_spill] sm:$0xff] %v8693_v58  ;;  %v8695_v23 = vld [vmem:[#allocation2 + $0x80] sm:$0x1]  ;;  %v8703_v10 = vld [vmem:[#allocation2 + $0x98] sm:$0x1]  ;;  %v4647_v48 = vshll.u32 %v8693_v58, 16  ;;  %v4558_v29 = vor.u32 %v4557_v4, %v8688_v6 }
 0x146   : > { %6820 = vmatmul.mubr.bf16.gmra.mrb[28].mxu0 %v7362_v62  ;;  %v4571_v62 = vrot.slane %v4569_v53, 5  ;;  %v4581_v46 = vrot.slane %v4579_v52, 4  ;;  %9638 = vst [vmem:[#allocation33_spill] sm:$0xff] %v8695_v23  ;;  %v4629_v53 = vrot.slane %v4627_v21, 4  ;;  %v4651_v47 = vshrl.u32 %v8693_v58, 16 }
 0x147   : > { %6608 = vmatmul.mubr.bf16.gmra.mrb[8].mxu1 %v9635_v14  ;;  %6839 = vmatprep.mubr.bf16.mxu0 %v8477_v35  ;;  %v4358_v14 = vld [vmem:[#allocation2 + $0x9c] sm:$0xf]  ;;  %v4592_v35 = vrot.slane %v4590_v1, 4  ;;  %v7367_v1 = vld [vmem:[#allocation3 + $0x208] sm:$0xff]   ;;  %v4561_v44 = vshll.u32 %v8686_v38, 16  ;;  %v9639_v58 = vcombine.low %v8424_v2, %v8436_v59  ;;  %v4633_v4 = vshll.u32 %v8703_v10, 16 }
 0x148   : > { %6611 = vmatprep.mubr.bf16.mxu1 %v9636_v0  ;;  %6640 = vmatpush3.bf16.msra.mxu1 %v7364_v19  ;;  %v4595_v0 = vrot.slane %v4593_v24, 5  ;;  %v8701_v19 = vrot.slane %v4623_v31, 5  ;;  %v4638_v32 = vshrl.u32 %v4358_v14, 16  ;;  %v4641_v52 = vshll.u32 %v4358_v14, 16 }
 0x149   : > { %6641 = vmatprep.subr.bf16.mxu1 %v7366_v56  ;;  %v4548_v24 = vor.u32 %v4547_v8, %v8679_v63  ;;  %v4585_v31 = vshll.u32 %v8695_v23, 16  ;;  %v4572_v26 = vor.u32 %v4571_v62, %v4568_v20  ;;  %v4582_v51 = vor.u32 %v4581_v46, %v8691_v54  ;;  %v7370_v8 = vld [vmem:[#allocation3 + $0xf8] sm:$0xff]  }
 0x14a   : > { %v4596_v21 = vor.u32 %v4595_v0, %v4592_v35  ;;  %v4609_v14 = vshll.u32 %v8699_v7, 16  ;;  %v4606_v63 = vor.u32 %v4605_v22, %v8697_v25  ;;  %v4640_v23 = vrot.slane %v4638_v32, 4 }
 0x14b   : > { %v9640_v20 = vcombine.low %v8442_v37, %v8449_v43  ;;  %v4630_v46 = vor.u32 %v4629_v53, %v8701_v19  ;;  %v4643_v62 = vrot.slane %v4641_v52, 5  ;;  %v8724_v2 = vrot.slane %v4647_v48, 5 }
 0x14c   : > { %6642 = vmatpush3.bf16.msra.mxu1 %v7366_v56  ;;  %v4620_v56 = vor.u32 %v4619_v3, %v4616_v13  ;;  %v4653_v59 = vrot.slane %v4651_v47, 4  ;;  %v9641_v3 = vrot.slane %v8653_v49, 5  ;;  %v4549_v37 = vrot.slane %v4548_v24, 4 }
 0x14d   : > { %6643 = vmatprep.subr.bf16.mxu1 %v7368_v42  ;;  %v4559_v43 = vrot.slane %v4558_v29, 4  ;;  %v4573_v48 = vrot.slane %v4572_v26, 4  ;;  %v4583_v35 = vrot.slane %v4582_v51, 4  ;;  %v4587_v47 = vrot.slane %v4585_v31, 5  ;;  %v7371_v51 = vld [vmem:[#allocation3 + $0x218] sm:$0xff]  }
 0x14e   : > { %6840 = vmatmul.mubr.bf16.vlgmr.msra.gmra.mrb[0].mxu0 %v8499_v15  ;;  %v7369_v15 = vld [vmem:[#allocation3 + $0x210] sm:$0xff]   ;;  %v8732_v13 = vsel %vm7888_vm9, %v8660_v36, %v9641_v3  ;;  %v4597_v0 = vrot.slane %v4596_v21, 4  ;;  %v4607_v22 = vrot.slane %v4606_v63, 4  ;;  %v4611_v32 = vrot.slane %v4609_v14, 5 }
 0x14f   : > { %6612 = vmatmul.mubr.bf16.gmra.mrb[12].mxu1 %v9639_v58  ;;  %6872 = vmatpush3.bf16.msra.mxu0 %v8484_v16  ;;  %v4563_v16 = vrot.slane %v4561_v44, 5  ;;  %v8734_v58 = vld [vmem:[#allocation2 + $0xa4] sm:$0x1]  ;;  %v4621_v49 = vrot.slane %v4620_v56, 4  ;;  %v4635_v53 = vrot.slane %v4633_v4, 5  ;;  %v4631_v52 = vrot.slane %v4630_v46, 4 }
 0x150   : > { %6615 = vmatprep.mubr.bf16.mxu1 %v9640_v20  ;;  %6843 = vmatprep.mubr.bf16.mxu0 %v8553_v9  ;;  %v4361_v9 = vld [vmem:[#allocation2 + $0xa8] sm:$0xf]  ;;  %v4644_v36 = vor.u32 %v4643_v62, %v4640_v23  ;;  %v4654_v24 = vor.u32 %v4653_v59, %v8724_v2  ;;  %v4657_v29 = vshll.u32 %v8734_v58, 16  ;;  %v8738_v44 = vld [vmem:[#allocation2 + $0xac] sm:$0xf]  ;;  %v4554_v31 = vsel %vm7749_vm5, %v4549_v37, %v8688_v6  ;;  %v9642_v6 = vld [vmem:[#allocation16_spill] sm:$0xff] }
 0x151   : > { %6873 = vmatprep.subr.bf16.mxu0 %v7367_v1  ;;  %6644 = vmatpush3.bf16.msra.mxu1 %v7368_v42  ;;  %v4540_v42 = vsel %vm7749_vm5, %v8666_v30, %v8651_v39  ;;  %v4662_v26 = vshrl.u32 %v4361_v9, 16  ;;  %v4564_v23 = vsel %vm7749_vm5, %v4559_v43, %v4563_v16  ;;  %v4578_v21 = vsel %vm7749_vm5, %v4573_v48, %v8691_v54  ;;  %v9644_v4 = vld [vmem:[#allocation17_spill] sm:$0xff]  ;;  %v9645_v20 = vld [vmem:[#allocation18_spill] sm:$0xff]  ;;  %v8795_v43 = vld [vmem:[#allocation2 + $0xb0] sm:$0x1] }
 0x152   : > { %6645 = vmatprep.subr.bf16.mxu1 %v7370_v8  ;;  %v4588_v14 = vsel %vm7749_vm5, %v4583_v35, %v4587_v47  ;;  %v4602_v39 = vsel %vm7749_vm5, %v4597_v0, %v8697_v25  ;;  %v9643_v30 = vcombine.low %v8453_v12, %v9642_v6  ;;  %v4626_v54 = vsel %vm7749_vm5, %v4621_v49, %v8701_v19  ;;  %v8792_v37 = vld [vmem:[#allocation3 + $0x100] sm:$0xff]   ;;  %v5083_v0 = vld [vmem:[#allocation2 + $0x48] sm:$0xe] }
 0x153   : > { %6874 = vmatpush3.bf16.msra.mxu0 %v7367_v1  ;;  %v4665_v1 = vshll.u32 %v4361_v9, 16  ;;  %v4671_v63 = vshll.u32 %v8738_v44, 16  ;;  %v4675_v56 = vshrl.u32 %v8738_v44, 16  ;;  %v9646_v25 = vcombine.low %v9644_v4, %v9645_v20  ;;  %v7374_v47 = vld [vmem:[#allocation3 + $0x220] sm:$0xff]   ;;  %v9654_v20 = vld [vmem:[#allocation23_spill] sm:$0xff] }
 0x154   : > { %6875 = vmatprep.subr.bf16.mxu0 %v7369_v15  ;;  %v4636_v12 = vsel %vm7749_vm5, %v4631_v52, %v4635_v53  ;;  %v8776_v46 = vrot.slane %v4654_v24, 4  ;;  %v8778_v62 = vrot.slane %v4657_v29, 5  ;;  %v9647_v19 = vsel %vm7749_vm5, %v8607_v41, %v8605_v34  ;;  %v8801_v34 = vld [vmem:[#allocation2 + $0xb4] sm:$0xf]  ;;  %v8820_v53 = vld [vmem:[#allocation2 + $0xb8] sm:$0xf] }
 0x155   : > { %6646 = vmatpush3.bf16.msra.mxu1 %v7370_v8  ;;  %v4612_v8 = vsel %vm7749_vm5, %v4607_v22, %v4611_v32  ;;  %v9648_v59 = vsel %vm7749_vm5, %v8603_v57, %v8548_v60  ;;  %v6076_v3 = vcombine.low %v8639_v50, %v8649_v55  ;;  %v8797_v16 = vrot.slane %v4662_v26, 4  ;;  %v7377_v29 = vld [vmem:[#allocation3 + $0x228] sm:$0xff]   ;;  %v9650_v26 = vld [vmem:[#allocation19_spill] sm:$0xff]  ;;  %v9651_v6 = vld [vmem:[#allocation20_spill] sm:$0xff] }
 0x156   : > { %6844 = vmatmul.mubr.bf16.gmra.mrb[4].mxu0 %v8622_v61  ;;  %v8774_v61 = vrot.slane %v4644_v36, 4  ;;  %6919 = vmatprep.subr.bf16.mxu1 %v8792_v37  ;;  %v8799_v48 = vrot.slane %v4665_v1, 5  ;;  %v9649_v60 = vsel %vm7749_vm5, %v8626_v5, %v8599_v40  ;;  %v6077_v41 = vcombine.low %v8658_v17, %v8732_v13  ;;  %v5084_v40 = vld [vmem:[#allocation2 + $0x54] sm:$0xe]  ;;  %v9666_v50 = vld [vmem:[#allocation15_spill] sm:$0xff]  ;;  %v7375_v13 = vld [vmem:[#allocation2 + $0x24] sm:$0xff]  }
 0x157   : > { %6616 = vmatmul.mubr.bf16.gmra.mrb[16].mxu1 %v9643_v30  ;;  %6847 = vmatprep.mubr.bf16.mxu0 %v8631_v45  ;;  %v6203_v45 = vcombine.low %v9648_v59, %v9647_v19  ;;  %v6204_v57 = vcombine.low %v9649_v60, %v4540_v42  ;;  %v8812_v35 = vcombine.low %v4578_v21, %v4588_v14  ;;  %v8818_v32 = vrot.slane %v4671_v63, 5  ;;  %v9658_v59 = vld [vmem:[#allocation26_spill] sm:$0xff] }
 0x158   : > { %6619 = vmatprep.mubr.bf16.mxu1 %v9646_v25  ;;  %6876 = vmatpush3.bf16.msra.mxu0 %v7369_v15  ;;  %v8810_v15 = vcombine.low %v4554_v31, %v4564_v23  ;;  %v8814_v9 = vcombine.low %v4602_v39, %v4612_v8  ;;  %v8816_v22 = vcombine.low %v4626_v54, %v4636_v12  ;;  %v4677_v49 = vrot.slane %v4675_v56, 4  ;;  %v5086_v8 = vld [vmem:[#allocation2 + $0x6c] sm:$0xe]  ;;  %v9653_v56 = vld [vmem:[#allocation22_spill] sm:$0xff]  ;;  %v9655_v25 = vld [vmem:[#allocation24_spill] sm:$0xff] }
 0x159   : > { %6877 = vmatprep.subr.bf16.mxu0 %v7371_v51  ;;  %v4650_v5 = vsel %vm7749_vm5, %v8774_v61, %v8724_v2  ;;  %v4660_v52 = vsel %vm7749_vm5, %v8776_v46, %v8778_v62  ;;  %v4681_v36 = vshll.u32 %v8795_v43, 16  ;;  %v4686_v24 = vshrl.u32 %v8801_v34, 16  ;;  %v5085_v2 = vld [vmem:[#allocation2 + $0x60] sm:$0xe]  ;;  %v7380_v60 = vld [vmem:[#allocation3 + $0x230] sm:$0xff]  }
 0x15a   : > { %v4668_v42 = vor.u32 %v8799_v48, %v8797_v16  ;;  %v6226_v31 = vrot.slane %v5083_v0, 9  ;;  %v5173_v1 = vrot.slane %v9650_v26, 5  ;;  %v5176_v23 = vrot.slane %v8524_v33, 5  ;;  %v9657_v46 = vld [vmem:[#allocation21_spill] sm:$0xff]  ;;  %v9659_v48 = vld [vmem:[#allocation28_spill] sm:$0xff] }
 0x15b   : > { %v4689_v21 = vshll.u32 %v8801_v34, 16  ;;  %v4695_v14 = vshll.u32 %v8820_v53, 16  ;;  %v6227_v39 = vrot.slane %v5084_v40, 9  ;;  %v5180_v30 = vrot.slane %v9651_v6, 5  ;;  %v4367_v6 = vld [vmem:[#allocation2 + $0xc0] sm:$0xf] }
 0x15c   : > { %6878 = vmatpush3.bf16.msra.mxu0 %v7371_v51  ;;  %v9652_v51 = vcombine.low %v8510_v28, %v8557_v11  ;;  %v4678_v54 = vor.u32 %v4677_v49, %v8818_v32  ;;  %v8845_v33 = vsel %vm7888_vm9, %v6226_v31, %v5173_v1  ;;  %v5175_v63 = vrot.slane %v5173_v1, 4 }
 0x15d   : > { %6879 = vmatprep.subr.bf16.mxu0 %v7374_v47  ;;  %v5183_v4 = vrot.slane %v9653_v56, 5  ;;  %v9656_v12 = vcombine.low %v9654_v20, %v9655_v25  ;;  %v8853_v61 = vsel %vm7888_vm9, %v6227_v39, %v5180_v30  ;;  %v5182_v28 = vrot.slane %v5180_v30, 4  ;;  %v9660_v20 = vld [vmem:[#allocation25_spill] sm:$0xff]  ;;  %v9661_v25 = vld [vmem:[#allocation27_spill] sm:$0xff] }
 0x15e   : > { %6848 = vmatmul.mubr.bf16.gmra.mrb[8].mxu0 %v6203_v45  ;;  %v6228_v11 = vrot.slane %v5085_v2, 9  ;;  %v5187_v62 = vrot.slane %v9657_v46, 5  ;;  %v8858_v19 = vsel %vm7888_vm9, %v5175_v63, %v5176_v23  ;;  %v5190_v45 = vrot.slane %v9658_v59, 5 }
 0x15f   : > { %6620 = vmatmul.mubr.bf16.gmra.mrb[20].mxu1 %v9652_v51  ;;  %6851 = vmatprep.mubr.bf16.mxu0 %v6204_v57  ;;  %v6229_v16 = vrot.slane %v5086_v8, 9  ;;  %v5194_v34 = vrot.slane %v9659_v48, 5  ;;  %v6242_v57 = vcombine.low %v8845_v33, %v8858_v19  ;;  %v8866_v0 = vsel %vm7888_vm9, %v5182_v28, %v5183_v4  ;;  %v5087_v8 = vld [vmem:[#allocation2 + $0x78] sm:$0xe]  ;;  %v7452_v33 = vld [vmem:[#allocation2 + $0x88] sm:$0xf] }
 0x160   : > { %6623 = vmatprep.mubr.bf16.mxu1 %v9656_v12  ;;  %6880 = vmatpush3.bf16.msra.mxu0 %v7374_v47  ;;  %v8870_v47 = vsel %vm7888_vm9, %v6228_v11, %v5187_v62  ;;  %v5189_v49 = vrot.slane %v5187_v62, 4  ;;  %v6243_v40 = vcombine.low %v8853_v61, %v8866_v0  ;;  %v5197_v1 = vrot.slane %v8686_v38, 5  ;;  %v8917_v62 = vld [vmem:[#allocation2 + $0xbc] sm:$0x1] }
 0x161   : > { %6881 = vmatprep.subr.bf16.mxu0 %v7377_v29  ;;  %v8876_v31 = vsel %vm7888_vm9, %v6229_v16, %v5194_v34  ;;  %v5196_v26 = vrot.slane %v5194_v34, 4  ;;  %v8879_v23 = vcombine.low %v4650_v5, %v4660_v52  ;;  %v8881_v2 = vrot.slane %v4681_v36, 5  ;;  %v2713_v52 = vld [vmem:[#allocation2 + $0x78] sm:$0xf] }
 0x162   : > { %v4699_v39 = vshrl.u32 %v8820_v53, 16  ;;  %v8886_v30 = vsel %vm7888_vm9, %v5189_v49, %v5190_v45  ;;  %v8888_v51 = vrot.slane %v4668_v42, 4  ;;  %v8890_v63 = vrot.slane %v4686_v24, 4  ;;  %v7383_v42 = vld [vmem:[#allocation3 + $0x238] sm:$0xff]   ;;  %v9664_v45 = vld [vmem:[#allocation33_spill] sm:$0xff] }
 0x163   : > { %v6244_v38 = vcombine.low %v8870_v47, %v8886_v30  ;;  %v8896_v5 = vsel %vm7888_vm9, %v5196_v26, %v5197_v1  ;;  %v8898_v36 = vrot.slane %v4678_v54, 4  ;;  %v8900_v56 = vrot.slane %v4689_v21, 5  ;;  %v9663_v21 = vld [vmem:[#allocation29_spill] sm:$0xff]  ;;  %v9665_v1 = vld [vmem:[#allocation14_spill] sm:$0xff]  ;;  %v7453_v30 = vld [vmem:[#allocation2 + $0x94] sm:$0xf] }
 0x164   : > { %6882 = vmatpush3.bf16.msra.mxu0 %v7377_v29  ;;  %v8902_v4 = vrot.slane %v4695_v14, 5  ;;  %v8904_v29 = vld [vmem:[#allocation2 + $0xc4] sm:$0xf]  ;;  %v6245_v24 = vcombine.low %v8876_v31, %v8896_v5  ;;  %v9662_v12 = vcombine.low %v9660_v20, %v9661_v25  ;;  %v4710_v28 = vshrl.u32 %v4367_v6, 16 }
 0x165   : > { %6883 = vmatprep.subr.bf16.mxu0 %v7380_v60  ;;  %v4713_v54 = vshll.u32 %v4367_v6, 16  ;;  %v6230_v11 = vrot.slane %v5087_v8, 9  ;;  %v5201_v46 = vrot.slane %v9663_v21, 5  ;;  %v5088_v14 = vld [vmem:[#allocation2 + $0x84] sm:$0xe]  ;;  %v4701_v59 = vrot.slane %v4699_v39, 4 }
 0x166   : > { %6852 = vmatmul.mubr.bf16.gmra.mrb[12].mxu0 %v8810_v15  ;;  %v5204_v16 = vrot.slane %v9664_v45, 5  ;;  %v2951_v48 = vshrl.u32 %v2713_v52, 16  ;;  %v2954_v34 = vshll.u32 %v2713_v52, 16  ;;  %v4719_v15 = vshll.u32 %v8904_v29, 16  ;;  %v9667_v52 = vld [vmem:[#allocation30_spill] sm:$0xff] }
 0x167   : > { %6624 = vmatmul.mubr.bf16.gmra.mrb[24].mxu1 %v9662_v12  ;;  %6855 = vmatprep.mubr.bf16.mxu0 %v8812_v35  ;;  %v8923_v49 = vsel %vm7888_vm9, %v6230_v11, %v5201_v46  ;;  %v5203_v26 = vrot.slane %v5201_v46, 4  ;;  %v2973_v55 = vsel %vm7749_vm5, %v9666_v50, %v9665_v1  ;;  %v6231_v6 = vrot.slane %v5088_v14, 9  ;;  %v7372_v12 = vld [vmem:[#allocation2 + $0xc] sm:$0xff]  }
 0x168   : > { %6627 = vmatprep.mubr.bf16.mxu1 %v6076_v3  ;;  %6884 = vmatpush3.bf16.msra.mxu0 %v7380_v60  ;;  %v4723_v3 = vshrl.u32 %v8904_v29, 16  ;;  %v2953_v35 = vrot.slane %v2951_v48, 4  ;;  %v2956_v39 = vrot.slane %v2954_v34, 5  ;;  %v4705_v60 = vshll.u32 %v8917_v62, 16  ;;  %v4370_v46 = vld [vmem:[#allocation2 + $0xcc] sm:$0xf] }
 0x169   : > { %6885 = vmatprep.subr.bf16.mxu0 %v7383_v42  ;;  %v8933_v8 = vsel %vm7888_vm9, %v5203_v26, %v5204_v16  ;;  %v5208_v20 = vrot.slane %v9667_v52, 5  ;;  %v5211_v25 = vrot.slane %v8699_v7, 5  ;;  %v4674_v11 = vsel %vm7749_vm5, %v8888_v51, %v8818_v32  ;;  %v8943_v14 = vld [vmem:[#allocation2 + $0xd0] sm:$0xf] }
 0x16a   : > { %v4692_v21 = vor.u32 %v8900_v56, %v8890_v63  ;;  %v6246_v45 = vcombine.low %v8923_v49, %v8933_v8  ;;  %v2957_v16 = vor.u32 %v2956_v39, %v2953_v35  ;;  %v4712_v48 = vrot.slane %v4710_v28, 4  ;;  %v5089_v1 = vld [vmem:[#allocation2 + $0x90] sm:$0xe]  ;;  %v8958_v28 = vld [vmem:[#allocation2 + $0xc8] sm:$0x1] }
 0x16b   : > { %v4715_v34 = vrot.slane %v4713_v54, 5  ;;  %v8949_v7 = vsel %vm7888_vm9, %v6231_v6, %v5208_v20  ;;  %v5210_v26 = vrot.slane %v5208_v20, 4  ;;  %v4702_v32 = vor.u32 %v4701_v59, %v8902_v4 }
 0x16c   : > { %6886 = vmatpush3.bf16.msra.mxu0 %v7383_v42  ;;  %v8952_v51 = vrot.slane %v4719_v15, 5  ;;  %v4725_v63 = vrot.slane %v4723_v3, 4  ;;  %v2958_v56 = vrot.slane %v2957_v16, 4  ;;  %v4734_v42 = vshrl.u32 %v4370_v46, 16  ;;  %v9668_v15 = vld [vmem:[#allocation13_spill] sm:$0xff] }
 0x16d   : > { %v4737_v54 = vshll.u32 %v4370_v46, 16  ;;  %v4743_v50 = vshll.u32 %v8943_v14, 16  ;;  %v8963_v35 = vsel %vm7888_vm9, %v5210_v26, %v5211_v25  ;;  %v4747_v59 = vshrl.u32 %v8943_v14, 16  ;;  %v9669_v25 = vld [vmem:[#allocation31_spill] sm:$0xff] }
 0x16e   : > { %6856 = vmatmul.mubr.bf16.gmra.mrb[16].mxu0 %v8814_v9  ;;  %v2963_v17 = vsel %vm7749_vm5, %v2958_v56, %v9668_v15  ;;  %v4684_v9 = vsel %vm7749_vm5, %v8898_v36, %v8881_v2  ;;  %v4707_v3 = vrot.slane %v4705_v60, 5  ;;  %v4716_v39 = vor.u32 %v4715_v34, %v4712_v48  ;;  %v5090_v15 = vld [vmem:[#allocation2 + $0x9c] sm:$0xe]  ;;  %v8982_v2 = vld [vmem:[#allocation2 + $0xd4] sm:$0x1] }
 0x16f   : > { %6628 = vmatmul.mubr.bf16.gmra.mrb[28].mxu1 %v6077_v41  ;;  %6859 = vmatprep.mubr.bf16.mxu0 %v8816_v22  ;;  %v6232_v41 = vrot.slane %v5089_v1, 9  ;;  %v8976_v6 = vcombine.low %v2963_v17, %v2973_v55  ;;  %v7373_v22 = vld [vmem:[#allocation2 + $0x18] sm:$0xff]   ;;  %v4726_v52 = vor.u32 %v4725_v63, %v8952_v51  ;;  %v4729_v20 = vshll.u32 %v8958_v28, 16 }
 0x170   : > { %6647 = vmatprep.mubr.bf16.mxu1 %v7372_v12  ;;  %v5215_v12 = vrot.slane %v9669_v25, 5  ;;  %v5218_v46 = vrot.slane %v8703_v10, 5  ;;  %v4693_v16 = vrot.slane %v4692_v21, 4  ;;  %v4703_v26 = vrot.slane %v4702_v32, 4 }
 0x171   : > { %v4736_v1 = vrot.slane %v4734_v42, 4  ;;  %v4739_v56 = vrot.slane %v4737_v54, 5  ;;  %v8984_v36 = vrot.slane %v4743_v50, 5  ;;  %v4749_v55 = vrot.slane %v4747_v59, 4  ;;  %v9670_v50 = vld [vmem:[#allocation32_spill] sm:$0xff] }
 0x172   : > { %v8988_v60 = vsel %vm7888_vm9, %v6232_v41, %v5215_v12  ;;  %v5217_v48 = vrot.slane %v5215_v12, 4  ;;  %v6210_v34 = vcombine.low %v4674_v11, %v4684_v9  ;;  %v4717_v63 = vrot.slane %v4716_v39, 4  ;;  %v5079_v39 = vld [vmem:[#allocation2 + $0x18] sm:$0xe]  ;;  %v5091_v12 = vld [vmem:[#allocation2 + $0xa8] sm:$0xe] }
 0x173   : > { %v4727_v17 = vrot.slane %v4726_v52, 4  ;;  %v4731_v10 = vrot.slane %v4729_v20, 5  ;;  %v6233_v32 = vrot.slane %v5090_v15, 9  ;;  %v4698_v42 = vsel %vm7749_vm5, %v4693_v16, %v8902_v4  ;;  %v7435_v4 = vld [vmem:[#allocation3 + $0x108] sm:$0xff]   ;;  %v7436_v52 = vld [vmem:[#allocation2 + $0x1c] sm:$0xf] }
 0x174   : > { %v8992_v21 = vsel %vm7888_vm9, %v5217_v48, %v5218_v46  ;;  %v4753_v54 = vshll.u32 %v8982_v2, 16  ;;  %v5222_v59 = vrot.slane %v9670_v50, 5  ;;  %v4708_v41 = vsel %vm7749_vm5, %v4703_v26, %v4707_v3  ;;  %v7376_v46 = vld [vmem:[#allocation2 + $0x30] sm:$0xff]   ;;  %v7437_v48 = vld [vmem:[#allocation2 + $0x20] sm:$0x1] }
 0x175   : > { %v6248_v11 = vcombine.low %v8988_v60, %v8992_v21  ;;  %v4740_v9 = vor.u32 %v4739_v56, %v4736_v1  ;;  %v5145_v20 = vrot.slane %v7436_v52, 5  ;;  %v4732_v3 = vsel %vm7749_vm5, %v4727_v17, %v4731_v10  ;;  %v7378_v56 = vld [vmem:[#allocation2 + $0x3c] sm:$0xff]   ;;  %v5080_v50 = vld [vmem:[#allocation2 + $0x24] sm:$0xe] }
 0x176   : > { %6860 = vmatmul.mubr.bf16.gmra.mrb[20].mxu0 %v8879_v23  ;;  %v4750_v23 = vor.u32 %v4749_v55, %v8984_v36  ;;  %v9009_v25 = vsel %vm7888_vm9, %v6233_v32, %v5222_v59  ;;  %v4755_v16 = vrot.slane %v4753_v54, 5  ;;  %v6222_v26 = vrot.slane %v5079_v39, 9 }
 0x177   : > { %6648 = vmatmul.mubr.bf16.vlgmr.msra.gmra.mrb[0].mxu1 %v7373_v22  ;;  %v5225_v22 = vrot.slane %v8734_v58, 5  ;;  %6863 = vmatprep.mubr.bf16.mxu0 %v6210_v34  ;;  %v6211_v58 = vcombine.low %v4698_v42, %v4708_v41  ;;  %v4741_v15 = vrot.slane %v4740_v9, 4  ;;  %v5148_v34 = vrot.slane %v7437_v48, 5 }
 0x178   : > { %6927 = vmatpush3.bf16.msra.mxu1 %v8792_v37  ;;  %6651 = vmatprep.mubr.bf16.mxu1 %v7375_v13  ;;  %v5224_v37 = vrot.slane %v5222_v59, 4  ;;  %v4722_v13 = vsel %vm7749_vm5, %v4717_v63, %v8952_v51  ;;  %v4751_v55 = vrot.slane %v4750_v23, 4  ;;  %v7438_v63 = vld [vmem:[#allocation3 + $0x110] sm:$0xff]   ;;  %v5147_v10 = vrot.slane %v5145_v20, 4 }
 0x179   : > { %6920 = vmatprep.subr.bf16.mxu1 %v7435_v4  ;;  %v6212_v17 = vcombine.low %v4722_v13, %v4732_v3  ;;  %v6234_v32 = vrot.slane %v5091_v12, 9  ;;  %v5229_v42 = vrot.slane %v8738_v44, 5  ;;  %v5232_v54 = vrot.slane %v8795_v43, 5  ;;  %v7439_v44 = vld [vmem:[#allocation2 + $0x28] sm:$0xf] }
 0x17a   : > { %v9018_v1 = vsel %vm7888_vm9, %v5224_v37, %v5225_v22  ;;  %v4746_v9 = vsel %vm7749_vm5, %v4741_v15, %v8984_v36  ;;  %v4756_v23 = vsel %vm7749_vm5, %v4751_v55, %v4755_v16  ;;  %v5152_v39 = vrot.slane %v7439_v44, 5  ;;  %v5092_v43 = vld [vmem:[#allocation2 + $0xb4] sm:$0xe]  ;;  %v5081_v37 = vld [vmem:[#allocation2 + $0x30] sm:$0xe] }
 0x17b   : > { %v6249_v51 = vcombine.low %v9009_v25, %v9018_v1  ;;  %v9026_v59 = vsel %vm7888_vm9, %v6234_v32, %v5229_v42  ;;  %v5231_v41 = vrot.slane %v5229_v42, 4  ;;  %v7440_v22 = vld [vmem:[#allocation3 + $0x118] sm:$0xff]   ;;  %v5149_v52 = vsel %vm7888_vm9, %v5147_v10, %v5148_v34  ;;  %v7443_v10 = vld [vmem:[#allocation3 + $0x120] sm:$0xff]  }
 0x17c   : > { %6928 = vmatpush3.bf16.msra.mxu1 %v7435_v4  ;;  %v5146_v4 = vsel %vm7888_vm9, %v6222_v26, %v5145_v20  ;;  %v7441_v13 = vld [vmem:[#allocation2 + $0x34] sm:$0xf]  ;;  %v6223_v12 = vrot.slane %v5080_v50, 9  ;;  %v6213_v16 = vcombine.low %v4746_v9, %v4756_v23  ;;  %v6235_v55 = vrot.slane %v5092_v43, 9  ;;  %v7444_v42 = vld [vmem:[#allocation2 + $0x38] sm:$0x1] }
 0x17d   : > { %6921 = vmatprep.subr.bf16.mxu1 %v7438_v63  ;;  %v5159_v3 = vrot.slane %v7441_v13, 5  ;;  %v9039_v36 = vsel %vm7888_vm9, %v5231_v41, %v5232_v54  ;;  %v5236_v20 = vrot.slane %v8820_v53, 5  ;;  %v7381_v26 = vld [vmem:[#allocation2 + $0x54] sm:$0xff]   ;;  %v6238_v48 = vcombine.low %v5146_v4, %v5149_v52  ;;  %v5093_v9 = vld [vmem:[#allocation2 + $0xc0] sm:$0xe] }
 0x17e   : > { %6864 = vmatmul.mubr.bf16.gmra.mrb[24].mxu0 %v6211_v58  ;;  %v7379_v58 = vld [vmem:[#allocation2 + $0x48] sm:$0xff]   ;;  %v5154_v34 = vrot.slane %v5152_v39, 4  ;;  %v5162_v54 = vrot.slane %v7444_v42, 5  ;;  %v7445_v53 = vld [vmem:[#allocation2 + $0x40] sm:$0xf]  ;;  %v6236_v13 = vrot.slane %v5093_v9, 9 }
 0x17f   : > { %6652 = vmatmul.mubr.bf16.gmra.mrb[4].mxu1 %v7376_v46  ;;  %6867 = vmatprep.mubr.bf16.mxu0 %v6212_v17  ;;  %v6250_v46 = vcombine.low %v9026_v59, %v9039_v36  ;;  %v5239_v17 = vrot.slane %v8917_v62, 5  ;;  %v5161_v32 = vrot.slane %v5159_v3, 4  ;;  %v9047_v50 = vsel %vm7888_vm9, %v6235_v55, %v5236_v20  ;;  %v7462_v1 = vld [vmem:[#allocation2 + $0xbc] sm:$0x1] }
 0x180   : > { %6655 = vmatprep.mubr.bf16.mxu1 %v7378_v56  ;;  %6929 = vmatpush3.bf16.msra.mxu1 %v7438_v63  ;;  %v7442_v56 = vld [vmem:[#allocation2 + $0x2c] sm:$0x1]  ;;  %v6224_v63 = vrot.slane %v5081_v37, 9  ;;  %v5238_v41 = vrot.slane %v5236_v20, 4  ;;  %v5166_v23 = vrot.slane %v7445_v53, 5  ;;  %v5153_v62 = vsel %vm7888_vm9, %v6223_v12, %v5152_v39  ;;  %v7382_v12 = vld [vmem:[#allocation2 + $0x60] sm:$0xff]  }
 0x181   : > { %6922 = vmatprep.subr.bf16.mxu1 %v7440_v22  ;;  %v5155_v15 = vrot.slane %v7442_v56, 5  ;;  %v5163_v37 = vsel %vm7888_vm9, %v5161_v32, %v5162_v54  ;;  %v5246_v39 = vrot.slane %v8958_v28, 5  ;;  %v5094_v20 = vld [vmem:[#allocation2 + $0xcc] sm:$0xe]  ;;  %v5250_v42 = vrot.slane %v8943_v14, 5  ;;  %v7385_v14 = vld [vmem:[#allocation2 + $0x78] sm:$0xff]  }
 0x182   : > { %v9051_v44 = vsel %vm7888_vm9, %v5238_v41, %v5239_v17  ;;  %v5160_v52 = vsel %vm7888_vm9, %v6224_v63, %v5159_v3  ;;  %v5168_v55 = vrot.slane %v5166_v23, 4  ;;  %v6237_v28 = vrot.slane %v5094_v20, 9 }
 0x183   : > { %v5156_v43 = vsel %vm7888_vm9, %v5154_v34, %v5155_v15  ;;  %v6251_v4 = vcombine.low %v9047_v50, %v9051_v44  ;;  %v7447_v34 = vld [vmem:[#allocation2 + $0x44] sm:$0x1]  ;;  %v5253_v9 = vrot.slane %v8982_v2, 5  ;;  %v2984_v19 = vshll.u32 %v7452_v33, 16 }
 0x184   : > { %6930 = vmatpush3.bf16.msra.mxu1 %v7440_v22  ;;  %v5082_v22 = vld [vmem:[#allocation2 + $0x3c] sm:$0xe]  ;;  %v6239_v56 = vcombine.low %v5153_v62, %v5156_v43  ;;  %v5169_v17 = vrot.slane %v7447_v34, 5  ;;  %v9083_v53 = vsel %vm7888_vm9, %v6237_v28, %v5250_v42  ;;  %v5252_v62 = vrot.slane %v5250_v42, 4  ;;  %v7449_v43 = vld [vmem:[#allocation3 + $0x138] sm:$0xff]  }
 0x185   : > { %6923 = vmatprep.subr.bf16.mxu1 %v7443_v10  ;;  %v6225_v15 = vrot.slane %v5082_v22, 9  ;;  %v2710_v22 = vld [vmem:[#allocation2 + $0x6c] sm:$0xf] }
 0x186   : > { %6868 = vmatmul.mubr.bf16.gmra.mrb[28].mxu0 %v6213_v16  ;;  %v5243_v16 = vrot.slane %v8904_v29, 5  ;;  %v5170_v41 = vsel %vm7888_vm9, %v5168_v55, %v5169_v17  ;;  %v2927_v2 = vshrl.u32 %v2710_v22, 16 }
 0x187   : > { %6656 = vmatmul.mubr.bf16.gmra.mrb[8].mxu1 %v7379_v58  ;;  %6887 = vmatprep.mubr.bf16.mxu0 %v6238_v48  ;;  %v7446_v58 = vld [vmem:[#allocation3 + $0x128] sm:$0xff]   ;;  %v6240_v48 = vcombine.low %v5160_v52, %v5163_v37  ;;  %v5167_v54 = vsel %vm7888_vm9, %v6225_v15, %v5166_v23  ;;  %v9087_v37 = vsel %vm7888_vm9, %v5252_v62, %v5253_v9  ;;  %v7387_v15 = vld [vmem:[#allocation2 + $0x90] sm:$0xff]   ;;  %v7389_v9 = vld [vmem:[#allocation2 + $0xa8] sm:$0xff]  }
 0x188   : > { %6659 = vmatprep.mubr.bf16.mxu1 %v7381_v26  ;;  %6931 = vmatpush3.bf16.msra.mxu1 %v7443_v10  ;;  %v7384_v26 = vld [vmem:[#allocation2 + $0x6c] sm:$0xff]   ;;  %v9067_v3 = vsel %vm7888_vm9, %v6236_v13, %v5243_v16  ;;  %v5245_v63 = vrot.slane %v5243_v16, 4  ;;  %v6241_v52 = vcombine.low %v5167_v54, %v5170_v41  ;;  %v7386_v23 = vld [vmem:[#allocation2 + $0x84] sm:$0xff]   ;;  %v6253_v13 = vcombine.low %v9083_v53, %v9087_v37 }
 0x189   : > { %6924 = vmatprep.subr.bf16.mxu1 %v7446_v58  ;;  %v7448_v10 = vld [vmem:[#allocation3 + $0x130] sm:$0xff]   ;;  %v7450_v16 = vld [vmem:[#allocation2 + $0x70] sm:$0xf]  ;;  %v2929_v18 = vrot.slane %v2927_v2, 4 }
 0x18a   : > { %v9071_v29 = vsel %vm7888_vm9, %v5245_v63, %v5246_v39  ;;  %v2936_v39 = vshll.u32 %v7450_v16, 16  ;;  %v7451_v63 = vld [vmem:[#allocation2 + $0x74] sm:$0x1]  ;;  %v2719_v41 = vld [vmem:[#allocation2 + $0x90] sm:$0xf] }
 0x18b   : > { %v6252_v32 = vcombine.low %v9067_v3, %v9071_v29  ;;  %v3002_v2 = vshll.u32 %v2719_v41, 16 }
 0x18c   : > { %6932 = vmatpush3.bf16.msra.mxu1 %v7446_v58  ;;  %v2930_v58 = vshll.u32 %v2710_v22, 16  ;;  %v2938_v55 = vrot.slane %v2936_v39, 5  ;;  %v7390_v22 = vld [vmem:[#allocation2 + $0xb4] sm:$0xff]  }
 0x18d   : > { %6925 = vmatprep.subr.bf16.mxu1 %v7448_v10 }
 0x18e   : > { %6888 = vmatmul.mubr.bf16.vlgmr.msra.gmra.mrb[0].mxu0 %v6239_v56  ;;  %v2932_v56 = vrot.slane %v2930_v58, 5  ;;  %v3012_v58 = vshrl.u32 %v7453_v30, 16 }
 0x18f   : > { %6660 = vmatmul.mubr.bf16.gmra.mrb[12].mxu1 %v7382_v12  ;;  %6891 = vmatprep.mubr.bf16.mxu0 %v6240_v48  ;;  %v2940_v12 = vshrl.u32 %v7450_v16, 16  ;;  %v2716_v48 = vld [vmem:[#allocation2 + $0x84] sm:$0xf] }
 0x190   : > { %6663 = vmatprep.mubr.bf16.mxu1 %v7384_v26  ;;  %6933 = vmatpush3.bf16.msra.mxu1 %v7448_v10  ;;  %v7388_v26 = vld [vmem:[#allocation2 + $0x9c] sm:$0xff]   ;;  %v2933_v34 = vor.u32 %v2932_v56, %v2929_v18  ;;  %v2946_v10 = vshll.u32 %v7451_v63, 16  ;;  %v2975_v28 = vshrl.u32 %v2716_v48, 16  ;;  %v2978_v42 = vshll.u32 %v2716_v48, 16  ;;  %v7454_v18 = vld [vmem:[#allocation2 + $0x8c] sm:$0x1] }
 0x191   : > { %6926 = vmatprep.subr.bf16.mxu1 %v7449_v43  ;;  %v2942_v20 = vrot.slane %v2940_v12, 4  ;;  %v2994_v56 = vshll.u32 %v7454_v18, 16  ;;  %v3014_v5 = vrot.slane %v3012_v58, 4 }
 0x192   : > { %v2934_v54 = vrot.slane %v2933_v34, 4  ;;  %v2977_v61 = vrot.slane %v2975_v28, 4  ;;  %v2980_v0 = vrot.slane %v2978_v42, 5 }
 0x193   : > { %v2943_v17 = vor.u32 %v2942_v20, %v2938_v55  ;;  %v2996_v42 = vrot.slane %v2994_v56, 5 }
 0x194   : > { %6934 = vmatpush3.bf16.msra.mxu1 %v7449_v43  ;;  %v2948_v43 = vrot.slane %v2946_v10, 5  ;;  %v2939_v47 = vsel %vm7749_vm5, %v2934_v54, %v2938_v55  ;;  %v2981_v55 = vor.u32 %v2980_v0, %v2977_v61  ;;  %v7391_v10 = vld [vmem:[#allocation2 + $0xc0] sm:$0xff]  }
 0x195   : > { %v2944_v62 = vrot.slane %v2943_v17, 4  ;;  %v3004_v17 = vrot.slane %v3002_v2, 5  ;;  %v7458_v2 = vld [vmem:[#allocation2 + $0xac] sm:$0xf] }
 0x196   : > { %6892 = vmatmul.mubr.bf16.gmra.mrb[4].mxu0 %v6241_v52  ;;  %v2982_v54 = vrot.slane %v2981_v55, 4 }
 0x197   : > { %6664 = vmatmul.mubr.bf16.gmra.mrb[16].mxu1 %v7385_v14  ;;  %6895 = vmatprep.mubr.bf16.mxu0 %v6242_v57  ;;  %v2988_v57 = vshrl.u32 %v7452_v33, 16  ;;  %v9100_v14 = vrot.slane %v2984_v19, 5  ;;  %v2949_v12 = vsel %vm7749_vm5, %v2944_v62, %v2948_v43  ;;  %v7457_v43 = vld [vmem:[#allocation2 + $0xa4] sm:$0x1] }
 0x198   : > { %6667 = vmatprep.mubr.bf16.mxu1 %v7386_v23  ;;  %v2999_v23 = vshrl.u32 %v2719_v41, 16  ;;  %v6118_v28 = vcombine.low %v2939_v47, %v2949_v12  ;;  %v3042_v61 = vshll.u32 %v7457_v43, 16  ;;  %v3056_v47 = vshll.u32 %v7458_v2, 16  ;;  %v7459_v12 = vld [vmem:[#allocation2 + $0xb8] sm:$0xf] }
 0x199   : > { %v2990_v52 = vrot.slane %v2988_v57, 4  ;;  %v2725_v57 = vld [vmem:[#allocation2 + $0xa8] sm:$0xf]  ;;  %v3080_v18 = vshll.u32 %v7459_v12, 16  ;;  %v3084_v56 = vshrl.u32 %v7459_v12, 16 }
 0x19a   : > { %v3001_v34 = vrot.slane %v2999_v23, 4  ;;  %v3047_v0 = vshrl.u32 %v2725_v57, 16  ;;  %v3050_v23 = vshll.u32 %v2725_v57, 16 }
 0x19b   : > { %v2991_v48 = vor.u32 %v2990_v52, %v9100_v14  ;;  %v3082_v60 = vrot.slane %v3080_v18, 5  ;;  %v3086_v21 = vrot.slane %v3084_v56, 4 }
 0x19c   : > { %v3005_v8 = vor.u32 %v3004_v17, %v3001_v34  ;;  %v3049_v55 = vrot.slane %v3047_v0, 4  ;;  %v3058_v34 = vrot.slane %v3056_v47, 5 }
 0x19d   : > { %v2992_v49 = vrot.slane %v2991_v48, 4  ;;  %v3087_v25 = vor.u32 %v3086_v21, %v3082_v60 }
 0x19e   : > { %6896 = vmatmul.mubr.bf16.gmra.mrb[8].mxu0 %v6243_v40  ;;  %v2722_v40 = vld [vmem:[#allocation2 + $0x9c] sm:$0xf] }
 0x19f   : > { %6668 = vmatmul.mubr.bf16.gmra.mrb[20].mxu1 %v7387_v15  ;;  %6899 = vmatprep.mubr.bf16.mxu0 %v6244_v38  ;;  %v3008_v38 = vshll.u32 %v7453_v30, 16  ;;  %v3023_v16 = vshrl.u32 %v2722_v40, 16  ;;  %v3026_v39 = vshll.u32 %v2722_v40, 16  ;;  %v7455_v15 = vld [vmem:[#allocation2 + $0xa0] sm:$0xf]  ;;  %v3060_v30 = vshrl.u32 %v7458_v2, 16 }
 0x1a0   : > { %6671 = vmatprep.mubr.bf16.mxu1 %v7388_v26  ;;  %v3032_v20 = vshll.u32 %v7455_v15, 16  ;;  %v3036_v26 = vshrl.u32 %v7455_v15, 16  ;;  %v2728_v40 = vld [vmem:[#allocation2 + $0xb4] sm:$0xf]  ;;  %v2997_v58 = vsel %vm7749_vm5, %v2992_v49, %v2996_v42  ;;  %v7460_v49 = vld [vmem:[#allocation2 + $0xb0] sm:$0x1] }
 0x1a1   : > { %v9113_v31 = vrot.slane %v3008_v38, 5  ;;  %v3028_v63 = vrot.slane %v3026_v39, 5  ;;  %v2987_v38 = vsel %vm7749_vm5, %v2982_v54, %v9100_v14  ;;  %v3074_v39 = vshll.u32 %v2728_v40, 16 }
 0x1a2   : > { %v9115_v33 = vrot.slane %v3032_v20, 5  ;;  %v3038_v19 = vrot.slane %v3036_v26, 4  ;;  %v3044_v26 = vrot.slane %v3042_v61, 5  ;;  %v3052_v14 = vrot.slane %v3050_v23, 5 }
 0x1a3   : > { %v3062_v17 = vrot.slane %v3060_v30, 4  ;;  %v3088_v36 = vrot.slane %v3087_v25, 4 }
 0x1a4   : > { %v3039_v52 = vor.u32 %v3038_v19, %v9115_v33  ;;  %v3053_v57 = vor.u32 %v3052_v14, %v3049_v55 }
 0x1a5   : > { %v3063_v54 = vor.u32 %v3062_v17, %v3058_v34 }
 0x1a6   : > { %6900 = vmatmul.mubr.bf16.gmra.mrb[12].mxu0 %v6245_v24  ;;  %v3025_v24 = vrot.slane %v3023_v16, 4  ;;  %v3071_v16 = vshrl.u32 %v2728_v40, 16  ;;  %v3040_v48 = vrot.slane %v3039_v52, 4  ;;  %v3054_v61 = vrot.slane %v3053_v57, 4 }
 0x1a7   : > { %6672 = vmatmul.mubr.bf16.gmra.mrb[24].mxu1 %v7389_v9  ;;  %6903 = vmatprep.mubr.bf16.mxu0 %v6246_v45  ;;  %v7456_v45 = vld [vmem:[#allocation2 + $0x98] sm:$0x1]  ;;  %v3015_v9 = vor.u32 %v3014_v5, %v9113_v31  ;;  %v6120_v5 = vcombine.low %v2987_v38, %v2997_v58  ;;  %v3064_v0 = vrot.slane %v3063_v54, 4 }
 0x1a8   : > { %6675 = vmatprep.mubr.bf16.mxu1 %v7390_v22  ;;  %v3018_v41 = vshll.u32 %v7456_v45, 16  ;;  %v3029_v62 = vor.u32 %v3028_v63, %v3025_v24  ;;  %v9671_v22 = vcombine.low %v8949_v7, %v8963_v35  ;;  %v3006_v7 = vrot.slane %v3005_v8, 4  ;;  %v7461_v45 = vld [vmem:[#allocation2 + $0xc4] sm:$0xf] }
 0x1a9   : > { %v3016_v15 = vrot.slane %v3015_v9, 4  ;;  %v3073_v24 = vrot.slane %v3071_v16, 4  ;;  %v3076_v63 = vrot.slane %v3074_v39, 5  ;;  %v3045_v19 = vsel %vm7749_vm5, %v3040_v48, %v3044_v26 }
 0x1aa   : > { %v3020_v35 = vrot.slane %v3018_v41, 5  ;;  %v3030_v20 = vrot.slane %v3029_v62, 4  ;;  %v3108_v41 = vshrl.u32 %v7461_v45, 16  ;;  %v3059_v47 = vsel %vm7749_vm5, %v3054_v61, %v3058_v34 }
 0x1ab   : > { %v3077_v9 = vor.u32 %v3076_v63, %v3073_v24 }
 0x1ac   : > { %v3035_v42 = vsel %vm7749_vm5, %v3030_v20, %v9115_v33  ;;  %v3110_v2 = vrot.slane %v3108_v41, 4 }
 0x1ad   : > { %v6122_v43 = vcombine.low %v3035_v42, %v3045_v19  ;;  %v3078_v59 = vrot.slane %v3077_v9, 4 }
 0x1ae   : > { %6904 = vmatmul.mubr.bf16.gmra.mrb[16].mxu0 %v9671_v22 }
 0x1af   : > { %6676 = vmatmul.mubr.bf16.gmra.mrb[28].mxu1 %v7391_v10  ;;  %6907 = vmatprep.mubr.bf16.mxu0 %v6248_v11  ;;  %v2731_v11 = vld [vmem:[#allocation2 + $0xc0] sm:$0xf]  ;;  %v3011_v10 = vsel %vm7749_vm5, %v3006_v7, %v9113_v31  ;;  %v3066_v31 = vshll.u32 %v7460_v49, 16  ;;  %v7463_v7 = vld [vmem:[#allocation2 + $0xc8] sm:$0x1]  ;;  %v3083_v16 = vsel %vm7749_vm5, %v3078_v59, %v3082_v60 }
 0x1b0   : > { %6711 = vmatprep.mubr.bf16.mxu1 %v6118_v28  ;;  %v3021_v28 = vsel %vm7749_vm5, %v3016_v15, %v3020_v35  ;;  %v3095_v8 = vshrl.u32 %v2731_v11, 16  ;;  %v3098_v33 = vshll.u32 %v2731_v11, 16  ;;  %v3114_v35 = vshll.u32 %v7463_v7, 16 }
 0x1b1   : > { %v6121_v62 = vcombine.low %v3011_v10, %v3021_v28  ;;  %v3068_v40 = vrot.slane %v3066_v31, 5 }
 0x1b2   : > { %v3097_v22 = vrot.slane %v3095_v8, 4  ;;  %v3100_v52 = vrot.slane %v3098_v33, 5  ;;  %v3116_v18 = vrot.slane %v3114_v35, 5 }
 0x1b3   : > { %v3069_v30 = vsel %vm7749_vm5, %v3064_v0, %v3068_v40 }
 0x1b4   : > { %v3101_v38 = vor.u32 %v3100_v52, %v3097_v22  ;;  %v6123_v50 = vcombine.low %v3059_v47, %v3069_v30 }
 0x1b6   : > { %6908 = vmatmul.mubr.bf16.gmra.mrb[20].mxu0 %v6249_v51  ;;  %v3090_v51 = vshll.u32 %v7462_v1, 16 }
 0x1b7   : > { %6712 = vmatmul.mubr.bf16.vlgmr.msra.gmra.mrb[16].mxu1 %v8976_v6  ;;  %6911 = vmatprep.mubr.bf16.mxu0 %v6250_v46  ;;  %v3104_v6 = vshll.u32 %v7461_v45, 16 }
 0x1b8   : > { %6715 = vmatprep.mubr.bf16.mxu1 %v6120_v5  ;;  %v3092_v46 = vrot.slane %v3090_v51, 5 }
 0x1b9   : > { %v3106_v23 = vrot.slane %v3104_v6, 5 }
 0x1ba   : > { %v3093_v39 = vsel %vm7749_vm5, %v3088_v36, %v3092_v46 }
 0x1bb   : > { %v3111_v58 = vor.u32 %v3110_v2, %v3106_v23  ;;  %v6124_v44 = vcombine.low %v3083_v16, %v3093_v39 }
 0x1bd   : > { %v3112_v12 = vrot.slane %v3111_v58, 4 }
 0x1be   : > { %6912 = vmatmul.mubr.bf16.gmra.mrb[24].mxu0 %v6251_v4  ;;  %v3102_v4 = vrot.slane %v3101_v38, 4 }
 0x1bf   : > { %6716 = vmatmul.mubr.bf16.gmra.mrb[20].mxu1 %v6121_v62  ;;  %6915 = vmatprep.mubr.bf16.mxu0 %v6252_v32  ;;  %v3117_v29 = vsel %vm7749_vm5, %v3112_v12, %v3116_v18 }
 0x1c0   : > { %6719 = vmatprep.mubr.bf16.mxu1 %v6122_v43  ;;  %v3107_v3 = vsel %vm7749_vm5, %v3102_v4, %v3106_v23 }
 0x1c1   : > { %v6125_v32 = vcombine.low %v3107_v3, %v3117_v29 }
 0x1c6   : > { %6916 = vmatmul.mubr.bf16.gmra.mrb[28].mxu0 %v6253_v13 }
 0x1c7   : > { %6720 = vmatmul.mubr.bf16.gmra.mrb[24].mxu1 %v6123_v50 }
 0x1c8   : > { %6723 = vmatprep.mubr.bf16.mxu1 %v6124_v44 }
 0x1cf   : > { %6724 = vmatmul.mubr.bf16.gmra.mrb[28].mxu1 %v6125_v32 }
 0x24a   : > { %v6649_v56 = vpop.f32.mrb[0].mxu1 }
 0x24b   : > { %v2527_v15 = vpop.f32.mrb[1].mxu1 }
 0x24c   : > { %v6650_v20 = vpop.f32.mrb[2].mxu1 }
 0x24d   : > { %v2530_v26 = vpop.f32.mrb[3].mxu1 }
 0x252   : > { %v6653_v55 = vpop.f32.mrb[4].mxu1 }
 0x253   : > { %v2543_v48 = vpop.f32.mrb[5].mxu1 }
 0x254   : > { %v6654_v14 = vpop.f32.mrb[6].mxu1 }
 0x255   : > { %v2546_v34 = vpop.f32.mrb[7].mxu1 }
 0x25a   : > { %v6657_v53 = vpop.f32.mrb[8].mxu1 }
 0x25b   : > { %v2559_v37 = vpop.f32.mrb[9].mxu1 }
 0x25c   : > { %v6658_v13 = vpop.f32.mrb[10].mxu1 }
 0x25d   : > { %v2562_v17 = vpop.f32.mrb[11].mxu1 }
 0x261   : > { %v6889_v5 = vpop.f32.mrb[0].mxu0 }
 0x262   : > { %v6661_v27 = vpop.f32.mrb[12].mxu1  ;;  %v9172_v63 = vadd.f32 %v6889_v5, %v6649_v56  ;;  %v5418_v60 = vpop.f32.mrb[1].mxu0 }
 0x263   : > { %v2575_v24 = vpop.f32.mrb[13].mxu1  ;;  %v9174_v11 = vadd.f32 %v5418_v60, %v2527_v15  ;;  %v6890_v10 = vpop.f32.mrb[2].mxu0 }
 0x264   : > { %v6662_v21 = vpop.f32.mrb[14].mxu1  ;;  %5579 = vst [vmem:[%s9176_s8 + $0x10] sm:$0xff] %v9172_v63  ;;  %v9180_v42 = vadd.f32 %v6890_v10, %v6650_v20  ;;  %v5421_v19 = vpop.f32.mrb[3].mxu0 }
 0x265   : > { %v2578_v28 = vpop.f32.mrb[15].mxu1  ;;  %5577 = vst [vmem:[%s9176_s8] sm:$0xff] %v9174_v11  ;;  %v9184_v57 = vadd.f32 %v5421_v19, %v2530_v26 }
 0x266   : > { %5580 = vst [vmem:[%s9176_s8 + $0x18] sm:$0xff] %v9180_v42 }
 0x267   : > { %5578 = vst [vmem:[%s9176_s8 + $0x8] sm:$0xff] %v9184_v57  ;;  %v5609_v54 = vadd.f32 %v9184_v57, %v9174_v11 }
 0x269   : > { %v5610_v49 = vadd.f32 %v9172_v63, %v5609_v54  ;;  %v6893_v31 = vpop.f32.mrb[4].mxu0 }
 0x26a   : > { %v9193_v8 = vadd.f32 %v6893_v31, %v6653_v55  ;;  %v5434_v33 = vpop.f32.mrb[5].mxu0 }
 0x26b   : > { %v9195_v45 = vadd.f32 %v5434_v33, %v2543_v48  ;;  %v5611_v6 = vadd.f32 %v9180_v42, %v5610_v49  ;;  %v6894_v41 = vpop.f32.mrb[6].mxu0 }
 0x26c   : > { %5583 = vst [vmem:[%s9176_s8 + $0x30] sm:$0xff] %v9193_v8  ;;  %v9200_v9 = vadd.f32 %v6894_v41, %v6654_v14  ;;  %v5437_v25 = vpop.f32.mrb[7].mxu0 }
 0x26d   : > { %5581 = vst [vmem:[%s9176_s8 + $0x20] sm:$0xff] %v9195_v45  ;;  %v5612_v1 = vadd.f32 %v9195_v45, %v5611_v6  ;;  %v9205_v51 = vadd.f32 %v5437_v25, %v2546_v34 }
 0x26e   : > { %5584 = vst [vmem:[%s9176_s8 + $0x38] sm:$0xff] %v9200_v9 }
 0x26f   : > { %5582 = vst [vmem:[%s9176_s8 + $0x28] sm:$0xff] %v9205_v51  ;;  %v5613_v62 = vadd.f32 %v9205_v51, %v5612_v1 }
 0x271   : > { %v5614_v43 = vadd.f32 %v9193_v8, %v5613_v62  ;;  %v6897_v61 = vpop.f32.mrb[8].mxu0 }
 0x272   : > { %v9213_v0 = vadd.f32 %v6897_v61, %v6657_v53  ;;  %v5450_v40 = vpop.f32.mrb[9].mxu0 }
 0x273   : > { %v9215_v22 = vadd.f32 %v5450_v40, %v2559_v37  ;;  %v5615_v52 = vadd.f32 %v9200_v9, %v5614_v43  ;;  %v6898_v23 = vpop.f32.mrb[10].mxu0 }
 0x274   : > { %5587 = vst [vmem:[%s9176_s8 + $0x50] sm:$0xff] %v9213_v0  ;;  %v9220_v2 = vadd.f32 %v6898_v23, %v6658_v13  ;;  %v5453_v59 = vpop.f32.mrb[11].mxu0 }
 0x275   : > { %5585 = vst [vmem:[%s9176_s8 + $0x40] sm:$0xff] %v9215_v22  ;;  %v5616_v36 = vadd.f32 %v9215_v22, %v5615_v52  ;;  %v9225_v46 = vadd.f32 %v5453_v59, %v2562_v17 }
 0x276   : > { %5588 = vst [vmem:[%s9176_s8 + $0x58] sm:$0xff] %v9220_v2 }
 0x277   : > { %5586 = vst [vmem:[%s9176_s8 + $0x48] sm:$0xff] %v9225_v46  ;;  %v5617_v47 = vadd.f32 %v9225_v46, %v5616_v36 }
 0x279   : > { %v5618_v30 = vadd.f32 %v9213_v0, %v5617_v47  ;;  %v6901_v38 = vpop.f32.mrb[12].mxu0 }
 0x27a   : > { %v9233_v58 = vadd.f32 %v6901_v38, %v6661_v27  ;;  %v5466_v7 = vpop.f32.mrb[13].mxu0 }
 0x27b   : > { %v9235_v35 = vadd.f32 %v5466_v7, %v2575_v24  ;;  %v5619_v16 = vadd.f32 %v9220_v2, %v5618_v30  ;;  %v6902_v39 = vpop.f32.mrb[14].mxu0 }
 0x27c   : > { %5591 = vst [vmem:[%s9176_s8 + $0x70] sm:$0xff] %v9233_v58  ;;  %v9240_v50 = vadd.f32 %v6902_v39, %v6662_v21  ;;  %v5469_v44 = vpop.f32.mrb[15].mxu0 }
 0x27d   : > { %5589 = vst [vmem:[%s9176_s8 + $0x60] sm:$0xff] %v9235_v35  ;;  %v5620_v4 = vadd.f32 %v9235_v35, %v5619_v16  ;;  %v9245_v12 = vadd.f32 %v5469_v44, %v2578_v28 }
 0x27e   : > { %5592 = vst [vmem:[%s9176_s8 + $0x78] sm:$0xff] %v9240_v50 }
 0x27f   : > { %5590 = vst [vmem:[%s9176_s8 + $0x68] sm:$0xff] %v9245_v12  ;;  %v5621_v18 = vadd.f32 %v9245_v12, %v5620_v4 }
 0x281   : > { %v5622_v3 = vadd.f32 %v9233_v58, %v5621_v18  ;;  %v6905_v29 = vpop.f32.mrb[16].mxu0 }
 0x282   : > { %v5482_v32 = vpop.f32.mrb[17].mxu0 }
 0x283   : > { %v5623_v56 = vadd.f32 %v9240_v50, %v5622_v3  ;;  %v6906_v15 = vpop.f32.mrb[18].mxu0 }
 0x284   : > { %v5485_v20 = vpop.f32.mrb[19].mxu0 }
 0x289   : > { %v6909_v55 = vpop.f32.mrb[20].mxu0 }
 0x28a   : > { %v6713_v26 = vpop.f32.mrb[16].mxu1  ;;  %v5498_v34 = vpop.f32.mrb[21].mxu0 }
 0x28b   : > { %v9254_v48 = vadd.f32 %v6905_v29, %v6713_v26  ;;  %v3345_v14 = vpop.f32.mrb[17].mxu1  ;;  %v6910_v13 = vpop.f32.mrb[22].mxu0 }
 0x28c   : > { %v9256_v53 = vadd.f32 %v5482_v32, %v3345_v14  ;;  %v6714_v37 = vpop.f32.mrb[18].mxu1  ;;  %v5501_v5 = vpop.f32.mrb[23].mxu0 }
 0x28d   : > { %5595 = vst [vmem:[%s9176_s8 + $0x90] sm:$0xff] %v9254_v48  ;;  %v9260_v17 = vadd.f32 %v6906_v15, %v6714_v37  ;;  %v3348_v27 = vpop.f32.mrb[19].mxu1 }
 0x28e   : > { %5593 = vst [vmem:[%s9176_s8 + $0x80] sm:$0xff] %v9256_v53  ;;  %v5624_v24 = vadd.f32 %v9256_v53, %v5623_v56  ;;  %v9265_v60 = vadd.f32 %v5485_v20, %v3348_v27 }
 0x28f   : > { %5596 = vst [vmem:[%s9176_s8 + $0x98] sm:$0xff] %v9260_v17 }
 0x290   : > { %5594 = vst [vmem:[%s9176_s8 + $0x88] sm:$0xff] %v9265_v60  ;;  %v5625_v21 = vadd.f32 %v9265_v60, %v5624_v24 }
 0x291   : > { %v6913_v19 = vpop.f32.mrb[24].mxu0 }
 0x292   : > { %v5626_v10 = vadd.f32 %v9254_v48, %v5625_v21  ;;  %v6717_v28 = vpop.f32.mrb[20].mxu1  ;;  %v5514_v31 = vpop.f32.mrb[25].mxu0 }
 0x293   : > { %v9273_v54 = vadd.f32 %v6909_v55, %v6717_v28  ;;  %v3361_v49 = vpop.f32.mrb[21].mxu1  ;;  %v6914_v25 = vpop.f32.mrb[26].mxu0 }
 0x294   : > { %v9275_v33 = vadd.f32 %v5498_v34, %v3361_v49  ;;  %v5627_v6 = vadd.f32 %v9260_v17, %v5626_v10  ;;  %v6718_v41 = vpop.f32.mrb[22].mxu1  ;;  %v5517_v43 = vpop.f32.mrb[27].mxu0 }
 0x295   : > { %5599 = vst [vmem:[%s9176_s8 + $0xb0] sm:$0xff] %v9273_v54  ;;  %v9280_v1 = vadd.f32 %v6910_v13, %v6718_v41  ;;  %v3364_v62 = vpop.f32.mrb[23].mxu1 }
 0x296   : > { %5597 = vst [vmem:[%s9176_s8 + $0xa0] sm:$0xff] %v9275_v33  ;;  %v5628_v61 = vadd.f32 %v9275_v33, %v5627_v6  ;;  %v9285_v40 = vadd.f32 %v5501_v5, %v3364_v62 }
 0x297   : > { %5600 = vst [vmem:[%s9176_s8 + $0xb8] sm:$0xff] %v9280_v1 }
 0x298   : > { %5598 = vst [vmem:[%s9176_s8 + $0xa8] sm:$0xff] %v9285_v40  ;;  %v5629_v52 = vadd.f32 %v9285_v40, %v5628_v61 }
 0x299   : > { %v6917_v36 = vpop.f32.mrb[28].mxu0 }
 0x29a   : > { %v5630_v23 = vadd.f32 %v9273_v54, %v5629_v52  ;;  %v6721_v59 = vpop.f32.mrb[24].mxu1  ;;  %v5530_v38 = vpop.f32.mrb[29].mxu0 }
 0x29b   : > { %v9293_v47 = vadd.f32 %v6913_v19, %v6721_v59  ;;  %v3377_v30 = vpop.f32.mrb[25].mxu1  ;;  %v6918_v44 = vpop.f32.mrb[30].mxu0 }
 0x29c   : > { %v9295_v7 = vadd.f32 %v5514_v31, %v3377_v30  ;;  %v5631_v16 = vadd.f32 %v9280_v1, %v5630_v23  ;;  %v6722_v39 = vpop.f32.mrb[26].mxu1  ;;  %v5533_v3 = vpop.f32.mrb[31].mxu0 }
 0x29d   : > { %5603 = vst [vmem:[%s9176_s8 + $0xd0] sm:$0xff] %v9293_v47  ;;  %v9300_v4 = vadd.f32 %v6914_v25, %v6722_v39  ;;  %v3380_v18 = vpop.f32.mrb[27].mxu1 }
 0x29e   : > { %5601 = vst [vmem:[%s9176_s8 + $0xc0] sm:$0xff] %v9295_v7  ;;  %v5632_v29 = vadd.f32 %v9295_v7, %v5631_v16  ;;  %v9305_v32 = vadd.f32 %v5517_v43, %v3380_v18 }
 0x29f   : > { %5604 = vst [vmem:[%s9176_s8 + $0xd8] sm:$0xff] %v9300_v4 }
 0x2a0   : > { %5602 = vst [vmem:[%s9176_s8 + $0xc8] sm:$0xff] %v9305_v32  ;;  %v5633_v56 = vadd.f32 %v9305_v32, %v5632_v29 }
 0x2a2   : > { %v5634_v15 = vadd.f32 %v9293_v47, %v5633_v56  ;;  %v6725_v20 = vpop.f32.mrb[28].mxu1 }
 0x2a3   : > { %v9315_v26 = vadd.f32 %v6917_v36, %v6725_v20  ;;  %v3393_v55 = vpop.f32.mrb[29].mxu1 }
 0x2a4   : > { %v9317_v14 = vadd.f32 %v5530_v38, %v3393_v55  ;;  %v5635_v34 = vadd.f32 %v9300_v4, %v5634_v15  ;;  %v6726_v37 = vpop.f32.mrb[30].mxu1 }
 0x2a5   : > { %5607 = vst [vmem:[%s9176_s8 + $0xf0] sm:$0xff] %v9315_v26  ;;  %v9322_v13 = vadd.f32 %v6918_v44, %v6726_v37  ;;  %v3396_v27 = vpop.f32.mrb[31].mxu1 }
 0x2a6   : > { %5605 = vst [vmem:[%s9176_s8 + $0xe0] sm:$0xff] %v9317_v14  ;;  %v5636_v5 = vadd.f32 %v9317_v14, %v5635_v34  ;;  %v9334_v24 = vadd.f32 %v5533_v3, %v3396_v27 }
 0x2a7   : > { %5608 = vst [vmem:[%s9176_s8 + $0xf8] sm:$0xff] %v9322_v13 }
 0x2a8   : > { %5606 = vst [vmem:[%s9176_s8 + $0xe8] sm:$0xff] %v9334_v24  ;;  %v5637_v21 = vadd.f32 %v9334_v24, %v5636_v5 }
 0x2a9   : > { %7505 = shalt.err (!%p7502_p7)
}
 0x2aa   : > { %s7506_s29 = scalar_lea.hbm %s9327_s13, 4096  ;;  %s7510_s7 = scalar_lea.hbm %s9569_s2, 8192 }
 0x2ab   : > { %p7507_p8 = scmp.ne.s32.totalorder %s9327_s13, %s7506_s29  ;;  %p7511_p1 = scmp.lt.u32.totalorder %s9327_s13, %s9569_s2 }
 0x2ac   : > { %p7512_p0 = scmp.lt.u32.totalorder %s7510_s7, %s7506_s29  ;;  %p7514_p6 = scmp.lt.u32.totalorder %s7506_s29, %s9327_s13 }
 0x2ad   : > { %p7508_p11 = pnand %p7507_p8, %p9672_p9 }
 0x2ae   : > { %p7513_p5 = por %p7512_p0, %p7511_p1 }
 0x2af   : > { %p7509_p13 = pneg %p7508_p11 }
 0x2b0   : > { %p7515_p10 = por %p7514_p6, %p7513_p5 }
 0x2b2   : > { %p7516_p12 = pnand %p7515_p10, %p7509_p13 }
 0x2b4   : > { %7519 = shalt.err (!%p7516_p12)
}
 0x2b5   : > { %s7625_s11 = smov 128   ;;  %s7626_s12 = smov 8   ;;  %v5638_v10 = vadd.f32 %v9315_v26, %v5637_v21 }
 0x2b6   : > { %7195 = dma.vmem_to_hbm [thread:$0]  (%p9672_p9), %s9329_s10, 4096, %s9327_s13, %s5751_s14, %s7625_s11, %s7625_s11, %s7626_s12  }
 0x2b7   : > { %v5639_v28 = vadd.f32 %v9322_v13, %v5638_v10  ;;  %s5755_s22 = sand.u32 1, %s7675_s19   ;;  %s6265_s23 = sshll.u32 %s7675_s19, 4 }
 0x2b8   : > { %s215_s27 = scalar_lea.vmem [#allocation7], %s9169_s6  ;;  %s9377_s13 = scalar_lea.hbm %s9570_s3, %s6265_s23 }
 0x2b9   : > { %v5640_v19 = vrot.slane %v5639_v28, 4  ;;  %s5788_s28 = sshll.u32 %s215_s27, 4  ;;  %s9382_s14 = scalar_lea.sflag [#allocation8], %s5755_s22  ;;  %s9379_s28 = int_to_ptr.vmem [resolvable:$true] %s5788_s28 }
 0x2ba   : > { %s7520_s30 = scalar_lea.vmem %s9379_s28, 16  ;;  %s7627_s5 = smov [#allocation7]  }
 0x2bb   : > { %v5641_v49 = vadd.f32 %v5640_v19, %v5639_v28  ;;  %p7521_p2 = scmp.ne.s32.totalorder %s9379_s28, %s7520_s30  ;;  %s7524_s7 = sshll.u32 %s7627_s5, 4  ;;  %s7525_s7 = int_to_ptr.vmem [resolvable:$false] %s7524_s7 }
 0x2bc   : > { %s7526_s8 = scalar_lea.vmem %s7525_s7, 32  ;;  %p7527_p7 = scmp.lt.s32.totalorder %s9379_s28, %s7525_s7 }
 0x2bd   : > { %v5642_v31 = vrot.slane %v5641_v49, 2  ;;  %p7522_p3 = pnand %p7521_p2, %p9672_p9  ;;  %p7528_p8 = scmp.lt.s32.totalorder %s7526_s8, %s7520_s30 }
 0x2bf   : > { %v5643_v6 = vadd.f32 %v5642_v31, %v5641_v49  ;;  %p7523_p4 = pneg %p7522_p3  ;;  %p7529_p11 = por %p7528_p8, %p7527_p7 }
 0x2c1   : > { %v5644_v41 = vrot.slane %v5643_v6, 1  ;;  %p7530_p13 = pnand %p7529_p11, %p7523_p4 }
 0x2c3   : > { %v5645_v25 = vadd.f32 %v5644_v41, %v5643_v6 }
 0x2c5   : > { %v9370_v62 = vmul.f32 0.00390625, %v5645_v25 }
 0x2c7   : > { %5679 = vst [vmem:[%s215_s27] sm:$0x1] %v9370_v62 }
 0x2c8   : > { %7533 = shalt.err (!%p7530_p13)
}
 0x2c9   : > { %s7534_s9 = scalar_lea.hbm %s9377_s13, 16  ;;  %s7538_s22 = scalar_lea.hbm %s9570_s3, 32 }
 0x2ca   : > { %p7535_p1 = scmp.ne.s32.totalorder %s9377_s13, %s7534_s9  ;;  %p7539_p6 = scmp.lt.u32.totalorder %s9377_s13, %s9570_s3 }
 0x2cb   : > { %p7540_p10 = scmp.lt.u32.totalorder %s7538_s22, %s7534_s9  ;;  %p7542_p2 = scmp.lt.u32.totalorder %s7534_s9, %s9377_s13 }
 0x2cc   : > { %p7536_p0 = pnand %p7535_p1, %p9672_p9 }
 0x2cd   : > { %p7541_p12 = por %p7540_p10, %p7539_p6 }
 0x2ce   : > { %p7537_p5 = pneg %p7536_p0 }
 0x2cf   : > { %p7543_p3 = por %p7542_p2, %p7541_p12 }
 0x2d1   : > { %p7544_p4 = pnand %p7543_p3, %p7537_p5 }
 0x2d3   : > { %7547 = shalt.err (!%p7544_p4)
}
 0x2d4   : > { %7196 = dma.vmem_to_hbm [thread:$0]  (%p9672_p9), %s9379_s28, 16, %s9377_s13, %s9382_s14   ;;  %v5660_v43 = vsub.f32 %v9245_v12, %v9370_v62  ;;  %v5662_v61 = vsub.f32 %v9240_v50, %v9370_v62  ;;  %v5663_v52 = vsub.f32 %v9256_v53, %v9370_v62  ;;  %v5664_v23 = vsub.f32 %v9265_v60, %v9370_v62 }
 0x2d5   : > { %v5665_v59 = vsub.f32 %v9254_v48, %v9370_v62  ;;  %v9418_v36 = vsub.f32 %v9260_v17, %v9370_v62  ;;  %v9422_v30 = vsub.f32 %v9275_v33, %v9370_v62  ;;  %v9426_v50 = vsub.f32 %v9285_v40, %v9370_v62  ;;  %s221_s28 = scalar_lea.vmem [#allocation9], %s9169_s6  ;;  %s9528_s5 = scalar_lea.hbm %s9571_s4, %s6265_s23 }
 0x2d6   : > { %v9430_v12 = vsub.f32 %v9273_v54, %v9370_v62  ;;  %v9434_v53 = vsub.f32 %v9280_v1, %v9370_v62  ;;  %v9438_v48 = vsub.f32 %v9295_v7, %v9370_v62  ;;  %v9442_v17 = vsub.f32 %v9305_v32, %v9370_v62  ;;  %s5801_s10 = sshll.u32 %s221_s28, 4  ;;  %s7628_s8 = smov [#allocation9]   ;;  %s5802_s10 = int_to_ptr.vmem [resolvable:$true] %s5801_s10 }
 0x2d7   : > { %v9446_v60 = vsub.f32 %v9293_v47, %v9370_v62  ;;  %v9450_v54 = vsub.f32 %v9300_v4, %v9370_v62  ;;  %v9454_v33 = vsub.f32 %v9317_v14, %v9370_v62  ;;  %v9458_v1 = vsub.f32 %v9334_v24, %v9370_v62  ;;  %s7548_s7 = scalar_lea.vmem %s5802_s10, 16  ;;  %s7552_s9 = sshll.u32 %s7628_s8, 4  ;;  %s7553_s9 = int_to_ptr.vmem [resolvable:$false] %s7552_s9 }
 0x2d8   : > { %v9462_v40 = vsub.f32 %v9315_v26, %v9370_v62  ;;  %v9466_v47 = vsub.f32 %v9322_v13, %v9370_v62  ;;  %v5647_v38 = vsub.f32 %v9174_v11, %v9370_v62  ;;  %v5648_v7 = vsub.f32 %v9184_v57, %v9370_v62  ;;  %p7549_p7 = scmp.ne.s32.totalorder %s5802_s10, %s7548_s7  ;;  %s7554_s6 = scalar_lea.vmem %s7553_s9, 32 }
 0x2d9   : > { %v5649_v16 = vsub.f32 %v9172_v63, %v9370_v62  ;;  %v5650_v4 = vsub.f32 %v9180_v42, %v9370_v62  ;;  %v5651_v18 = vsub.f32 %v9195_v45, %v9370_v62  ;;  %v5652_v32 = vsub.f32 %v9205_v51, %v9370_v62  ;;  %p7555_p13 = scmp.lt.s32.totalorder %s5802_s10, %s7553_s9  ;;  %p7556_p1 = scmp.lt.s32.totalorder %s7554_s6, %s7548_s7 }
 0x2da   : > { %v5680_v39 = vmul.f32 %v5647_v38, %v5647_v38  ;;  %v5681_v44 = vmul.f32 %v5648_v7, %v5648_v7  ;;  %v5653_v57 = vsub.f32 %v9193_v8, %v9370_v62  ;;  %v5654_v20 = vsub.f32 %v9200_v9, %v9370_v62  ;;  %p7550_p8 = pnand %p7549_p7, %p9672_p9 }
 0x2db   : > { %v5682_v3 = vmul.f32 %v5649_v16, %v5649_v16  ;;  %v5683_v11 = vmul.f32 %v5650_v4, %v5650_v4  ;;  %v5684_v15 = vmul.f32 %v5651_v18, %v5651_v18  ;;  %v5685_v26 = vmul.f32 %v5652_v32, %v5652_v32  ;;  %p7557_p0 = por %p7556_p1, %p7555_p13 }
 0x2dc   : > { %v5712_v29 = vadd.f32 %v5681_v44, %v5680_v39  ;;  %v5655_v45 = vsub.f32 %v9215_v22, %v9370_v62  ;;  %v5686_v55 = vmul.f32 %v5653_v57, %v5653_v57  ;;  %v5656_v51 = vsub.f32 %v9225_v46, %v9370_v62  ;;  %p7551_p11 = pneg %p7550_p8 }
 0x2dd   : > { %v5687_v34 = vmul.f32 %v5654_v20, %v5654_v20  ;;  %v5657_v8 = vsub.f32 %v9213_v0, %v9370_v62  ;;  %v5658_v9 = vsub.f32 %v9220_v2, %v9370_v62  ;;  %v5659_v22 = vsub.f32 %v9235_v35, %v9370_v62 }
 0x2de   : > { %v5713_v56 = vadd.f32 %v5712_v29, %v5682_v3  ;;  %v5688_v13 = vmul.f32 %v5655_v45, %v5655_v45  ;;  %v5689_v5 = vmul.f32 %v5656_v51, %v5656_v51  ;;  %v5661_v46 = vsub.f32 %v9233_v58, %v9370_v62  ;;  %p7558_p5 = pnand %p7557_p0, %p7551_p11 }
 0x2df   : > { %v5690_v21 = vmul.f32 %v5657_v8, %v5657_v8  ;;  %v5691_v28 = vmul.f32 %v5658_v9, %v5658_v9  ;;  %v5692_v49 = vmul.f32 %v5659_v22, %v5659_v22  ;;  %v5693_v0 = vmul.f32 %v5660_v43, %v5660_v43 }
 0x2e0   : > { %v5714_v63 = vadd.f32 %v5713_v56, %v5683_v11  ;;  %v5694_v41 = vmul.f32 %v5661_v46, %v5661_v46  ;;  %v5695_v38 = vmul.f32 %v5662_v61, %v5662_v61  ;;  %v5696_v7 = vmul.f32 %v5663_v52, %v5663_v52 }
 0x2e1   : > { %v5697_v39 = vmul.f32 %v5664_v23, %v5664_v23  ;;  %v5698_v35 = vmul.f32 %v5665_v59, %v5665_v59  ;;  %v5699_v18 = vmul.f32 %v9418_v36, %v9418_v36  ;;  %v5700_v58 = vmul.f32 %v9422_v30, %v9422_v30 }
 0x2e2   : > { %v5715_v42 = vadd.f32 %v5714_v63, %v5684_v15  ;;  %v5701_v43 = vmul.f32 %v9426_v50, %v9426_v50  ;;  %v5702_v61 = vmul.f32 %v9430_v12, %v9430_v12  ;;  %v5703_v23 = vmul.f32 %v9434_v53, %v9434_v53 }
 0x2e3   : > { %v5704_v36 = vmul.f32 %v9438_v48, %v9438_v48  ;;  %v5705_v30 = vmul.f32 %v9442_v17, %v9442_v17  ;;  %v5706_v50 = vmul.f32 %v9446_v60, %v9446_v60  ;;  %v5707_v12 = vmul.f32 %v9450_v54, %v9450_v54 }
 0x2e4   : > { %v5716_v14 = vadd.f32 %v5715_v42, %v5685_v26  ;;  %v5708_v53 = vmul.f32 %v9454_v33, %v9454_v33  ;;  %v5709_v48 = vmul.f32 %v9458_v1, %v9458_v1  ;;  %v5710_v17 = vmul.f32 %v9462_v40, %v9462_v40 }
 0x2e5   : > { %v5711_v60 = vmul.f32 %v9466_v47, %v9466_v47 }
 0x2e6   : > { %v5717_v37 = vadd.f32 %v5716_v14, %v5686_v55 }
 0x2e8   : > { %v5718_v27 = vadd.f32 %v5717_v37, %v5687_v34 }
 0x2ea   : > { %v5719_v24 = vadd.f32 %v5718_v27, %v5688_v13 }
 0x2ec   : > { %v5720_v10 = vadd.f32 %v5719_v24, %v5689_v5 }
 0x2ee   : > { %v5721_v19 = vadd.f32 %v5720_v10, %v5690_v21 }
 0x2f0   : > { %v5722_v31 = vadd.f32 %v5721_v19, %v5691_v28 }
 0x2f2   : > { %v5723_v6 = vadd.f32 %v5722_v31, %v5692_v49 }
 0x2f4   : > { %v5724_v25 = vadd.f32 %v5723_v6, %v5693_v0 }
 0x2f6   : > { %v5725_v2 = vadd.f32 %v5724_v25, %v5694_v41 }
 0x2f8   : > { %v5726_v16 = vadd.f32 %v5725_v2, %v5695_v38 }
 0x2fa   : > { %v5727_v44 = vadd.f32 %v5726_v16, %v5696_v7 }
 0x2fc   : > { %v5728_v4 = vadd.f32 %v5727_v44, %v5697_v39 }
 0x2fe   : > { %v5729_v3 = vadd.f32 %v5728_v4, %v5698_v35 }
 0x300   : > { %v5730_v62 = vadd.f32 %v5729_v3, %v5699_v18 }
 0x302   : > { %v5731_v29 = vadd.f32 %v5730_v62, %v5700_v58 }
 0x304   : > { %v5732_v52 = vadd.f32 %v5731_v29, %v5701_v43 }
 0x306   : > { %v5733_v59 = vadd.f32 %v5732_v52, %v5702_v61 }
 0x308   : > { %v5734_v32 = vadd.f32 %v5733_v59, %v5703_v23 }
 0x30a   : > { %v5735_v11 = vadd.f32 %v5734_v32, %v5704_v36 }
 0x30c   : > { %v5736_v56 = vadd.f32 %v5735_v11, %v5705_v30 }
 0x30e   : > { %v5737_v57 = vadd.f32 %v5736_v56, %v5706_v50 }
 0x310   : > { %v5738_v15 = vadd.f32 %v5737_v57, %v5707_v12 }
 0x312   : > { %v5739_v63 = vadd.f32 %v5738_v15, %v5708_v53 }
 0x314   : > { %v5740_v20 = vadd.f32 %v5739_v63, %v5709_v48 }
 0x316   : > { %v5741_v26 = vadd.f32 %v5740_v20, %v5710_v17 }
 0x318   : > { %v5742_v54 = vadd.f32 %v5741_v26, %v5711_v60 }
 0x31a   : > { %v5743_v42 = vrot.slane %v5742_v54, 4 }
 0x31c   : > { %v5744_v45 = vadd.f32 %v5743_v42, %v5742_v54 }
 0x31e   : > { %v5745_v55 = vrot.slane %v5744_v45, 2 }
 0x320   : > { %v5746_v33 = vadd.f32 %v5745_v55, %v5744_v45 }
 0x322   : > { %v5747_v14 = vrot.slane %v5746_v33, 1 }
 0x324   : > { %v5748_v1 = vadd.f32 %v5747_v14, %v5746_v33 }
 0x326   : > { %5749 = vst [vmem:[%s221_s28] sm:$0x1] %v5748_v1 }
 0x327   : > { %7561 = shalt.err (!%p7558_p5)
}
 0x328   : > { %s7562_s19 = scalar_lea.hbm %s9528_s5, 16  ;;  %s7566_s12 = scalar_lea.hbm %s9571_s4, 32 }
 0x329   : > { %p7563_p6 = scmp.ne.s32.totalorder %s9528_s5, %s7562_s19  ;;  %p7567_p2 = scmp.lt.u32.totalorder %s9528_s5, %s9571_s4 }
 0x32a   : > { %p7568_p3 = scmp.lt.u32.totalorder %s7566_s12, %s7562_s19  ;;  %p7570_p7 = scmp.lt.u32.totalorder %s7562_s19, %s9528_s5 }
 0x32b   : > { %p7564_p10 = pnand %p7563_p6, %p9672_p9 }
 0x32c   : > { %p7569_p4 = por %p7568_p3, %p7567_p2 }
 0x32d   : > { %p7565_p12 = pneg %p7564_p10 }
 0x32e   : > { %p7571_p8 = por %p7570_p7, %p7569_p4 }
 0x330   : > { %p7572_p11 = pnand %p7571_p8, %p7565_p12 }
 0x332   : > { %7575 = shalt.err (!%p7572_p11)
}
 0x333   : > { %7197 = dma.vmem_to_hbm [thread:$0]  (%p9672_p9), %s5802_s10, 16, %s9528_s5, %s9382_s14  }
 0x334 PF: > { %p7217_p13 = scmp.ge.s32.totalorder %s7618_s18, 2  ;;  %s5813_s29 = sand.u32 1, %s7606_s15  }
 0x335   : > { %p9673_p1 = scmp.ne.s32.totalorder %s9595_s26, 0  ;;  %s5814_s28 = scalar_lea.sflag [#allocation5], %s5813_s29 }
 0x337   : > { %p7206_p0 = pnand %p7217_p13, %p9673_p1 }
 0x339   : > { %7597 = dma.done.wait (!%p7206_p0), %s5814_s28, 4096  }
 0x33a   : > { %7599 = vsyncadd (!%p7206_p0), %s5814_s28, 4294963200  ;;  %s5822_s13 = sand.u32 1, %s5925_s20  }
 0x33b   : > { %s5823_s30 = scalar_lea.sflag [#allocation8], %s5822_s13 }
 0x33c   : > { %7601 = dma.done.wait (!%p7206_p0), %s5823_s30, 32  }
 0x33d   : > { %7603 = vsyncadd (!%p7206_p0), %s5823_s30, 4294967264  ;;  %p19_p9 = scmp.ge.s32.totalorder %s7679_s21, 4   ;;  %s9674_s15 = smov %s7610_s16 }
 0x33e   : > { %s9675_s16 = smov %s7614_s17  ;;  %s9676_s17 = smov %s7692_s24 }
 0x33f   : > { %s9677_s18 = smov %s7679_s21  ;;  %21 = sbr.rel (!%p19_p9) target bundleno = 6 (0x6), region = 111 }
 0x346   :  { %5835 = vsyncpa [#allocation4], 1 }
 0x347   :  { %5837 = vsyncpa [#allocation4 + $0x1], 1 }
 0x348   :  { %5838 = vsyncpa [#allocation5], 1 }
 0x349   :  { %5840 = vsyncpa [#allocation5 + $0x1], 1 }
 0x34a   :  { %5841 = vsyncpa [#allocation8], 1 }
 0x34b   :  { %5843 = vsyncpa [#allocation8 + $0x1], 1 }

</bundles_post_ra>
